<compile_context>
chip_gen: v7x
topology: tpu7x:2x2x1
jax: 0.10.0
libtpu: 0.0.40
codegen_flags: <defaults>
</compile_context>

<pallas_src>
import jax
import jax.numpy as jnp
from jax.experimental import pallas as pl
from jax.experimental.pallas import tpu as pltpu


def _round_up(a: int, m: int) -> int:
    return ((a + m - 1) // m) * m


def _make_kernel(l0: int, l1: int, out_ch: int):
    """Builds the kernel with static channel sizes baked in (for lane slices)."""

    def kernel(
        x_ref,      # (tile_n, L0)
        v_ref,      # (tile_n, 3*L1)   row-major flatten of (tile_n, 3, L1)
        w_v_ref,    # (L1, L1+OUT)     fused [W_v1 | W_v2]
        w_u1_ref,   # (L0+L1, L1)
        b_u1_ref,   # (1, L1)
        w_u2_ref,   # (L1, 2*OUT)
        b_u2_ref,   # (1, 2*OUT)
        xo_ref,     # (tile_n, OUT)
        vo_ref,     # (tile_n, 3*OUT)
    ):
        w_v = w_v_ref[...]

        # --- fused vec1/vec2 projection: one (tile_n, L1) @ (L1, L1+OUT) dot
        # per spatial component (static unroll over 3). ---------------------
        sumsq = None
        vec2_parts = []
        for k in range(3):
            vk = v_ref[:, k * l1:(k + 1) * l1]                      # (tile_n, L1)
            p = jnp.dot(vk, w_v, preferred_element_type=jnp.float32)  # (tile_n, L1+OUT)
            p1 = p[:, :l1]
            sumsq = p1 * p1 if sumsq is None else sumsq + p1 * p1
            vec2_parts.append(p[:, l1:])                            # (tile_n, OUT)
        vec1 = jnp.sqrt(sumsq)                                      # torch.norm(dim=-2)

        # Stash vec2 in the output VMEM block (free scratch) so it is not
        # kept live in vregs across the remaining matmuls.
        vo_ref[...] = jnp.concatenate(vec2_parts, axis=-1)          # (tile_n, 3*OUT)

        # --- update_net layer 1: single K=(L0+L1) dot on lane-concat input --
        h = jnp.concatenate([x_ref[...], vec1], axis=-1)            # (tile_n, L0+L1)
        h = jnp.dot(h, w_u1_ref[...], preferred_element_type=jnp.float32)
        h = jax.nn.silu(h + b_u1_ref[...])

        # --- update_net layer 2: single (L1, 2*OUT) dot, static lane split --
        u = jnp.dot(h, w_u2_ref[...], preferred_element_type=jnp.float32)
        u = u + b_u2_ref[...]
        s = u[:, :out_ch]
        g = u[:, out_ch:]

        xo_ref[...] = jax.nn.silu(s).astype(xo_ref.dtype)

        # Gate the stashed vec2 (full 3*OUT-lane read/modify/write).
        g3 = jnp.concatenate([g, g, g], axis=-1)                    # (tile_n, 3*OUT)
        vo_ref[...] = (g3 * vo_ref[...]).astype(vo_ref.dtype)

    return kernel


def gated_equivariant_block(x, v, params, *, tile_n: int = 1024):
    """Pallas forward of GatedEquivariantBlock.

    x: [N, L0] float32, v: [N, 3, L1] float32.
    params: dict with w_v1 [L1,L1], w_v2 [L1,OUT], w_u1 [L0+L1,L1], b_u1 [L1],
            w_u2 [L1,2*OUT], b_u2 [2*OUT]  (weights stored input-major, i.e.
            already transposed relative to torch.nn.Linear.weight).
    returns: (x_out [N, OUT], v_out [N, 3, OUT])
    """
    n, l0 = x.shape
    _, three, l1 = v.shape
    assert three == 3
    out_ch = params["w_v2"].shape[1]

    # ---- wrapper-side weight fusion / layout (no HBM copies of x or v) -----
    w_v = jnp.concatenate([params["w_v1"], params["w_v2"]], axis=1)   # (L1, L1+OUT)
    w_u1 = params["w_u1"]                                             # (L0+L1, L1)
    b_u1 = params["b_u1"].reshape(1, l1)
    w_u2 = params["w_u2"]                                             # (L1, 2*OUT)
    b_u2 = params["b_u2"].reshape(1, 2 * out_ch)

    # Node tile: multiple of 8 (sublane), clamped so tiny inputs don't over-pad.
    tile_n = max(8, min(tile_n, _round_up(n, 8)))
    tile_n = _round_up(tile_n, 8)
    n_pad = pl.cdiv(n, tile_n) * tile_n

    # (N, 3, L1) -> (N, 3*L1) is a free row-major reshape (no transpose / copy).
    v_flat = v.reshape(n, 3 * l1)
    if n_pad != n:
        x = jnp.pad(x, ((0, n_pad - n), (0, 0)))
        v_flat = jnp.pad(v_flat, ((0, n_pad - n), (0, 0)))

    grid = (n_pad // tile_n,)
    const = lambda i: (0, 0)

    kernel = _make_kernel(l0, l1, out_ch)

    xo, vo_flat = pl.pallas_call(
        kernel,
        out_shape=(
            jax.ShapeDtypeStruct((n_pad, out_ch), jnp.float32),
            jax.ShapeDtypeStruct((n_pad, 3 * out_ch), jnp.float32),
        ),
        grid_spec=pltpu.PrefetchScalarGridSpec(
            num_scalar_prefetch=0,
            grid=grid,
            in_specs=[
                pl.BlockSpec((tile_n, l0), lambda i: (i, 0)),
                pl.BlockSpec((tile_n, 3 * l1), lambda i: (i, 0)),
                pl.BlockSpec((l1, l1 + out_ch), const),
                pl.BlockSpec((l0 + l1, l1), const),
                pl.BlockSpec((1, l1), const),
                pl.BlockSpec((l1, 2 * out_ch), const),
                pl.BlockSpec((1, 2 * out_ch), const),
            ],
            out_specs=(
                pl.BlockSpec((tile_n, out_ch), lambda i: (i, 0)),
                pl.BlockSpec((tile_n, 3 * out_ch), lambda i: (i, 0)),
            ),
        ),
        compiler_params=pltpu.CompilerParams(
            dimension_semantics=("parallel",),
        ),
    )(x, v_flat, w_v, w_u1, b_u1, w_u2, b_u2)

    # (N, 3*OUT) -> (N, 3, OUT) is a free reshape.
    v_out = vo_flat[:n].reshape(n, 3, out_ch)
    return xo[:n], v_out


def _reference(x, v, p):
    """Plain JAX reference of the torch forward."""
    out_ch = p["w_v2"].shape[1]
    vp1 = jnp.einsum("ntc,cd->ntd", v, p["w_v1"])
    vec1 = jnp.sqrt(jnp.sum(vp1 * vp1, axis=1))
    vec2 = jnp.einsum("ntc,cd->ntd", v, p["w_v2"])
    h = jnp.concatenate([x, vec1], axis=-1)
    h = jax.nn.silu(h @ p["w_u1"] + p["b_u1"])
    u = h @ p["w_u2"] + p["b_u2"]
    s, g = u[:, :out_ch], u[:, out_ch:]
    return jax.nn.silu(s), g[:, None, :] * vec2


if __name__ == "__main__":
    key = jax.random.PRNGKey(0)
    ks = jax.random.split(key, 8)

    # Small, module-consistent shapes: N nodes, 32 scalar / 32 vector channels,
    # 32 output channels.  N is deliberately not a tile multiple to exercise
    # the cdiv-grid + padding path (tile clamps to a multiple of 8).
    N, L0, L1, OUT = 200, 32, 32, 32

    x = jax.random.normal(ks[0], (N, L0), dtype=jnp.float32)
    v = jax.random.normal(ks[1], (N, 3, L1), dtype=jnp.float32)

    params = dict(
        w_v1=jax.random.normal(ks[2], (L1, L1), jnp.float32) / jnp.sqrt(L1),
        w_v2=jax.random.normal(ks[3], (L1, OUT), jnp.float32) / jnp.sqrt(L1),
        w_u1=jax.random.normal(ks[4], (L0 + L1, L1), jnp.float32) / jnp.sqrt(L0 + L1),
        b_u1=0.1 * jax.random.normal(ks[5], (L1,), jnp.float32),
        w_u2=jax.random.normal(ks[6], (L1, 2 * OUT), jnp.float32) / jnp.sqrt(L1),
        b_u2=0.1 * jax.random.normal(ks[7], (2 * OUT,), jnp.float32),
    )

    x_out, v_out = gated_equivariant_block(x, v, params)
    x_out = jax.block_until_ready(x_out)
    v_out = jax.block_until_ready(v_out)

    x_ref, v_ref = _reference(x, v, params)
    assert x_out.shape == (N, OUT) and v_out.shape == (N, 3, OUT)
    assert jnp.allclose(x_out, x_ref, atol=2e-4, rtol=2e-4)
    assert jnp.allclose(v_out, v_ref, atol=2e-4, rtol=2e-4)

    # TODO(synk): vec1 = sqrt(sumsq) matches torch.norm in the forward; if a
    # custom VJP is added later, guard the zero-norm case with an eps.
    print("KERNEL_OK")
</pallas_src>

<mosaic_0001>
module attributes {stable_mosaic.version = 11 : i64} {
  func.func @kernel(%arg0: i32, %arg1: memref<200x32xf32, #tpu.memory_space<vmem>>, %arg2: memref<200x96xf32, #tpu.memory_space<vmem>>, %arg3: memref<32x64xf32, #tpu.memory_space<vmem>>, %arg4: memref<64x32xf32, #tpu.memory_space<vmem>>, %arg5: memref<1x32xf32, #tpu.memory_space<vmem>>, %arg6: memref<32x64xf32, #tpu.memory_space<vmem>>, %arg7: memref<1x64xf32, #tpu.memory_space<vmem>>, %arg8: memref<200x32xf32, #tpu.memory_space<vmem>>, %arg9: memref<200x96xf32, #tpu.memory_space<vmem>>) attributes {dimension_semantics = [#tpu.dimension_semantics<parallel>], iteration_bounds = array<i64: 1>, scalar_prefetch = 0 : i64, scratch_operands = 0 : i64, tpu.core_type = #tpu.core_type<tc>, window_params = [{transform_indices = @transform_0, window_bounds = array<i64: 200, 32>}, {transform_indices = @transform_1, window_bounds = array<i64: 200, 96>}, {pipeline_mode = #tpu.pipeline_mode<synchronous>, transform_indices = @transform_2, window_bounds = array<i64: 32, 64>}, {pipeline_mode = #tpu.pipeline_mode<synchronous>, transform_indices = @transform_3, window_bounds = array<i64: 64, 32>}, {pipeline_mode = #tpu.pipeline_mode<synchronous>, transform_indices = @transform_4, window_bounds = array<i64: 1, 32>}, {pipeline_mode = #tpu.pipeline_mode<synchronous>, transform_indices = @transform_5, window_bounds = array<i64: 32, 64>}, {pipeline_mode = #tpu.pipeline_mode<synchronous>, transform_indices = @transform_6, window_bounds = array<i64: 1, 64>}, {transform_indices = @transform_7, window_bounds = array<i64: 200, 32>}, {transform_indices = @transform_8, window_bounds = array<i64: 200, 96>}]} {
    %c0 = arith.constant 0 : index
    %c0_0 = arith.constant 0 : index
    %0 = vector.load %arg3[%c0, %c0_0] : memref<32x64xf32, #tpu.memory_space<vmem>>, vector<32x64xf32>
    %c0_1 = arith.constant 0 : index
    %c0_2 = arith.constant 0 : index
    %1 = vector.load %arg2[%c0_1, %c0_2] : memref<200x96xf32, #tpu.memory_space<vmem>>, vector<200x32xf32>
    %cst = arith.constant dense<0.000000e+00> : vector<200x64xf32>
    %2 = tpu.matmul %1, %0, %cst {dimension_numbers = #tpu.dot_dimension_numbers<[1], [0], [0], [1], [0, 0, 1, 1], [], []>} : vector<200x32xf32>, vector<32x64xf32>, vector<200x64xf32> -> vector<200x64xf32>
    %3 = vector.extract_strided_slice %2 {offsets = [0, 0], sizes = [200, 32], strides = [1, 1]} : vector<200x64xf32> to vector<200x32xf32>
    %4 = arith.mulf %3, %3 : vector<200x32xf32>
    %5 = vector.extract_strided_slice %2 {offsets = [0, 32], sizes = [200, 32], strides = [1, 1]} : vector<200x64xf32> to vector<200x32xf32>
    %c0_3 = arith.constant 0 : index
    %c32 = arith.constant 32 : index
    %6 = vector.load %arg2[%c0_3, %c32] : memref<200x96xf32, #tpu.memory_space<vmem>>, vector<200x32xf32>
    %cst_4 = arith.constant dense<0.000000e+00> : vector<200x64xf32>
    %7 = tpu.matmul %6, %0, %cst_4 {dimension_numbers = #tpu.dot_dimension_numbers<[1], [0], [0], [1], [0, 0, 1, 1], [], []>} : vector<200x32xf32>, vector<32x64xf32>, vector<200x64xf32> -> vector<200x64xf32>
    %8 = vector.extract_strided_slice %7 {offsets = [0, 0], sizes = [200, 32], strides = [1, 1]} : vector<200x64xf32> to vector<200x32xf32>
    %9 = arith.mulf %8, %8 : vector<200x32xf32>
    %10 = arith.addf %4, %9 : vector<200x32xf32>
    %11 = vector.extract_strided_slice %7 {offsets = [0, 32], sizes = [200, 32], strides = [1, 1]} : vector<200x64xf32> to vector<200x32xf32>
    %c0_5 = arith.constant 0 : index
    %c64 = arith.constant 64 : index
    %12 = vector.load %arg2[%c0_5, %c64] : memref<200x96xf32, #tpu.memory_space<vmem>>, vector<200x32xf32>
    %cst_6 = arith.constant dense<0.000000e+00> : vector<200x64xf32>
    %13 = tpu.matmul %12, %0, %cst_6 {dimension_numbers = #tpu.dot_dimension_numbers<[1], [0], [0], [1], [0, 0, 1, 1], [], []>} : vector<200x32xf32>, vector<32x64xf32>, vector<200x64xf32> -> vector<200x64xf32>
    %14 = vector.extract_strided_slice %13 {offsets = [0, 0], sizes = [200, 32], strides = [1, 1]} : vector<200x64xf32> to vector<200x32xf32>
    %15 = arith.mulf %14, %14 : vector<200x32xf32>
    %16 = arith.addf %10, %15 : vector<200x32xf32>
    %17 = vector.extract_strided_slice %13 {offsets = [0, 32], sizes = [200, 32], strides = [1, 1]} : vector<200x64xf32> to vector<200x32xf32>
    %18 = math.sqrt %16 : vector<200x32xf32>
    %19 = tpu.concatenate %5, %11, %17 in 1 : vector<200x32xf32>, vector<200x32xf32>, vector<200x32xf32> -> vector<200x96xf32>
    %c0_7 = arith.constant 0 : index
    %c0_8 = arith.constant 0 : index
    %20 = vector.load %arg9[%c0_7, %c0_8] : memref<200x96xf32, #tpu.memory_space<vmem>>, vector<200x96xf32>
    tpu.vector_store %arg9[%c0_7, %c0_8], %19 {strides = array<i32>} : memref<200x96xf32, #tpu.memory_space<vmem>>, vector<200x96xf32>,
    %c0_9 = arith.constant 0 : index
    %c0_10 = arith.constant 0 : index
    %21 = vector.load %arg1[%c0_9, %c0_10] : memref<200x32xf32, #tpu.memory_space<vmem>>, vector<200x32xf32>
    %22 = tpu.concatenate %21, %18 in 1 : vector<200x32xf32>, vector<200x32xf32> -> vector<200x64xf32>
    %c0_11 = arith.constant 0 : index
    %c0_12 = arith.constant 0 : index
    %23 = vector.load %arg4[%c0_11, %c0_12] : memref<64x32xf32, #tpu.memory_space<vmem>>, vector<64x32xf32>
    %cst_13 = arith.constant dense<0.000000e+00> : vector<200x32xf32>
    %24 = tpu.matmul %22, %23, %cst_13 {dimension_numbers = #tpu.dot_dimension_numbers<[1], [0], [0], [1], [0, 0, 1, 1], [], []>} : vector<200x64xf32>, vector<64x32xf32>, vector<200x32xf32> -> vector<200x32xf32>
    %c0_14 = arith.constant 0 : index
    %c0_15 = arith.constant 0 : index
    %25 = vector.load %arg5[%c0_14, %c0_15] : memref<1x32xf32, #tpu.memory_space<vmem>>, vector<1x32xf32>
    %26 = vector.broadcast %25 : vector<1x32xf32> to vector<200x32xf32>
    %27 = arith.addf %24, %26 : vector<200x32xf32>
    %28 = arith.negf %27 : vector<200x32xf32>
    %29 = math.exp %28 : vector<200x32xf32>
    %cst_16 = arith.constant 1.000000e+00 : f32
    %30 = vector.broadcast %cst_16 : f32 to vector<200x32xf32>
    %31 = arith.addf %30, %29 : vector<200x32xf32>
    %32 = arith.divf %30, %31 : vector<200x32xf32>
    %33 = arith.mulf %27, %32 : vector<200x32xf32>
    %c0_17 = arith.constant 0 : index
    %c0_18 = arith.constant 0 : index
    %34 = vector.load %arg6[%c0_17, %c0_18] : memref<32x64xf32, #tpu.memory_space<vmem>>, vector<32x64xf32>
    %cst_19 = arith.constant dense<0.000000e+00> : vector<200x64xf32>
    %35 = tpu.matmul %33, %34, %cst_19 {dimension_numbers = #tpu.dot_dimension_numbers<[1], [0], [0], [1], [0, 0, 1, 1], [], []>} : vector<200x32xf32>, vector<32x64xf32>, vector<200x64xf32> -> vector<200x64xf32>
    %c0_20 = arith.constant 0 : index
    %c0_21 = arith.constant 0 : index
    %36 = vector.load %arg7[%c0_20, %c0_21] : memref<1x64xf32, #tpu.memory_space<vmem>>, vector<1x64xf32>
    %37 = vector.broadcast %36 : vector<1x64xf32> to vector<200x64xf32>
    %38 = arith.addf %35, %37 : vector<200x64xf32>
    %39 = vector.extract_strided_slice %38 {offsets = [0, 0], sizes = [200, 32], strides = [1, 1]} : vector<200x64xf32> to vector<200x32xf32>
    %40 = vector.extract_strided_slice %38 {offsets = [0, 32], sizes = [200, 32], strides = [1, 1]} : vector<200x64xf32> to vector<200x32xf32>
    %41 = arith.negf %39 : vector<200x32xf32>
    %42 = math.exp %41 : vector<200x32xf32>
    %cst_22 = arith.constant 1.000000e+00 : f32
    %43 = vector.broadcast %cst_22 : f32 to vector<200x32xf32>
    %44 = arith.addf %43, %42 : vector<200x32xf32>
    %45 = arith.divf %43, %44 : vector<200x32xf32>
    %46 = arith.mulf %39, %45 : vector<200x32xf32>
    %c0_23 = arith.constant 0 : index
    %c0_24 = arith.constant 0 : index
    %47 = vector.load %arg8[%c0_23, %c0_24] : memref<200x32xf32, #tpu.memory_space<vmem>>, vector<200x32xf32>
    tpu.vector_store %arg8[%c0_23, %c0_24], %46 {strides = array<i32>} : memref<200x32xf32, #tpu.memory_space<vmem>>, vector<200x32xf32>,
    %48 = tpu.concatenate %40, %40, %40 in 1 : vector<200x32xf32>, vector<200x32xf32>, vector<200x32xf32> -> vector<200x96xf32>
    %c0_25 = arith.constant 0 : index
    %c0_26 = arith.constant 0 : index
    %49 = vector.load %arg9[%c0_25, %c0_26] : memref<200x96xf32, #tpu.memory_space<vmem>>, vector<200x96xf32>
    %50 = arith.mulf %48, %49 : vector<200x96xf32>
    %c0_27 = arith.constant 0 : index
    %c0_28 = arith.constant 0 : index
    %51 = vector.load %arg9[%c0_27, %c0_28] : memref<200x96xf32, #tpu.memory_space<vmem>>, vector<200x96xf32>
    tpu.vector_store %arg9[%c0_27, %c0_28], %50 {strides = array<i32>} : memref<200x96xf32, #tpu.memory_space<vmem>>, vector<200x96xf32>,
    return
  }
  func.func @transform_0(%arg0: i32) -> (i32, i32) {
    %c0_i32 = arith.constant 0 : i32
    %c0_i32_0 = arith.constant 0 : i32
    return %arg0, %c0_i32 : i32, i32
  }
  func.func @transform_1(%arg0: i32) -> (i32, i32) {
    %c0_i32 = arith.constant 0 : i32
    %c0_i32_0 = arith.constant 0 : i32
    return %arg0, %c0_i32 : i32, i32
  }
  func.func @transform_2(%arg0: i32) -> (i32, i32) {
    %c0_i32 = arith.constant 0 : i32
    %c0_i32_0 = arith.constant 0 : i32
    %c0_i32_1 = arith.constant 0 : i32
    return %c0_i32, %c0_i32_0 : i32, i32
  }
  func.func @transform_3(%arg0: i32) -> (i32, i32) {
    %c0_i32 = arith.constant 0 : i32
    %c0_i32_0 = arith.constant 0 : i32
    %c0_i32_1 = arith.constant 0 : i32
    return %c0_i32, %c0_i32_0 : i32, i32
  }
  func.func @transform_4(%arg0: i32) -> (i32, i32) {
    %c0_i32 = arith.constant 0 : i32
    %c0_i32_0 = arith.constant 0 : i32
    %c0_i32_1 = arith.constant 0 : i32
    return %c0_i32, %c0_i32_0 : i32, i32
  }
  func.func @transform_5(%arg0: i32) -> (i32, i32) {
    %c0_i32 = arith.constant 0 : i32
    %c0_i32_0 = arith.constant 0 : i32
    %c0_i32_1 = arith.constant 0 : i32
    return %c0_i32, %c0_i32_0 : i32, i32
  }
  func.func @transform_6(%arg0: i32) -> (i32, i32) {
    %c0_i32 = arith.constant 0 : i32
    %c0_i32_0 = arith.constant 0 : i32
    %c0_i32_1 = arith.constant 0 : i32
    return %c0_i32, %c0_i32_0 : i32, i32
  }
  func.func @transform_7(%arg0: i32) -> (i32, i32) {
    %c0_i32 = arith.constant 0 : i32
    %c0_i32_0 = arith.constant 0 : i32
    return %arg0, %c0_i32 : i32, i32
  }
  func.func @transform_8(%arg0: i32) -> (i32, i32) {
    %c0_i32 = arith.constant 0 : i32
    %c0_i32_0 = arith.constant 0 : i32
    return %arg0, %c0_i32 : i32, i32
  }
}

</mosaic_0001>

<bundles_post_ra>
// kernel: tpu_custom_call.1
= control target key start
LH: loop header
LB: loop body
LE: loop exit
PB: predicated region body
PF: predicated region fallthrough
CT: control target
= control target key end

     0   :  { %v6133_v2 = vmov 0.0|0.0   ;;  %s3915_s9 = smov 96   ;;  %vm3916_vm0 = vmmov 0   ;;  %v6134_v3 = vmov 0.0   ;;  %s3918_s10 = smov 64   ;;  %vm57_vm1 = vcmask 261120   ;;  %s6124_s1 = inlined_call_operand.vmem [shape: f32[200,96], index: 1, kind: input, shape index: {}]   ;;  %s6125_s2 = inlined_call_operand.vmem [shape: f32[32,64], index: 2, kind: input, shape index: {}]   ;;  %s6126_s3 = inlined_call_operand.vmem [shape: f32[64,32], index: 3, kind: input, shape index: {}]   ;;  %s6127_s0 = inlined_call_operand.vmem [shape: f32[200,32], index: 0, kind: input, shape index: {}]   ;;  %s6128_s5 = inlined_call_operand.vmem [shape: f32[32,64], index: 5, kind: input, shape index: {}]   ;;  %s6129_s8 = inlined_call_operand.vmem [shape: f32[200,96], index: 8, kind: output, shape index: {1}]   ;;  %s6130_s4 = inlined_call_operand.vmem [shape: f32[1,32], index: 4, kind: input, shape index: {}]   ;;  %s6131_s6 = inlined_call_operand.vmem [shape: f32[1,64], index: 6, kind: input, shape index: {}]   ;;  %s6132_s7 = inlined_call_operand.vmem [shape: f32[200,32], index: 7, kind: output, shape index: {0}]  }
   0x1   :  { %v32_v0 = vld [vmem:[%s6124_s1] sm:$0xff]  ;;  %v33_v1 = vld [vmem:[%s6124_s1 + $0x8] sm:$0xff]  ;;  %3618 = vmatprep.subr.bf16.mxu0 %v6133_v2  ;;  %3654 = vmatprep.subr.bf16.mxu1 %v6133_v2  ;;  %v34_v5 = vld [vmem:[%s6124_s1 + $0x10] sm:$0xff] }
   0x2   :  { %348 = vrot.lane.b32.xlu0 %v32_v0, %s3915_s9  ;;  %350 = vrot.lane.b32.xlu1 %v33_v1, %s3915_s9  ;;  %v28_v4 = vld [vmem:[%s6125_s2] sm:$0xff]  ;;  %v29_v6 = vld [vmem:[%s6125_s2 + $0x8] sm:$0xff] }
   0x3   :  { %3203 = vmatprep.mubr.msk.f32.mxu0 %vm3916_vm0, %v6134_v3  ;;  %3242 = vmatprep.mubr.msk.f32.mxu1 %vm3916_vm0, %v6134_v3  ;;  %v3619_v7 = vpack.c.bf16 %v29_v6, %v28_v4  ;;  %v30_v8 = vld [vmem:[%s6125_s2 + $0x10] sm:$0xff]  ;;  %v31_v9 = vld [vmem:[%s6125_s2 + $0x18] sm:$0xff]  ;;  %v36_v12 = vld [vmem:[%s6124_s1 + $0x20] sm:$0xff] }
   0x4   :  { %v35_v10 = vld [vmem:[%s6124_s1 + $0x18] sm:$0xff]  ;;  %v3622_v11 = vpack.c.bf16 %v31_v9, %v30_v8  ;;  %v4015_v13 = vld [vmem:[%s6124_s1 + $0x68] sm:$0xff]  ;;  %v4032_v15 = vld [vmem:[%s6124_s1 + $0x70] sm:$0xff] }
   0x5   :  { %3620 = vmatpush3.bf16.msra.mxu0 %v3619_v7  ;;  %3656 = vmatpush3.bf16.msra.mxu1 %v3619_v7  ;;  %v37_v14 = vld [vmem:[%s6124_s1 + $0x28] sm:$0xff]  ;;  %v38_v16 = vld [vmem:[%s6124_s1 + $0x30] sm:$0xff]  ;;  %v4051_v17 = vld [vmem:[%s6124_s1 + $0x78] sm:$0xff] }
   0x6   :  { %688 = vrot.lane.b32.xlu0 %v32_v0, %s3918_s10  ;;  %690 = vrot.lane.b32.xlu1 %v33_v1, %s3918_s10  ;;  %v39_v18 = vld [vmem:[%s6124_s1 + $0x38] sm:$0xff]  ;;  %v4068_v19 = vld [vmem:[%s6124_s1 + $0x80] sm:$0xff] }
   0x7   :  { %3621 = vmatprep.subr.bf16.mxu0 %v6133_v2  ;;  %3655 = vmatprep.subr.bf16.mxu1 %v6133_v2  ;;  %v40_v20 = vld [vmem:[%s6124_s1 + $0x40] sm:$0xff]  ;;  %v49_v21 = vld [vmem:[%s6124_s1 + $0x88] sm:$0xff]  ;;  %v50_v23 = vld [vmem:[%s6124_s1 + $0x90] sm:$0xff] }
   0x8   :  { %v41_v22 = vld [vmem:[%s6124_s1 + $0x48] sm:$0xff]  ;;  %v42_v24 = vld [vmem:[%s6124_s1 + $0x50] sm:$0xff]  ;;  %v51_v25 = vld [vmem:[%s6124_s1 + $0x98] sm:$0xff] }
   0x9   :  { %3623 = vmatpush3.bf16.msra.mxu0 %v3622_v11  ;;  %3657 = vmatpush3.bf16.msra.mxu1 %v3622_v11  ;;  %v43_v26 = vld [vmem:[%s6124_s1 + $0x58] sm:$0xff]  ;;  %v52_v27 = vld [vmem:[%s6124_s1 + $0xa0] sm:$0xff]  ;;  %v53_v29 = vld [vmem:[%s6124_s1 + $0xa8] sm:$0xff] }
   0xa   :  { %352 = vrot.lane.b32.xlu0 %v34_v5, %s3915_s9  ;;  %692 = vrot.lane.b32.xlu1 %v34_v5, %s3918_s10  ;;  %v44_v28 = vld [vmem:[%s6124_s1 + $0x60] sm:$0xff]  ;;  %v54_v30 = vld [vmem:[%s6124_s1 + $0xb0] sm:$0xff] }
   0xb   :  { %3630 = vmatprep.subr.bf16.mxu0 %v6133_v2  ;;  %3624 = vmatprep.subr.bf16.mxu1 %v6133_v2  ;;  %v55_v31 = vld [vmem:[%s6124_s1 + $0xb8] sm:$0xff]  ;;  %v56_v32 = vld [vmem:[%s6124_s1 + $0xc0] sm:$0xff] }
   0xc   :  { %3204 = vmatmul.mubr.msk.f32.vlgmr.msra.gmra.mrb[0].mxu0 %vm57_vm1, %v32_v0  ;;  %3243 = vmatmul.mubr.msk.f32.vlgmr.msra.gmra.mrb[0].mxu1 %vm57_vm1, %v4015_v13 }
   0xd   :  { %3632 = vmatpush3.bf16.msra.mxu0 %v3619_v7  ;;  %3206 = vmatprep.mubr.msk.f32.mxu0 %vm3916_vm0, %v6134_v3 }
   0xe   :  { %354 = vrot.lane.b32.xlu0 %v35_v10, %s3915_s9  ;;  %694 = vrot.lane.b32.xlu1 %v35_v10, %s3918_s10 }
   0xf   :  { %3626 = vmatpush3.bf16.msra.mxu1 %v3619_v7  ;;  %3245 = vmatprep.mubr.msk.f32.mxu1 %vm3916_vm0, %v6134_v3 }
  0x10   :  { %3207 = vmatmul.mubr.msk.f32.gmra.mrb[2].mxu0 %vm57_vm1, %v33_v1  ;;  %3246 = vmatmul.mubr.msk.f32.gmra.mrb[2].mxu1 %vm57_vm1, %v4032_v15 }
  0x11   :  { %3209 = vmatprep.mubr.msk.f32.mxu0 %vm3916_vm0, %v6134_v3  ;;  %3248 = vmatprep.mubr.msk.f32.mxu1 %vm3916_vm0, %v6134_v3 }
  0x12   :  { %356 = vrot.lane.b32.xlu0 %v36_v12, %s3915_s9  ;;  %696 = vrot.lane.b32.xlu1 %v36_v12, %s3918_s10 }
  0x13   :  { %3627 = vmatprep.subr.bf16.mxu1 %v6133_v2  ;;  %3633 = vmatprep.subr.bf16.mxu0 %v6133_v2 }
  0x14   :  { %3210 = vmatmul.mubr.msk.f32.gmra.mrb[4].mxu0 %vm57_vm1, %v34_v5  ;;  %3249 = vmatmul.mubr.msk.f32.gmra.mrb[4].mxu1 %vm57_vm1, %v4051_v17 }
  0x15   :  { %3212 = vmatprep.mubr.msk.f32.mxu0 %vm3916_vm0, %v6134_v3  ;;  %3251 = vmatprep.mubr.msk.f32.mxu1 %vm3916_vm0, %v6134_v3 }
  0x16   :  { %358 = vrot.lane.b32.xlu0 %v37_v14, %s3915_s9  ;;  %698 = vrot.lane.b32.xlu1 %v37_v14, %s3918_s10 }
  0x17   :  { %3629 = vmatpush3.bf16.msra.mxu1 %v3622_v11  ;;  %3635 = vmatpush3.bf16.msra.mxu0 %v3622_v11 }
  0x18   :  { %3213 = vmatmul.mubr.msk.f32.gmra.mrb[6].mxu0 %vm57_vm1, %v35_v10  ;;  %3252 = vmatmul.mubr.msk.f32.gmra.mrb[6].mxu1 %vm57_vm1, %v4068_v19 }
  0x19   :  { %3215 = vmatprep.mubr.msk.f32.mxu0 %vm3916_vm0, %v6134_v3  ;;  %3254 = vmatprep.mubr.msk.f32.mxu1 %vm3916_vm0, %v6134_v3 }
  0x1a   :  { %360 = vrot.lane.b32.xlu0 %v38_v16, %s3915_s9  ;;  %700 = vrot.lane.b32.xlu1 %v38_v16, %s3918_s10 }
  0x1b   :  { %3636 = vmatprep.subr.bf16.mxu1 %v6133_v2  ;;  %3648 = vmatprep.subr.bf16.mxu0 %v6133_v2 }
  0x1c   :  { %3216 = vmatmul.mubr.msk.f32.gmra.mrb[8].mxu0 %vm57_vm1, %v36_v12  ;;  %3255 = vmatmul.mubr.msk.f32.gmra.mrb[8].mxu1 %vm57_vm1, %v49_v21 }
  0x1d   :  { %3218 = vmatprep.mubr.msk.f32.mxu0 %vm3916_vm0, %v6134_v3  ;;  %3257 = vmatprep.mubr.msk.f32.mxu1 %vm3916_vm0, %v6134_v3 }
  0x1e   :  { %362 = vrot.lane.b32.xlu0 %v39_v18, %s3915_s9  ;;  %702 = vrot.lane.b32.xlu1 %v39_v18, %s3918_s10 }
  0x20   :  { %3219 = vmatmul.mubr.msk.f32.gmra.mrb[10].mxu0 %vm57_vm1, %v37_v14  ;;  %3258 = vmatmul.mubr.msk.f32.gmra.mrb[10].mxu1 %vm57_vm1, %v50_v23 }
  0x21   :  { %3221 = vmatprep.mubr.msk.f32.mxu0 %vm3916_vm0, %v6134_v3  ;;  %3260 = vmatprep.mubr.msk.f32.mxu1 %vm3916_vm0, %v6134_v3 }
  0x22   :  { %364 = vrot.lane.b32.xlu0 %v40_v20, %s3915_s9  ;;  %704 = vrot.lane.b32.xlu1 %v40_v20, %s3918_s10 }
  0x24   :  { %3222 = vmatmul.mubr.msk.f32.gmra.mrb[12].mxu0 %vm57_vm1, %v38_v16  ;;  %3261 = vmatmul.mubr.msk.f32.gmra.mrb[12].mxu1 %vm57_vm1, %v51_v25 }
  0x25   :  { %3224 = vmatprep.mubr.msk.f32.mxu0 %vm3916_vm0, %v6134_v3  ;;  %3263 = vmatprep.mubr.msk.f32.mxu1 %vm3916_vm0, %v6134_v3 }
  0x26   :  { %366 = vrot.lane.b32.xlu0 %v41_v22, %s3915_s9  ;;  %706 = vrot.lane.b32.xlu1 %v41_v22, %s3918_s10 }
  0x28   :  { %3225 = vmatmul.mubr.msk.f32.gmra.mrb[14].mxu0 %vm57_vm1, %v39_v18  ;;  %3264 = vmatmul.mubr.msk.f32.gmra.mrb[14].mxu1 %vm57_vm1, %v52_v27 }
  0x29   :  { %3227 = vmatprep.mubr.msk.f32.mxu0 %vm3916_vm0, %v6134_v3  ;;  %3266 = vmatprep.mubr.msk.f32.mxu1 %vm3916_vm0, %v6134_v3 }
  0x2a   :  { %368 = vrot.lane.b32.xlu0 %v42_v24, %s3915_s9  ;;  %708 = vrot.lane.b32.xlu1 %v42_v24, %s3918_s10 }
  0x2c   :  { %3228 = vmatmul.mubr.msk.f32.gmra.mrb[16].mxu0 %vm57_vm1, %v40_v20  ;;  %3267 = vmatmul.mubr.msk.f32.gmra.mrb[16].mxu1 %vm57_vm1, %v53_v29 }
  0x2d   :  { %3230 = vmatprep.mubr.msk.f32.mxu0 %vm3916_vm0, %v6134_v3  ;;  %3269 = vmatprep.mubr.msk.f32.mxu1 %vm3916_vm0, %v6134_v3 }
  0x2e   :  { %370 = vrot.lane.b32.xlu0 %v43_v26, %s3915_s9  ;;  %710 = vrot.lane.b32.xlu1 %v43_v26, %s3918_s10 }
  0x30   :  { %3231 = vmatmul.mubr.msk.f32.gmra.mrb[18].mxu0 %vm57_vm1, %v41_v22  ;;  %3270 = vmatmul.mubr.msk.f32.gmra.mrb[18].mxu1 %vm57_vm1, %v54_v30 }
  0x31   :  { %3233 = vmatprep.mubr.msk.f32.mxu0 %vm3916_vm0, %v6134_v3  ;;  %3272 = vmatprep.mubr.msk.f32.mxu1 %vm3916_vm0, %v6134_v3 }
  0x32   :  { %372 = vrot.lane.b32.xlu0 %v44_v28, %s3915_s9  ;;  %712 = vrot.lane.b32.xlu1 %v44_v28, %s3918_s10 }
  0x34   :  { %3234 = vmatmul.mubr.msk.f32.gmra.mrb[20].mxu0 %vm57_vm1, %v42_v24  ;;  %3273 = vmatmul.mubr.msk.f32.gmra.mrb[20].mxu1 %vm57_vm1, %v55_v31 }
  0x35   :  { %3236 = vmatprep.mubr.msk.f32.mxu0 %vm3916_vm0, %v6134_v3  ;;  %3275 = vmatprep.mubr.msk.f32.mxu1 %vm3916_vm0, %v6134_v3 }
  0x36   :  { %374 = vrot.lane.b32.xlu0 %v4015_v13, %s3915_s9  ;;  %714 = vrot.lane.b32.xlu1 %v4015_v13, %s3918_s10 }
  0x38   :  { %3237 = vmatmul.mubr.msk.f32.gmra.mrb[22].mxu0 %vm57_vm1, %v43_v26  ;;  %3276 = vmatmul.mubr.msk.f32.gmra.mrb[22].mxu1 %vm57_vm1, %v56_v32 }
  0x39   :  { %3239 = vmatprep.mubr.msk.f32.mxu0 %vm3916_vm0, %v6134_v3  ;;  %3286 = vmatprep.mubr.msk.f32.mxu1 %vm3916_vm0, %v6134_v3 }
  0x3a   :  { %376 = vrot.lane.b32.xlu0 %v4032_v15, %s3915_s9  ;;  %716 = vrot.lane.b32.xlu1 %v4032_v15, %s3918_s10 }
  0x3c   :  { %3240 = vmatmul.mubr.msk.f32.gmra.mrb[24].mxu0 %vm57_vm1, %v44_v28 }
  0x3d   :  { %3369 = vmatprep.mubr.msk.f32.mxu0 %vm3916_vm0, %v6134_v3 }
  0x3e   :  { %378 = vrot.lane.b32.xlu0 %v4051_v17, %s3915_s9  ;;  %718 = vrot.lane.b32.xlu1 %v4051_v17, %s3918_s10 }
  0x42   :  { %380 = vrot.lane.b32.xlu0 %v4068_v19, %s3915_s9  ;;  %720 = vrot.lane.b32.xlu1 %v4068_v19, %s3918_s10 }
  0x46   :  { %382 = vrot.lane.b32.xlu0 %v49_v21, %s3915_s9  ;;  %722 = vrot.lane.b32.xlu1 %v49_v21, %s3918_s10 }
  0x4a   :  { %384 = vrot.lane.b32.xlu0 %v50_v23, %s3915_s9  ;;  %724 = vrot.lane.b32.xlu1 %v50_v23, %s3918_s10 }
  0x4e   :  { %386 = vrot.lane.b32.xlu0 %v51_v25, %s3915_s9  ;;  %726 = vrot.lane.b32.xlu1 %v51_v25, %s3918_s10 }
  0x52   :  { %388 = vrot.lane.b32.xlu0 %v52_v27, %s3915_s9  ;;  %728 = vrot.lane.b32.xlu1 %v52_v27, %s3918_s10 }
  0x56   :  { %390 = vrot.lane.b32.xlu0 %v53_v29, %s3915_s9  ;;  %730 = vrot.lane.b32.xlu1 %v53_v29, %s3918_s10 }
  0x5a   :  { %392 = vrot.lane.b32.xlu0 %v54_v30, %s3915_s9  ;;  %732 = vrot.lane.b32.xlu1 %v54_v30, %s3918_s10 }
  0x5e   :  { %394 = vrot.lane.b32.xlu0 %v55_v31, %s3915_s9  ;;  %734 = vrot.lane.b32.xlu1 %v55_v31, %s3918_s10 }
  0x62   :  { %396 = vrot.lane.b32.xlu0 %v56_v32, %s3915_s9  ;;  %736 = vrot.lane.b32.xlu1 %v56_v32, %s3918_s10 }
  0x74   :  { %v349_v33 = vpop.permute.xlu0 %348  ;;  %v351_v34 = vpop.permute.xlu1 %350 }
  0x75   :  { %3287 = vmatmul.mubr.msk.f32.vlgmr.msra.gmra.mrb[24].mxu1 %vm57_vm1, %v349_v33 }
  0x76   :  { %3289 = vmatprep.mubr.msk.f32.mxu1 %vm3916_vm0, %v6134_v3 }
  0x78   :  { %v689_v35 = vpop.permute.xlu0 %688  ;;  %v691_v36 = vpop.permute.xlu1 %690 }
  0x79   :  { %3290 = vmatmul.mubr.msk.f32.gmra.mrb[26].mxu1 %vm57_vm1, %v351_v34  ;;  %3370 = vmatmul.mubr.msk.f32.vlgmr.msra.gmra.mrb[26].mxu0 %vm57_vm1, %v689_v35 }
  0x7a   :  { %3292 = vmatprep.mubr.msk.f32.mxu1 %vm3916_vm0, %v6134_v3  ;;  %3372 = vmatprep.mubr.msk.f32.mxu0 %vm3916_vm0, %v6134_v3 }
  0x7c   :  { %v353_v37 = vpop.permute.xlu0 %352  ;;  %v693_v38 = vpop.permute.xlu1 %692 }
  0x7d   :  { %3293 = vmatmul.mubr.msk.f32.gmra.mrb[28].mxu1 %vm57_vm1, %v353_v37  ;;  %3373 = vmatmul.mubr.msk.f32.gmra.mrb[28].mxu0 %vm57_vm1, %v691_v36  ;;  %v1630_v37 = vld [vmem:[%s6126_s3] sm:$0xff] }
  0x7e   :  { %3295 = vmatprep.mubr.msk.f32.mxu1 %vm3916_vm0, %v6134_v3  ;;  %3375 = vmatprep.mubr.msk.f32.mxu0 %vm3916_vm0, %v6134_v3 }
  0x80   :  { %v355_v39 = vpop.permute.xlu0 %354  ;;  %v695_v40 = vpop.permute.xlu1 %694 }
  0x81   :  { %3296 = vmatmul.mubr.msk.f32.gmra.mrb[30].mxu1 %vm57_vm1, %v355_v39  ;;  %3376 = vmatmul.mubr.msk.f32.gmra.mrb[30].mxu0 %vm57_vm1, %v693_v38  ;;  %v1631_v38 = vld [vmem:[%s6126_s3 + $0x8] sm:$0xff] }
  0x82   :  { %3298 = vmatprep.mubr.msk.f32.mxu1 %vm3916_vm0, %v6134_v3  ;;  %3378 = vmatprep.mubr.msk.f32.mxu0 %vm3916_vm0, %v6134_v3  ;;  %v3637_v39 = vpack.c.bf16 %v1631_v38, %v1630_v37 }
  0x84   :  { %v357_v41 = vpop.permute.xlu0 %356  ;;  %v697_v42 = vpop.permute.xlu1 %696  ;;  %3638 = vmatpush3.bf16.msra.mxu1 %v3637_v39 }
  0x85   :  { %3299 = vmatmul.mubr.msk.f32.gmra.mrb[32].mxu1 %vm57_vm1, %v357_v41  ;;  %3379 = vmatmul.mubr.msk.f32.gmra.mrb[32].mxu0 %vm57_vm1, %v695_v40 }
  0x86   :  { %3301 = vmatprep.mubr.msk.f32.mxu1 %vm3916_vm0, %v6134_v3  ;;  %3381 = vmatprep.mubr.msk.f32.mxu0 %vm3916_vm0, %v6134_v3 }
  0x87   :  { %3639 = vmatprep.subr.bf16.mxu1 %v6133_v2 }
  0x88   :  { %v359_v43 = vpop.permute.xlu0 %358  ;;  %v699_v44 = vpop.permute.xlu1 %698 }
  0x89   :  { %3302 = vmatmul.mubr.msk.f32.gmra.mrb[34].mxu1 %vm57_vm1, %v359_v43  ;;  %3382 = vmatmul.mubr.msk.f32.gmra.mrb[34].mxu0 %vm57_vm1, %v697_v42 }
  0x8a   :  { %3304 = vmatprep.mubr.msk.f32.mxu1 %vm3916_vm0, %v6134_v3  ;;  %3384 = vmatprep.mubr.msk.f32.mxu0 %vm3916_vm0, %v6134_v3 }
  0x8c   :  { %v361_v45 = vpop.permute.xlu0 %360  ;;  %v701_v46 = vpop.permute.xlu1 %700 }
  0x8d   :  { %3305 = vmatmul.mubr.msk.f32.gmra.mrb[36].mxu1 %vm57_vm1, %v361_v45  ;;  %3385 = vmatmul.mubr.msk.f32.gmra.mrb[36].mxu0 %vm57_vm1, %v699_v44 }
  0x8e   :  { %3307 = vmatprep.mubr.msk.f32.mxu1 %vm3916_vm0, %v6134_v3  ;;  %3387 = vmatprep.mubr.msk.f32.mxu0 %vm3916_vm0, %v6134_v3 }
  0x90   :  { %v363_v47 = vpop.permute.xlu0 %362  ;;  %v703_v48 = vpop.permute.xlu1 %702 }
  0x91   :  { %3308 = vmatmul.mubr.msk.f32.gmra.mrb[38].mxu1 %vm57_vm1, %v363_v47  ;;  %3388 = vmatmul.mubr.msk.f32.gmra.mrb[38].mxu0 %vm57_vm1, %v701_v46 }
  0x92   :  { %3310 = vmatprep.mubr.msk.f32.mxu1 %vm3916_vm0, %v6134_v3  ;;  %3390 = vmatprep.mubr.msk.f32.mxu0 %vm3916_vm0, %v6134_v3 }
  0x94   :  { %v365_v49 = vpop.permute.xlu0 %364  ;;  %v705_v50 = vpop.permute.xlu1 %704 }
  0x95   :  { %3311 = vmatmul.mubr.msk.f32.gmra.mrb[40].mxu1 %vm57_vm1, %v365_v49  ;;  %3391 = vmatmul.mubr.msk.f32.gmra.mrb[40].mxu0 %vm57_vm1, %v703_v48 }
  0x96   :  { %3313 = vmatprep.mubr.msk.f32.mxu1 %vm3916_vm0, %v6134_v3  ;;  %3393 = vmatprep.mubr.msk.f32.mxu0 %vm3916_vm0, %v6134_v3 }
  0x98   :  { %v367_v51 = vpop.permute.xlu0 %366  ;;  %v707_v52 = vpop.permute.xlu1 %706 }
  0x99   :  { %3314 = vmatmul.mubr.msk.f32.gmra.mrb[42].mxu1 %vm57_vm1, %v367_v51  ;;  %3394 = vmatmul.mubr.msk.f32.gmra.mrb[42].mxu0 %vm57_vm1, %v705_v50 }
  0x9a   :  { %3316 = vmatprep.mubr.msk.f32.mxu1 %vm3916_vm0, %v6134_v3  ;;  %3396 = vmatprep.mubr.msk.f32.mxu0 %vm3916_vm0, %v6134_v3 }
  0x9c   :  { %v369_v53 = vpop.permute.xlu0 %368  ;;  %v709_v54 = vpop.permute.xlu1 %708 }
  0x9d   :  { %3317 = vmatmul.mubr.msk.f32.gmra.mrb[44].mxu1 %vm57_vm1, %v369_v53  ;;  %3397 = vmatmul.mubr.msk.f32.gmra.mrb[44].mxu0 %vm57_vm1, %v707_v52 }
  0x9e   :  { %3319 = vmatprep.mubr.msk.f32.mxu1 %vm3916_vm0, %v6134_v3  ;;  %3399 = vmatprep.mubr.msk.f32.mxu0 %vm3916_vm0, %v6134_v3 }
  0xa0   :  { %v371_v55 = vpop.permute.xlu0 %370  ;;  %v711_v56 = vpop.permute.xlu1 %710 }
  0xa1   :  { %3320 = vmatmul.mubr.msk.f32.gmra.mrb[46].mxu1 %vm57_vm1, %v371_v55  ;;  %3400 = vmatmul.mubr.msk.f32.gmra.mrb[46].mxu0 %vm57_vm1, %v709_v54 }
  0xa2   :  { %3322 = vmatprep.mubr.msk.f32.mxu1 %vm3916_vm0, %v6134_v3  ;;  %3402 = vmatprep.mubr.msk.f32.mxu0 %vm3916_vm0, %v6134_v3 }
  0xa4   :  { %v373_v57 = vpop.permute.xlu0 %372  ;;  %v713_v58 = vpop.permute.xlu1 %712 }
  0xa5   :  { %3323 = vmatmul.mubr.msk.f32.gmra.mrb[48].mxu1 %vm57_vm1, %v373_v57  ;;  %3403 = vmatmul.mubr.msk.f32.gmra.mrb[48].mxu0 %vm57_vm1, %v711_v56 }
  0xa6   :  { %3325 = vmatprep.mubr.msk.f32.mxu1 %vm3916_vm0, %v6134_v3  ;;  %3405 = vmatprep.mubr.msk.f32.mxu0 %vm3916_vm0, %v6134_v3 }
  0xa8   :  { %v375_v59 = vpop.permute.xlu0 %374  ;;  %v715_v60 = vpop.permute.xlu1 %714 }
  0xa9   :  { %3326 = vmatmul.mubr.msk.f32.gmra.mrb[50].mxu1 %vm57_vm1, %v375_v59  ;;  %3406 = vmatmul.mubr.msk.f32.gmra.mrb[50].mxu0 %vm57_vm1, %v713_v58 }
  0xaa   :  { %3328 = vmatprep.mubr.msk.f32.mxu1 %vm3916_vm0, %v6134_v3  ;;  %3408 = vmatprep.mubr.msk.f32.mxu0 %vm3916_vm0, %v6134_v3 }
  0xac   :  { %v377_v61 = vpop.permute.xlu0 %376  ;;  %v717_v62 = vpop.permute.xlu1 %716 }
  0xad   :  { %3329 = vmatmul.mubr.msk.f32.gmra.mrb[52].mxu1 %vm57_vm1, %v377_v61  ;;  %3409 = vmatmul.mubr.msk.f32.gmra.mrb[52].mxu0 %vm57_vm1, %v715_v60 }
  0xae   :  { %3331 = vmatprep.mubr.msk.f32.mxu1 %vm3916_vm0, %v6134_v3  ;;  %3411 = vmatprep.mubr.msk.f32.mxu0 %vm3916_vm0, %v6134_v3 }
  0xb0   :  { %v379_v63 = vpop.permute.xlu0 %378  ;;  %v719_v0 = vpop.permute.xlu1 %718 }
  0xb1   :  { %3332 = vmatmul.mubr.msk.f32.gmra.mrb[54].mxu1 %vm57_vm1, %v379_v63  ;;  %3412 = vmatmul.mubr.msk.f32.gmra.mrb[54].mxu0 %vm57_vm1, %v717_v62 }
  0xb2   :  { %3334 = vmatprep.mubr.msk.f32.mxu1 %vm3916_vm0, %v6134_v3  ;;  %3414 = vmatprep.mubr.msk.f32.mxu0 %vm3916_vm0, %v6134_v3 }
  0xb4   :  { %v381_v1 = vpop.permute.xlu0 %380  ;;  %v721_v4 = vpop.permute.xlu1 %720 }
  0xb5   :  { %3335 = vmatmul.mubr.msk.f32.gmra.mrb[56].mxu1 %vm57_vm1, %v381_v1  ;;  %3415 = vmatmul.mubr.msk.f32.gmra.mrb[56].mxu0 %vm57_vm1, %v719_v0  ;;  %v1632_v0 = vld [vmem:[%s6126_s3 + $0x10] sm:$0xff]  ;;  %v1633_v1 = vld [vmem:[%s6126_s3 + $0x18] sm:$0xff] }
  0xb6   :  { %3337 = vmatprep.mubr.msk.f32.mxu1 %vm3916_vm0, %v6134_v3  ;;  %3417 = vmatprep.mubr.msk.f32.mxu0 %vm3916_vm0, %v6134_v3 }
  0xb8   :  { %v383_v5 = vpop.permute.xlu0 %382  ;;  %v723_v6 = vpop.permute.xlu1 %722 }
  0xb9   :  { %3338 = vmatmul.mubr.msk.f32.gmra.mrb[58].mxu1 %vm57_vm1, %v383_v5  ;;  %3418 = vmatmul.mubr.msk.f32.gmra.mrb[58].mxu0 %vm57_vm1, %v721_v4  ;;  %v3640_v4 = vpack.c.bf16 %v1633_v1, %v1632_v0 }
  0xba   :  { %3340 = vmatprep.mubr.msk.f32.mxu1 %vm3916_vm0, %v6134_v3  ;;  %3420 = vmatprep.mubr.msk.f32.mxu0 %vm3916_vm0, %v6134_v3 }
  0xbb   :  { %3641 = vmatpush3.bf16.msra.mxu1 %v3640_v4 }
  0xbc   :  { %v385_v7 = vpop.permute.xlu0 %384  ;;  %v725_v8 = vpop.permute.xlu1 %724  ;;  %3642 = vmatprep.subr.bf16.mxu1 %v6133_v2 }
  0xbd   :  { %3341 = vmatmul.mubr.msk.f32.gmra.mrb[60].mxu1 %vm57_vm1, %v385_v7  ;;  %3421 = vmatmul.mubr.msk.f32.gmra.mrb[60].mxu0 %vm57_vm1, %v723_v6 }
  0xbe   :  { %3343 = vmatprep.mubr.msk.f32.mxu1 %vm3916_vm0, %v6134_v3  ;;  %3423 = vmatprep.mubr.msk.f32.mxu0 %vm3916_vm0, %v6134_v3 }
  0xc0   :  { %v387_v9 = vpop.permute.xlu0 %386  ;;  %v727_v10 = vpop.permute.xlu1 %726 }
  0xc1   :  { %3344 = vmatmul.mubr.msk.f32.gmra.mrb[62].mxu1 %vm57_vm1, %v387_v9  ;;  %3424 = vmatmul.mubr.msk.f32.gmra.mrb[62].mxu0 %vm57_vm1, %v725_v8 }
  0xc2   :  { %3346 = vmatprep.mubr.msk.f32.mxu1 %vm3916_vm0, %v6134_v3  ;;  %3426 = vmatprep.mubr.msk.f32.mxu0 %vm3916_vm0, %v6134_v3 }
  0xc4   :  { %v389_v11 = vpop.permute.xlu0 %388  ;;  %v729_v12 = vpop.permute.xlu1 %728 }
  0xc5   :  { %3347 = vmatmul.mubr.msk.f32.gmra.mrb[64].mxu1 %vm57_vm1, %v389_v11  ;;  %3427 = vmatmul.mubr.msk.f32.gmra.mrb[64].mxu0 %vm57_vm1, %v727_v10 }
  0xc6   :  { %3349 = vmatprep.mubr.msk.f32.mxu1 %vm3916_vm0, %v6134_v3  ;;  %3429 = vmatprep.mubr.msk.f32.mxu0 %vm3916_vm0, %v6134_v3 }
  0xc8   :  { %v391_v13 = vpop.permute.xlu0 %390  ;;  %v731_v14 = vpop.permute.xlu1 %730 }
  0xc9   :  { %3350 = vmatmul.mubr.msk.f32.gmra.mrb[66].mxu1 %vm57_vm1, %v391_v13  ;;  %3430 = vmatmul.mubr.msk.f32.gmra.mrb[66].mxu0 %vm57_vm1, %v729_v12 }
  0xca   :  { %3352 = vmatprep.mubr.msk.f32.mxu1 %vm3916_vm0, %v6134_v3  ;;  %3432 = vmatprep.mubr.msk.f32.mxu0 %vm3916_vm0, %v6134_v3 }
  0xcc   :  { %v393_v15 = vpop.permute.xlu0 %392  ;;  %v733_v16 = vpop.permute.xlu1 %732 }
  0xcd   :  { %3353 = vmatmul.mubr.msk.f32.gmra.mrb[68].mxu1 %vm57_vm1, %v393_v15  ;;  %3433 = vmatmul.mubr.msk.f32.gmra.mrb[68].mxu0 %vm57_vm1, %v731_v14  ;;  %v1634_v15 = vld [vmem:[%s6126_s3 + $0x20] sm:$0xff] }
  0xce   :  { %3355 = vmatprep.mubr.msk.f32.mxu1 %vm3916_vm0, %v6134_v3  ;;  %3435 = vmatprep.mubr.msk.f32.mxu0 %vm3916_vm0, %v6134_v3 }
  0xd0   :  { %v395_v17 = vpop.permute.xlu0 %394  ;;  %v735_v18 = vpop.permute.xlu1 %734 }
  0xd1   :  { %3356 = vmatmul.mubr.msk.f32.gmra.mrb[70].mxu1 %vm57_vm1, %v395_v17  ;;  %3436 = vmatmul.mubr.msk.f32.gmra.mrb[70].mxu0 %vm57_vm1, %v733_v16  ;;  %v1635_v16 = vld [vmem:[%s6126_s3 + $0x28] sm:$0xff] }
  0xd2   :  { %3358 = vmatprep.mubr.msk.f32.mxu1 %vm3916_vm0, %v6134_v3  ;;  %3438 = vmatprep.mubr.msk.f32.mxu0 %vm3916_vm0, %v6134_v3  ;;  %v3643_v17 = vpack.c.bf16 %v1635_v16, %v1634_v15 }
  0xd4   :  { %v397_v19 = vpop.permute.xlu0 %396  ;;  %v737_v20 = vpop.permute.xlu1 %736  ;;  %3644 = vmatpush3.bf16.msra.mxu1 %v3643_v17 }
  0xd5   :  { %3359 = vmatmul.mubr.msk.f32.gmra.mrb[72].mxu1 %vm57_vm1, %v397_v19  ;;  %3439 = vmatmul.mubr.msk.f32.gmra.mrb[72].mxu0 %vm57_vm1, %v735_v18  ;;  %v1636_v18 = vld [vmem:[%s6126_s3 + $0x30] sm:$0xff]  ;;  %v1637_v19 = vld [vmem:[%s6126_s3 + $0x38] sm:$0xff]  ;;  %s3919_s3 = smov 32  }
  0xd6   :  { %3441 = vmatprep.mubr.msk.f32.mxu0 %vm3916_vm0, %v6134_v3  ;;  %3460 = vmatprep.mubr.msk.f32.mxu1 %vm3916_vm0, %v6134_v3 }
  0xd7   :  { %3645 = vmatprep.subr.bf16.mxu1 %v6133_v2 }
  0xd9   :  { %3442 = vmatmul.mubr.msk.f32.gmra.mrb[74].mxu0 %vm57_vm1, %v737_v20  ;;  %v3646_v20 = vpack.c.bf16 %v1637_v19, %v1636_v18 }
  0xda   :  { %3543 = vmatprep.mubr.msk.f32.mxu0 %vm3916_vm0, %v6134_v3 }
  0xdb   :  { %3647 = vmatpush3.bf16.msra.mxu1 %v3646_v20 }
  0xdf   :  { %v4361_v21 = vpop.f32.mrb[0].mxu0  ;;  %v4363_v22 = vpop.f32.mrb[0].mxu1 }
  0xe0   :  { %v3205_v23 = vpop.f32.mrb[1].mxu0  ;;  %v3244_v24 = vpop.f32.mrb[1].mxu1 }
  0xe1   :  { %v323_v24 = vmul.f32 %v4361_v21, %v4361_v21 }
  0xe3   :  { %v4365_v25 = vpop.f32.mrb[2].mxu0  ;;  %v4367_v26 = vpop.f32.mrb[2].mxu1 }
  0xe4   :  { %v3208_v27 = vpop.f32.mrb[3].mxu0  ;;  %v3247_v28 = vpop.f32.mrb[3].mxu1 }
  0xe7   :  { %v4369_v29 = vpop.f32.mrb[4].mxu0  ;;  %v4371_v30 = vpop.f32.mrb[4].mxu1 }
  0xe8   :  { %v3211_v31 = vpop.f32.mrb[5].mxu0  ;;  %v3250_v32 = vpop.f32.mrb[5].mxu1 }
  0xeb   :  { %v4373_v33 = vpop.f32.mrb[6].mxu0  ;;  %v4375_v34 = vpop.f32.mrb[6].mxu1 }
  0xec   :  { %v3214_v35 = vpop.f32.mrb[7].mxu0  ;;  %v3253_v36 = vpop.f32.mrb[7].mxu1  ;;  %v326_v4 = vmul.f32 %v4373_v33, %v4373_v33 }
  0xed   :  { %v324_v36 = vmul.f32 %v4365_v25, %v4365_v25 }
  0xef   :  { %v4383_v40 = vpop.f32.mrb[8].mxu0  ;;  %v4385_v41 = vpop.f32.mrb[8].mxu1 }
  0xf0   :  { %v3217_v42 = vpop.f32.mrb[9].mxu0  ;;  %v3256_v43 = vpop.f32.mrb[9].mxu1  ;;  %v327_v18 = vmul.f32 %v4383_v40, %v4383_v40 }
  0xf3   :  { %v4388_v44 = vpop.f32.mrb[10].mxu0  ;;  %v4390_v45 = vpop.f32.mrb[10].mxu1 }
  0xf4   :  { %v3220_v46 = vpop.f32.mrb[11].mxu0  ;;  %v3259_v47 = vpop.f32.mrb[11].mxu1 }
  0xf7   :  { %v4392_v48 = vpop.f32.mrb[12].mxu0  ;;  %v4394_v49 = vpop.f32.mrb[12].mxu1 }
  0xf8   :  { %v3223_v50 = vpop.f32.mrb[13].mxu0  ;;  %v3262_v51 = vpop.f32.mrb[13].mxu1 }
  0xf9   :  { %v325_v51 = vmul.f32 %v4369_v29, %v4369_v29 }
  0xfb   :  { %v4396_v52 = vpop.f32.mrb[14].mxu0  ;;  %v4398_v53 = vpop.f32.mrb[14].mxu1 }
  0xfc   :  { %v3226_v54 = vpop.f32.mrb[15].mxu0  ;;  %v3265_v55 = vpop.f32.mrb[15].mxu1 }
  0xff   :  { %v4400_v56 = vpop.f32.mrb[16].mxu0  ;;  %v4402_v57 = vpop.f32.mrb[16].mxu1 }
 0x100   :  { %v3229_v58 = vpop.f32.mrb[17].mxu0  ;;  %v3268_v59 = vpop.f32.mrb[17].mxu1 }
 0x103   :  { %v4404_v60 = vpop.f32.mrb[18].mxu0  ;;  %v4406_v61 = vpop.f32.mrb[18].mxu1 }
 0x104   :  { %v3232_v62 = vpop.f32.mrb[19].mxu0  ;;  %v3271_v63 = vpop.f32.mrb[19].mxu1 }
 0x107   :  { %v4414_v5 = vpop.f32.mrb[20].mxu0  ;;  %v4416_v6 = vpop.f32.mrb[20].mxu1 }
 0x108   :  { %v3235_v7 = vpop.f32.mrb[21].mxu0  ;;  %v3274_v8 = vpop.f32.mrb[21].mxu1 }
 0x10b   :  { %v4419_v9 = vpop.f32.mrb[22].mxu0  ;;  %v4421_v10 = vpop.f32.mrb[22].mxu1 }
 0x10c   :  { %v3238_v11 = vpop.f32.mrb[23].mxu0  ;;  %v3277_v12 = vpop.f32.mrb[23].mxu1  ;;  %v334_v3 = vmul.f32 %v4419_v9, %v4419_v9 }
 0x10f   :  { %v4423_v13 = vpop.f32.mrb[24].mxu0 }
 0x110   :  { %v3241_v14 = vpop.f32.mrb[25].mxu0 }
 0x148   :  { %v4438_v23 = vpop.f32.mrb[24].mxu1 }
 0x149   :  { %6166 = vst [vmem:[#allocation2_spill] sm:$0xff] %v4438_v23  ;;  %v638_v27 = vmul.f32 %v4438_v23, %v4438_v23  ;;  %v3288_v28 = vpop.f32.mrb[25].mxu1 }
 0x14b   :  { %v663_v31 = vadd.f32 %v638_v27, %v323_v24 }
 0x14c   :  { %v4444_v32 = vpop.f32.mrb[26].mxu1  ;;  %v4446_v35 = vpop.f32.mrb[26].mxu0 }
 0x14d   :  { %6167 = vst [vmem:[#allocation3_spill] sm:$0xff] %v4444_v32  ;;  %v639_v37 = vmul.f32 %v4444_v32, %v4444_v32  ;;  %v978_v38 = vmul.f32 %v4446_v35, %v4446_v35  ;;  %v3291_v39 = vpop.f32.mrb[27].mxu1  ;;  %v3371_v42 = vpop.f32.mrb[27].mxu0 }
 0x14f   :  { %v664_v43 = vadd.f32 %v639_v37, %v324_v36  ;;  %v1003_v46 = vadd.f32 %v978_v38, %v663_v31  ;;  %v328_v37 = vmul.f32 %v4388_v44, %v4388_v44 }
 0x150   :  { %v4454_v47 = vpop.f32.mrb[28].mxu1  ;;  %v4456_v50 = vpop.f32.mrb[28].mxu0 }
 0x151   :  { %6168 = vst [vmem:[#allocation4_spill] sm:$0xff] %v4454_v47  ;;  %v640_v54 = vmul.f32 %v4454_v47, %v4454_v47  ;;  %v979_v55 = vmul.f32 %v4456_v50, %v4456_v50  ;;  %v3374_v58 = vpop.f32.mrb[29].mxu0  ;;  %v3294_v59 = vpop.f32.mrb[29].mxu1  ;;  %3664 = vrsqrt.f32 %v1003_v46  ;;  %vm1030_vm2 = vcmp.eq.f32.partialorder %v1003_v46, inf }
 0x152   :  { %v1033_v58 = vand.u32 2147483648, %v1003_v46  ;;  %vm1032_vm3 = vcmp.eq.f32.partialorder %v1003_v46, 0.0 }
 0x153   :  { %v665_v62 = vadd.f32 %v640_v54, %v325_v51  ;;  %v1004_v63 = vadd.f32 %v979_v55, %v664_v43 }
 0x154   :  { %v4464_v0 = vpop.f32.mrb[30].mxu1  ;;  %v4466_v1 = vpop.f32.mrb[30].mxu0 }
 0x155   :  { %6169 = vst [vmem:[#allocation5_spill] sm:$0xff] %v4464_v0  ;;  %v641_v7 = vmul.f32 %v4464_v0, %v4464_v0  ;;  %v980_v8 = vmul.f32 %v4466_v1, %v4466_v1  ;;  %v3377_v11 = vpop.f32.mrb[31].mxu0  ;;  %v3297_v12 = vpop.f32.mrb[31].mxu1  ;;  %3666 = vrsqrt.f32 %v1004_v63  ;;  %vm1037_vm4 = vcmp.eq.f32.partialorder %v1004_v63, inf }
 0x156   :  { %v329_v11 = vmul.f32 %v4392_v48, %v4392_v48  ;;  %vm1039_vm5 = vcmp.eq.f32.partialorder %v1004_v63, 0.0 }
 0x157   :  { %v666_v14 = vadd.f32 %v641_v7, %v326_v4  ;;  %v4474_v15 = vadd.f32 %v980_v8, %v665_v62 }
 0x158   :  { %v4476_v16 = vpop.f32.mrb[32].mxu1  ;;  %v4478_v17 = vpop.f32.mrb[32].mxu0 }
 0x159   :  { %6170 = vst [vmem:[#allocation6_spill] sm:$0xff] %v4476_v16  ;;  %v642_v19 = vmul.f32 %v4476_v16, %v4476_v16  ;;  %v981_v20 = vmul.f32 %v4478_v17, %v4478_v17  ;;  %v3380_v24 = vpop.f32.mrb[33].mxu0  ;;  %v3300_v27 = vpop.f32.mrb[33].mxu1  ;;  %3668 = vrsqrt.f32 %v4474_v15  ;;  %vm1044_vm6 = vcmp.eq.f32.partialorder %v4474_v15, inf }
 0x15a   :  { %v1040_v27 = vand.u32 2147483648, %v1004_v63  ;;  %vm1046_vm7 = vcmp.eq.f32.partialorder %v4474_v15, 0.0 }
 0x15b   :  { %v3665_v28 = vpop.eup %3664  ;;  %v667_v31 = vadd.f32 %v642_v19, %v327_v18  ;;  %v4487_v36 = vadd.f32 %v981_v20, %v666_v14 }
 0x15c   :  { %v4491_v38 = vpop.f32.mrb[34].mxu1  ;;  %v4493_v39 = vpop.f32.mrb[34].mxu0  ;;  %v1029_v42 = vmul.f32 %v3665_v28, %v1003_v46 }
 0x15d   :  { %6171 = vst [vmem:[#allocation7_spill] sm:$0xff] %v4491_v38  ;;  %v643_v43 = vmul.f32 %v4491_v38, %v4491_v38  ;;  %v982_v51 = vmul.f32 %v4493_v39, %v4493_v39  ;;  %v3383_v54 = vpop.f32.mrb[35].mxu0  ;;  %v3303_v55 = vpop.f32.mrb[35].mxu1  ;;  %3670 = vrsqrt.f32 %v4487_v36  ;;  %vm1051_vm8 = vcmp.eq.f32.partialorder %v4487_v36, inf }
 0x15e   :  { %v1031_v59 = vsel %vm1030_vm2, %v1003_v46, %v1029_v42  ;;  %vm1053_vm9 = vcmp.eq.f32.partialorder %v4487_v36, 0.0 }
 0x15f   :  { %v3667_v62 = vpop.eup %3666  ;;  %v668_v4 = vadd.f32 %v643_v43, %v328_v37  ;;  %v4500_v7 = vadd.f32 %v982_v51, %v667_v31  ;;  %v1034_v8 = vsel %vm1032_vm3, %v1033_v58, %v1031_v59  ;;  %v330_v51 = vmul.f32 %v4396_v52, %v4396_v52 }
 0x160   :  { %v4504_v12 = vpop.f32.mrb[36].mxu1  ;;  %1530 = vrot.lane.b32.xlu0 %v1034_v8, %s3919_s3  ;;  %v4507_v14 = vpop.f32.mrb[36].mxu0  ;;  %v1036_v18 = vmul.f32 %v3667_v62, %v1004_v63  ;;  %v1047_v8 = vand.u32 2147483648, %v4474_v15 }
 0x161   :  { %6172 = vst [vmem:[#allocation8_spill] sm:$0xff] %v4504_v12  ;;  %v644_v46 = vmul.f32 %v4504_v12, %v4504_v12  ;;  %v983_v19 = vmul.f32 %v4507_v14, %v4507_v14  ;;  %v3386_v20 = vpop.f32.mrb[37].mxu0  ;;  %v3306_v24 = vpop.f32.mrb[37].mxu1  ;;  %3672 = vrsqrt.f32 %v4500_v7  ;;  %vm1058_vm10 = vcmp.eq.f32.partialorder %v4500_v7, inf }
 0x162   :  { %v1038_v28 = vsel %vm1037_vm4, %v1004_v63, %v1036_v18  ;;  %v331_v24 = vmul.f32 %v4400_v56, %v4400_v56  ;;  %vm1060_vm11 = vcmp.eq.f32.partialorder %v4500_v7, 0.0 }
 0x163   :  { %v3669_v31 = vpop.eup %3668  ;;  %v669_v37 = vadd.f32 %v644_v46, %v329_v11  ;;  %v4514_v42 = vadd.f32 %v983_v19, %v668_v4  ;;  %v1041_v43 = vsel %vm1039_vm5, %v1040_v27, %v1038_v28 }
 0x164   :  { %v4518_v54 = vpop.f32.mrb[38].mxu1  ;;  %1532 = vrot.lane.b32.xlu1 %v1041_v43, %s3919_s3  ;;  %v4521_v55 = vpop.f32.mrb[38].mxu0  ;;  %v1043_v58 = vmul.f32 %v3669_v31, %v4474_v15 }
 0x165   :  { %6173 = vst [vmem:[#allocation9_spill] sm:$0xff] %v4518_v54  ;;  %v645_v63 = vmul.f32 %v4518_v54, %v4518_v54  ;;  %v984_v59 = vmul.f32 %v4521_v55, %v4521_v55  ;;  %v3389_v62 = vpop.f32.mrb[39].mxu0  ;;  %v3309_v4 = vpop.f32.mrb[39].mxu1  ;;  %3674 = vrsqrt.f32 %v4514_v42  ;;  %vm1065_vm12 = vcmp.eq.f32.partialorder %v4514_v42, inf }
 0x166   :  { %v1045_v11 = vsel %vm1044_vm6, %v4474_v15, %v1043_v58  ;;  %v1054_v58 = vand.u32 2147483648, %v4487_v36  ;;  %vm1067_vm13 = vcmp.eq.f32.partialorder %v4514_v42, 0.0 }
 0x167   :  { %v3671_v18 = vpop.eup %3670  ;;  %v670_v46 = vadd.f32 %v645_v63, %v330_v51  ;;  %v4533_v19 = vadd.f32 %v984_v59, %v669_v37  ;;  %v1048_v20 = vsel %vm1046_vm7, %v1047_v8, %v1045_v11  ;;  %v332_v11 = vmul.f32 %v4404_v60, %v4404_v60 }
 0x168   :  { %v4537_v27 = vpop.f32.mrb[40].mxu1  ;;  %1534 = vrot.lane.b32.xlu0 %v1048_v20, %s3919_s3  ;;  %v4540_v28 = vpop.f32.mrb[40].mxu0  ;;  %v1050_v31 = vmul.f32 %v3671_v18, %v4487_v36 }
 0x169   :  { %6174 = vst [vmem:[#allocation10_spill] sm:$0xff] %v4537_v27  ;;  %v646_v15 = vmul.f32 %v4537_v27, %v4537_v27  ;;  %v985_v37 = vmul.f32 %v4540_v28, %v4540_v28  ;;  %v3392_v43 = vpop.f32.mrb[41].mxu0  ;;  %v3312_v51 = vpop.f32.mrb[41].mxu1  ;;  %3676 = vrsqrt.f32 %v4533_v19  ;;  %vm1072_vm14 = vcmp.eq.f32.partialorder %v4533_v19, inf }
 0x16a   :  { %v1052_v63 = vsel %vm1051_vm8, %v4487_v36, %v1050_v31  ;;  %vm1074_vm15 = vcmp.eq.f32.partialorder %v4533_v19, 0.0 }
 0x16b   :  { %v3673_v59 = vpop.eup %3672  ;;  %v671_v62 = vadd.f32 %v646_v15, %v331_v24  ;;  %v4552_v4 = vadd.f32 %v985_v37, %v670_v46  ;;  %v1055_v8 = vsel %vm1053_vm9, %v1054_v58, %v1052_v63  ;;  %v1061_v15 = vand.u32 2147483648, %v4500_v7 }
 0x16c   :  { %v4556_v18 = vpop.f32.mrb[42].mxu1  ;;  %1536 = vrot.lane.b32.xlu1 %v1055_v8, %s3919_s3  ;;  %v4559_v20 = vpop.f32.mrb[42].mxu0  ;;  %v1057_v43 = vmul.f32 %v3673_v59, %v4500_v7  ;;  %v333_v8 = vmul.f32 %v4414_v5, %v4414_v5 }
 0x16d   :  { %6175 = vst [vmem:[#allocation11_spill] sm:$0xff] %v4556_v18  ;;  %v647_v36 = vmul.f32 %v4556_v18, %v4556_v18  ;;  %v986_v46 = vmul.f32 %v4559_v20, %v4559_v20  ;;  %v3395_v24 = vpop.f32.mrb[43].mxu0  ;;  %v3315_v31 = vpop.f32.mrb[43].mxu1  ;;  %3678 = vrsqrt.f32 %v4552_v4  ;;  %vm1079_vm2 = vcmp.eq.f32.partialorder %v4552_v4, inf }
 0x16e   :  { %v1059_v37 = vsel %vm1058_vm10, %v4500_v7, %v1057_v43  ;;  %vm1081_vm3 = vcmp.eq.f32.partialorder %v4552_v4, 0.0 }
 0x16f   :  { %v3675_v51 = vpop.eup %3674  ;;  %v672_v58 = vadd.f32 %v647_v36, %v332_v11  ;;  %v4571_v63 = vadd.f32 %v986_v46, %v671_v62  ;;  %v1062_v59 = vsel %vm1060_vm11, %v1061_v15, %v1059_v37  ;;  %v1068_v36 = vand.u32 2147483648, %v4514_v42 }
 0x170   :  { %v4575_v2 = vpop.f32.mrb[44].mxu1  ;;  %1538 = vrot.lane.b32.xlu0 %v1062_v59, %s3919_s3  ;;  %v4578_v24 = vpop.f32.mrb[44].mxu0  ;;  %v1064_v31 = vmul.f32 %v3675_v51, %v4514_v42 }
 0x171   :  { %6176 = vst [vmem:[#allocation12_spill] sm:$0xff] %v4575_v2  ;;  %v648_v7 = vmul.f32 %v4575_v2, %v4575_v2  ;;  %v987_v62 = vmul.f32 %v4578_v24, %v4578_v24  ;;  %v3398_v11 = vpop.f32.mrb[45].mxu0  ;;  %v3318_v43 = vpop.f32.mrb[45].mxu1  ;;  %3680 = vrsqrt.f32 %v4571_v63  ;;  %vm1086_vm4 = vcmp.eq.f32.partialorder %v4571_v63, inf }
 0x172   :  { %v1066_v46 = vsel %vm1065_vm12, %v4514_v42, %v1064_v31  ;;  %vm1088_vm5 = vcmp.eq.f32.partialorder %v4571_v63, 0.0 }
 0x173   :  { %v3677_v15 = vpop.eup %3676  ;;  %v673_v37 = vadd.f32 %v648_v7, %v333_v8  ;;  %v4590_v51 = vadd.f32 %v987_v62, %v672_v58  ;;  %v1069_v59 = vsel %vm1067_vm13, %v1068_v36, %v1066_v46  ;;  %v1075_v7 = vand.u32 2147483648, %v4533_v19 }
 0x174   :  { %v4594_v2 = vpop.f32.mrb[46].mxu1  ;;  %1540 = vrot.lane.b32.xlu1 %v1069_v59, %s3919_s3  ;;  %v4597_v11 = vpop.f32.mrb[46].mxu0  ;;  %v1071_v43 = vmul.f32 %v3677_v15, %v4533_v19 }
 0x175   :  { %6177 = vst [vmem:[#allocation13_spill] sm:$0xff] %v4594_v2  ;;  %v649_v42 = vmul.f32 %v4594_v2, %v4594_v2  ;;  %v988_v58 = vmul.f32 %v4597_v11, %v4597_v11  ;;  %v3401_v8 = vpop.f32.mrb[47].mxu0  ;;  %v3321_v31 = vpop.f32.mrb[47].mxu1  ;;  %3682 = vrsqrt.f32 %v4590_v51  ;;  %v335_v2 = vmul.f32 %v4423_v13, %v4423_v13 }
 0x176   :  { %v1073_v62 = vsel %vm1072_vm14, %v4533_v19, %v1071_v43  ;;  %vm1093_vm6 = vcmp.eq.f32.partialorder %v4590_v51, inf  ;;  %vm1095_vm7 = vcmp.eq.f32.partialorder %v4590_v51, 0.0 }
 0x177   :  { %v3679_v36 = vpop.eup %3678  ;;  %v674_v46 = vadd.f32 %v649_v42, %v334_v3  ;;  %v4609_v15 = vadd.f32 %v988_v58, %v673_v37  ;;  %v1076_v59 = vsel %vm1074_vm15, %v1075_v7, %v1073_v62  ;;  %v1082_v42 = vand.u32 2147483648, %v4552_v4 }
 0x178   :  { %v4613_v18 = vpop.f32.mrb[48].mxu1  ;;  %1542 = vrot.lane.b32.xlu0 %v1076_v59, %s3919_s3  ;;  %v4616_v8 = vpop.f32.mrb[48].mxu0  ;;  %v1078_v31 = vmul.f32 %v3679_v36, %v4552_v4 }
 0x179   :  { %6178 = vst [vmem:[#allocation14_spill] sm:$0xff] %v4613_v18  ;;  %v650_v19 = vmul.f32 %v4613_v18, %v4613_v18  ;;  %v989_v3 = vmul.f32 %v4616_v8, %v4616_v8  ;;  %v3404_v37 = vpop.f32.mrb[49].mxu0  ;;  %v3324_v43 = vpop.f32.mrb[49].mxu1  ;;  %3684 = vrsqrt.f32 %v4609_v15  ;;  %v336_v18 = vmul.f32 %v4363_v22, %v4363_v22 }
 0x17a   :  { %v1080_v58 = vsel %vm1079_vm2, %v4552_v4, %v1078_v31  ;;  %vm1100_vm8 = vcmp.eq.f32.partialorder %v4609_v15, inf  ;;  %vm1102_vm9 = vcmp.eq.f32.partialorder %v4609_v15, 0.0 }
 0x17b   :  { %v3681_v7 = vpop.eup %3680  ;;  %v675_v62 = vadd.f32 %v650_v19, %v335_v2  ;;  %v4628_v36 = vadd.f32 %v989_v3, %v674_v46  ;;  %v1083_v59 = vsel %vm1081_vm3, %v1082_v42, %v1080_v58  ;;  %v1089_v19 = vand.u32 2147483648, %v4571_v63 }
 0x17c   :  { %v4632_v27 = vpop.f32.mrb[50].mxu1  ;;  %1544 = vrot.lane.b32.xlu1 %v1083_v59, %s3919_s3  ;;  %v4635_v37 = vpop.f32.mrb[50].mxu0  ;;  %v1085_v43 = vmul.f32 %v3681_v7, %v4571_v63 }
 0x17d   :  { %6179 = vst [vmem:[#allocation15_spill] sm:$0xff] %v4632_v27  ;;  %v651_v4 = vmul.f32 %v4632_v27, %v4632_v27  ;;  %v990_v2 = vmul.f32 %v4635_v37, %v4635_v37  ;;  %v3407_v46 = vpop.f32.mrb[51].mxu0  ;;  %v3327_v31 = vpop.f32.mrb[51].mxu1  ;;  %3686 = vrsqrt.f32 %v4628_v36  ;;  %v337_v27 = vmul.f32 %v4367_v26, %v4367_v26 }
 0x17e   :  { %v1087_v3 = vsel %vm1086_vm4, %v4571_v63, %v1085_v43  ;;  %vm1107_vm10 = vcmp.eq.f32.partialorder %v4628_v36, inf  ;;  %vm1109_vm11 = vcmp.eq.f32.partialorder %v4628_v36, 0.0 }
 0x17f   :  { %v3683_v42 = vpop.eup %3682  ;;  %v676_v58 = vadd.f32 %v651_v4, %v336_v18  ;;  %v4647_v7 = vadd.f32 %v990_v2, %v675_v62  ;;  %v1090_v59 = vsel %vm1088_vm5, %v1089_v19, %v1087_v3  ;;  %v1096_v4 = vand.u32 2147483648, %v4590_v51 }
 0x180   :  { %v4651_v54 = vpop.f32.mrb[52].mxu1  ;;  %1546 = vrot.lane.b32.xlu0 %v1090_v59, %s3919_s3  ;;  %v4654_v46 = vpop.f32.mrb[52].mxu0  ;;  %v1092_v31 = vmul.f32 %v3683_v42, %v4590_v51 }
 0x181   :  { %6180 = vst [vmem:[#allocation16_spill] sm:$0xff] %v4651_v54  ;;  %v652_v63 = vmul.f32 %v4651_v54, %v4651_v54  ;;  %v991_v18 = vmul.f32 %v4654_v46, %v4654_v46  ;;  %v3410_v62 = vpop.f32.mrb[53].mxu0  ;;  %v3330_v43 = vpop.f32.mrb[53].mxu1  ;;  %3688 = vrsqrt.f32 %v4647_v7  ;;  %v338_v54 = vmul.f32 %v4371_v30, %v4371_v30 }
 0x182   :  { %v1094_v2 = vsel %vm1093_vm6, %v4590_v51, %v1092_v31  ;;  %vm1114_vm12 = vcmp.eq.f32.partialorder %v4647_v7, inf  ;;  %vm1116_vm13 = vcmp.eq.f32.partialorder %v4647_v7, 0.0 }
 0x183   :  { %v3685_v19 = vpop.eup %3684  ;;  %v677_v3 = vadd.f32 %v652_v63, %v337_v27  ;;  %v4666_v42 = vadd.f32 %v991_v18, %v676_v58  ;;  %v1097_v59 = vsel %vm1095_vm7, %v1096_v4, %v1094_v2  ;;  %v1103_v63 = vand.u32 2147483648, %v4609_v15 }
 0x184   :  { %v4670_v12 = vpop.f32.mrb[54].mxu1  ;;  %1548 = vrot.lane.b32.xlu1 %v1097_v59, %s3919_s3  ;;  %v4673_v62 = vpop.f32.mrb[54].mxu0  ;;  %v1099_v43 = vmul.f32 %v3685_v19, %v4609_v15 }
 0x185   :  { %6181 = vst [vmem:[#allocation17_spill] sm:$0xff] %v4670_v12  ;;  %v653_v51 = vmul.f32 %v4670_v12, %v4670_v12  ;;  %v992_v27 = vmul.f32 %v4673_v62, %v4673_v62  ;;  %v3413_v58 = vpop.f32.mrb[55].mxu0  ;;  %v3333_v31 = vpop.f32.mrb[55].mxu1  ;;  %3690 = vrsqrt.f32 %v4666_v42  ;;  %v339_v12 = vmul.f32 %v4375_v34, %v4375_v34 }
 0x186   :  { %v1101_v18 = vsel %vm1100_vm8, %v4609_v15, %v1099_v43  ;;  %vm1121_vm14 = vcmp.eq.f32.partialorder %v4666_v42, inf  ;;  %vm1123_vm15 = vcmp.eq.f32.partialorder %v4666_v42, 0.0 }
 0x187   :  { %v3687_v4 = vpop.eup %3686  ;;  %v678_v2 = vadd.f32 %v653_v51, %v338_v54  ;;  %v4685_v19 = vadd.f32 %v992_v27, %v677_v3  ;;  %v1104_v59 = vsel %vm1102_vm9, %v1103_v63, %v1101_v18  ;;  %v1110_v51 = vand.u32 2147483648, %v4628_v36 }
 0x188   :  { %v4689_v38 = vpop.f32.mrb[56].mxu1  ;;  %1550 = vrot.lane.b32.xlu0 %v1104_v59, %s3919_s3  ;;  %v4692_v58 = vpop.f32.mrb[56].mxu0  ;;  %v1106_v31 = vmul.f32 %v3687_v4, %v4628_v36 }
 0x189   :  { %6182 = vst [vmem:[#allocation18_spill] sm:$0xff] %v4689_v38  ;;  %v654_v15 = vmul.f32 %v4689_v38, %v4689_v38  ;;  %v993_v54 = vmul.f32 %v4692_v58, %v4692_v58  ;;  %v3416_v3 = vpop.f32.mrb[57].mxu0  ;;  %v3336_v43 = vpop.f32.mrb[57].mxu1  ;;  %3692 = vrsqrt.f32 %v4685_v19  ;;  %v340_v38 = vmul.f32 %v4385_v41, %v4385_v41 }
 0x18a   :  { %v1108_v27 = vsel %vm1107_vm10, %v4628_v36, %v1106_v31  ;;  %vm1128_vm2 = vcmp.eq.f32.partialorder %v4685_v19, inf  ;;  %vm1130_vm3 = vcmp.eq.f32.partialorder %v4685_v19, 0.0 }
 0x18b   :  { %v3689_v63 = vpop.eup %3688  ;;  %v679_v18 = vadd.f32 %v654_v15, %v339_v12  ;;  %v4704_v4 = vadd.f32 %v993_v54, %v678_v2  ;;  %v1111_v59 = vsel %vm1109_vm11, %v1110_v51, %v1108_v27  ;;  %v1117_v15 = vand.u32 2147483648, %v4647_v7 }
 0x18c   :  { %v4708_v16 = vpop.f32.mrb[58].mxu1  ;;  %1552 = vrot.lane.b32.xlu1 %v1111_v59, %s3919_s3  ;;  %v4711_v3 = vpop.f32.mrb[58].mxu0  ;;  %v1113_v43 = vmul.f32 %v3689_v63, %v4647_v7 }
 0x18d   :  { %6183 = vst [vmem:[#allocation19_spill] sm:$0xff] %v4708_v16  ;;  %v655_v36 = vmul.f32 %v4708_v16, %v4708_v16  ;;  %v994_v12 = vmul.f32 %v4711_v3, %v4711_v3  ;;  %v3419_v2 = vpop.f32.mrb[59].mxu0  ;;  %v3339_v31 = vpop.f32.mrb[59].mxu1  ;;  %3694 = vrsqrt.f32 %v4704_v4  ;;  %v341_v16 = vmul.f32 %v4390_v45, %v4390_v45 }
 0x18e   :  { %v1115_v54 = vsel %vm1114_vm12, %v4647_v7, %v1113_v43  ;;  %vm1135_vm4 = vcmp.eq.f32.partialorder %v4704_v4, inf  ;;  %vm1137_vm5 = vcmp.eq.f32.partialorder %v4704_v4, 0.0 }
 0x18f   :  { %v3691_v51 = vpop.eup %3690  ;;  %v680_v27 = vadd.f32 %v655_v36, %v340_v38  ;;  %v4723_v63 = vadd.f32 %v994_v12, %v679_v18  ;;  %v1118_v59 = vsel %vm1116_vm13, %v1117_v15, %v1115_v54  ;;  %v1124_v36 = vand.u32 2147483648, %v4666_v42 }
 0x190   :  { %v4727_v0 = vpop.f32.mrb[60].mxu1  ;;  %1554 = vrot.lane.b32.xlu0 %v1118_v59, %s3919_s3  ;;  %v4730_v2 = vpop.f32.mrb[60].mxu0  ;;  %v1120_v31 = vmul.f32 %v3691_v51, %v4666_v42 }
 0x191   :  { %6184 = vst [vmem:[#allocation20_spill] sm:$0xff] %v4727_v0  ;;  %v656_v7 = vmul.f32 %v4727_v0, %v4727_v0  ;;  %v995_v38 = vmul.f32 %v4730_v2, %v4730_v2  ;;  %v3422_v18 = vpop.f32.mrb[61].mxu0  ;;  %v3342_v43 = vpop.f32.mrb[61].mxu1  ;;  %3696 = vrsqrt.f32 %v4723_v63  ;;  %v342_v0 = vmul.f32 %v4394_v49, %v4394_v49 }
 0x192   :  { %v1122_v12 = vsel %vm1121_vm14, %v4666_v42, %v1120_v31  ;;  %vm1142_vm6 = vcmp.eq.f32.partialorder %v4723_v63, inf  ;;  %vm1144_vm7 = vcmp.eq.f32.partialorder %v4723_v63, 0.0 }
 0x193   :  { %v3693_v15 = vpop.eup %3692  ;;  %v681_v54 = vadd.f32 %v656_v7, %v341_v16  ;;  %v4742_v51 = vadd.f32 %v995_v38, %v680_v27  ;;  %v1125_v59 = vsel %vm1123_vm15, %v1124_v36, %v1122_v12  ;;  %v1131_v7 = vand.u32 2147483648, %v4685_v19 }
 0x194   :  { %v4746_v47 = vpop.f32.mrb[62].mxu1  ;;  %1556 = vrot.lane.b32.xlu1 %v1125_v59, %s3919_s3  ;;  %v4749_v18 = vpop.f32.mrb[62].mxu0  ;;  %v1127_v43 = vmul.f32 %v3693_v15, %v4685_v19 }
 0x195   :  { %6185 = vst [vmem:[#allocation21_spill] sm:$0xff] %v4746_v47  ;;  %6186 = vst [vmem:[#allocation22_spill] sm:$0xff] %v4749_v18  ;;  %v657_v42 = vmul.f32 %v4746_v47, %v4746_v47  ;;  %v996_v16 = vmul.f32 %v4749_v18, %v4749_v18  ;;  %v3425_v27 = vpop.f32.mrb[63].mxu0  ;;  %v3345_v31 = vpop.f32.mrb[63].mxu1  ;;  %3698 = vrsqrt.f32 %v4742_v51  ;;  %v343_v47 = vmul.f32 %v4398_v53, %v4398_v53 }
 0x196   :  { %v1129_v38 = vsel %vm1128_vm2, %v4685_v19, %v1127_v43  ;;  %vm1149_vm8 = vcmp.eq.f32.partialorder %v4742_v51, inf  ;;  %vm1151_vm9 = vcmp.eq.f32.partialorder %v4742_v51, 0.0 }
 0x197   :  { %v3695_v36 = vpop.eup %3694  ;;  %v682_v12 = vadd.f32 %v657_v42, %v342_v0  ;;  %v4761_v15 = vadd.f32 %v996_v16, %v681_v54  ;;  %v1132_v59 = vsel %vm1130_vm3, %v1131_v7, %v1129_v38  ;;  %v1138_v42 = vand.u32 2147483648, %v4704_v4 }
 0x198   :  { %v4765_v32 = vpop.f32.mrb[64].mxu1  ;;  %1558 = vrot.lane.b32.xlu0 %v1132_v59, %s3919_s3  ;;  %v4768_v27 = vpop.f32.mrb[64].mxu0  ;;  %v1134_v31 = vmul.f32 %v3695_v36, %v4704_v4 }
 0x199   :  { %6187 = vst [vmem:[#allocation23_spill] sm:$0xff] %v4765_v32  ;;  %v658_v19 = vmul.f32 %v4765_v32, %v4765_v32  ;;  %v997_v0 = vmul.f32 %v4768_v27, %v4768_v27  ;;  %v3428_v54 = vpop.f32.mrb[65].mxu0  ;;  %v3348_v43 = vpop.f32.mrb[65].mxu1  ;;  %3700 = vrsqrt.f32 %v4761_v15  ;;  %v344_v32 = vmul.f32 %v4402_v57, %v4402_v57 }
 0x19a   :  { %v1136_v16 = vsel %vm1135_vm4, %v4704_v4, %v1134_v31  ;;  %vm1156_vm10 = vcmp.eq.f32.partialorder %v4761_v15, inf  ;;  %vm1158_vm11 = vcmp.eq.f32.partialorder %v4761_v15, 0.0 }
 0x19b   :  { %v3697_v7 = vpop.eup %3696  ;;  %v683_v38 = vadd.f32 %v658_v19, %v343_v47  ;;  %v4780_v36 = vadd.f32 %v997_v0, %v682_v12  ;;  %v1139_v59 = vsel %vm1137_vm5, %v1138_v42, %v1136_v16  ;;  %v1145_v19 = vand.u32 2147483648, %v4723_v63 }
 0x19c   :  { %v4784_v23 = vpop.f32.mrb[66].mxu1  ;;  %1560 = vrot.lane.b32.xlu1 %v1139_v59, %s3919_s3  ;;  %v4787_v54 = vpop.f32.mrb[66].mxu0  ;;  %v1141_v43 = vmul.f32 %v3697_v7, %v4723_v63 }
 0x19d   :  { %6188 = vst [vmem:[#allocation24_spill] sm:$0xff] %v4784_v23  ;;  %6189 = vst [vmem:[#allocation25_spill] sm:$0xff] %v4787_v54  ;;  %v659_v4 = vmul.f32 %v4784_v23, %v4784_v23  ;;  %v998_v47 = vmul.f32 %v4787_v54, %v4787_v54  ;;  %v3431_v12 = vpop.f32.mrb[67].mxu0  ;;  %v3351_v31 = vpop.f32.mrb[67].mxu1  ;;  %3702 = vrsqrt.f32 %v4780_v36  ;;  %v345_v23 = vmul.f32 %v4406_v61, %v4406_v61 }
 0x19e   :  { %v1143_v0 = vsel %vm1142_vm6, %v4723_v63, %v1141_v43  ;;  %vm1163_vm12 = vcmp.eq.f32.partialorder %v4780_v36, inf  ;;  %vm1165_vm13 = vcmp.eq.f32.partialorder %v4780_v36, 0.0 }
 0x19f   :  { %v3699_v42 = vpop.eup %3698  ;;  %v684_v16 = vadd.f32 %v659_v4, %v344_v32  ;;  %v4799_v7 = vadd.f32 %v998_v47, %v683_v38  ;;  %v1146_v59 = vsel %vm1144_vm7, %v1145_v19, %v1143_v0  ;;  %v1152_v4 = vand.u32 2147483648, %v4742_v51 }
 0x1a0   :  { %v4803_v18 = vpop.f32.mrb[68].mxu1  ;;  %1562 = vrot.lane.b32.xlu0 %v1146_v59, %s3919_s3  ;;  %v4806_v12 = vpop.f32.mrb[68].mxu0  ;;  %v1148_v31 = vmul.f32 %v3699_v42, %v4742_v51 }
 0x1a1   :  { %6190 = vst [vmem:[#allocation26_spill] sm:$0xff] %v4803_v18  ;;  %6191 = vst [vmem:[#allocation27_spill] sm:$0xff] %v4806_v12  ;;  %v660_v63 = vmul.f32 %v4803_v18, %v4803_v18  ;;  %v999_v32 = vmul.f32 %v4806_v12, %v4806_v12  ;;  %v3434_v38 = vpop.f32.mrb[69].mxu0  ;;  %v3354_v43 = vpop.f32.mrb[69].mxu1  ;;  %3704 = vrsqrt.f32 %v4799_v7  ;;  %v346_v18 = vmul.f32 %v4416_v6, %v4416_v6 }
 0x1a2   :  { %v1150_v47 = vsel %vm1149_vm8, %v4742_v51, %v1148_v31  ;;  %v347_v12 = vmul.f32 %v4421_v10, %v4421_v10  ;;  %vm1170_vm14 = vcmp.eq.f32.partialorder %v4799_v7, inf  ;;  %vm1172_vm15 = vcmp.eq.f32.partialorder %v4799_v7, 0.0 }
 0x1a3   :  { %v3701_v19 = vpop.eup %3700  ;;  %v685_v0 = vadd.f32 %v660_v63, %v345_v23  ;;  %v1024_v42 = vadd.f32 %v999_v32, %v684_v16  ;;  %v1153_v59 = vsel %vm1151_vm9, %v1152_v4, %v1150_v47  ;;  %v1159_v63 = vand.u32 2147483648, %v4761_v15 }
 0x1a4   :  { %v4820_v54 = vpop.f32.mrb[70].mxu1  ;;  %1564 = vrot.lane.b32.xlu1 %v1153_v59, %s3919_s3  ;;  %v4823_v38 = vpop.f32.mrb[70].mxu0  ;;  %v1155_v43 = vmul.f32 %v3701_v19, %v4761_v15 }
 0x1a5   :  { %6192 = vst [vmem:[#allocation28_spill] sm:$0xff] %v4820_v54  ;;  %6193 = vst [vmem:[#allocation29_spill] sm:$0xff] %v4823_v38  ;;  %v661_v51 = vmul.f32 %v4820_v54, %v4820_v54  ;;  %v1000_v23 = vmul.f32 %v4823_v38, %v4823_v38  ;;  %v3437_v16 = vpop.f32.mrb[71].mxu0  ;;  %v3357_v31 = vpop.f32.mrb[71].mxu1  ;;  %3706 = vrsqrt.f32 %v1024_v42  ;;  %vm1177_vm2 = vcmp.eq.f32.partialorder %v1024_v42, inf }
 0x1a6   :  { %v1157_v32 = vsel %vm1156_vm10, %v4761_v15, %v1155_v43  ;;  %vm1179_vm3 = vcmp.eq.f32.partialorder %v1024_v42, 0.0  ;;  %vm1428_vm10 = vcmask 523264  }
 0x1a7   :  { %v3703_v4 = vpop.eup %3702  ;;  %v686_v47 = vadd.f32 %v661_v51, %v346_v18  ;;  %v1025_v19 = vadd.f32 %v1000_v23, %v685_v0  ;;  %v1160_v59 = vsel %vm1158_vm11, %v1159_v63, %v1157_v32  ;;  %v1166_v51 = vand.u32 2147483648, %v4780_v36 }
 0x1a8   :  { %v4836_v54 = vpop.f32.mrb[72].mxu1  ;;  %1566 = vrot.lane.b32.xlu0 %v1160_v59, %s3919_s3  ;;  %v4839_v16 = vpop.f32.mrb[72].mxu0  ;;  %v1162_v31 = vmul.f32 %v3703_v4, %v4780_v36  ;;  %vm1454_vm11 = vcmask 785408  }
 0x1a9   :  { %6194 = vst [vmem:[#allocation30_spill] sm:$0xff] %v4836_v54  ;;  %v662_v15 = vmul.f32 %v4836_v54, %v4836_v54  ;;  %v1001_v18 = vmul.f32 %v4839_v16, %v4839_v16  ;;  %v3440_v0 = vpop.f32.mrb[73].mxu0  ;;  %v3360_v43 = vpop.f32.mrb[73].mxu1  ;;  %3708 = vrsqrt.f32 %v1025_v19  ;;  %vm1184_vm4 = vcmp.eq.f32.partialorder %v1025_v19, inf }
 0x1aa   :  { %v1164_v23 = vsel %vm1163_vm12, %v4780_v36, %v1162_v31  ;;  %v1173_v31 = vand.u32 2147483648, %v4799_v7  ;;  %vm1186_vm5 = vcmp.eq.f32.partialorder %v1025_v19, 0.0 }
 0x1ab   :  { %v3705_v63 = vpop.eup %3704  ;;  %v687_v32 = vadd.f32 %v662_v15, %v347_v12  ;;  %v1026_v4 = vadd.f32 %v1001_v18, %v686_v47  ;;  %v1167_v59 = vsel %vm1165_vm13, %v1166_v51, %v1164_v23  ;;  %v1180_v51 = vand.u32 2147483648, %v1024_v42 }
 0x1ac   :  { %1568 = vrot.lane.b32.xlu1 %v1167_v59, %s3919_s3  ;;  %v4851_v38 = vpop.f32.mrb[74].mxu0  ;;  %v1169_v54 = vmul.f32 %v3705_v63, %v4799_v7 }
 0x1ad   :  { %6195 = vst [vmem:[#allocation31_spill] sm:$0xff] %v4851_v38  ;;  %v1002_v0 = vmul.f32 %v4851_v38, %v4851_v38  ;;  %v3443_v43 = vpop.f32.mrb[75].mxu0  ;;  %3710 = vrsqrt.f32 %v1026_v4  ;;  %vm1191_vm6 = vcmp.eq.f32.partialorder %v1026_v4, inf  ;;  %vm1193_vm7 = vcmp.eq.f32.partialorder %v1026_v4, 0.0 }
 0x1ae   :  { %v1171_v36 = vsel %vm1170_vm14, %v4799_v7, %v1169_v54  ;;  %v1187_v54 = vand.u32 2147483648, %v1025_v19 }
 0x1af   :  { %v3707_v12 = vpop.eup %3706  ;;  %v1027_v47 = vadd.f32 %v1002_v0, %v687_v32  ;;  %v1174_v15 = vsel %vm1172_vm15, %v1173_v31, %v1171_v36  ;;  %v1194_v31 = vand.u32 2147483648, %v1026_v4 }
 0x1b0   :  { %1570 = vrot.lane.b32.xlu0 %v1174_v15, %s3919_s3  ;;  %v1176_v18 = vmul.f32 %v3707_v12, %v1024_v42 }
 0x1b1   :  { %3712 = vrsqrt.f32 %v1027_v47  ;;  %vm1198_vm8 = vcmp.eq.f32.partialorder %v1027_v47, inf  ;;  %vm1200_vm9 = vcmp.eq.f32.partialorder %v1027_v47, 0.0 }
 0x1b2   :  { %v1178_v23 = vsel %vm1177_vm2, %v1024_v42, %v1176_v18  ;;  %v1201_v18 = vand.u32 2147483648, %v1027_v47 }
 0x1b3   :  { %v3709_v63 = vpop.eup %3708  ;;  %v1181_v59 = vsel %vm1179_vm3, %v1180_v51, %v1178_v23 }
 0x1b4   :  { %1572 = vrot.lane.b32.xlu1 %v1181_v59, %s3919_s3  ;;  %v1183_v43 = vmul.f32 %v3709_v63, %v1025_v19 }
 0x1b6   :  { %v1185_v38 = vsel %vm1184_vm4, %v1025_v19, %v1183_v43 }
 0x1b7   :  { %v3711_v7 = vpop.eup %3710  ;;  %v1188_v32 = vsel %vm1186_vm5, %v1187_v54, %v1185_v38  ;;  %v1484_v38 = vld [vmem:[%s6127_s0 + $0x20] sm:$0xff] }
 0x1b8   :  { %1574 = vrot.lane.b32.xlu0 %v1188_v32, %s3919_s3  ;;  %v1190_v0 = vmul.f32 %v3711_v7, %v1026_v4 }
 0x1ba   :  { %v1192_v36 = vsel %vm1191_vm6, %v1026_v4, %v1190_v0 }
 0x1bb   :  { %v3713_v12 = vpop.eup %3712  ;;  %v1195_v42 = vsel %vm1193_vm7, %v1194_v31, %v1192_v36 }
 0x1bc   :  { %1576 = vrot.lane.b32.xlu1 %v1195_v42, %s3919_s3  ;;  %v1197_v15 = vmul.f32 %v3713_v12, %v1027_v47 }
 0x1be   :  { %v1199_v51 = vsel %vm1198_vm8, %v1027_v47, %v1197_v15  ;;  %v6197_v47 = vmov 0.0|0.0  }
 0x1bf   :  { %v1202_v23 = vsel %vm1200_vm9, %v1201_v18, %v1199_v51  ;;  %v1497_v51 = vld [vmem:[%s6127_s0 + $0x88] sm:$0xff] }
 0x1c0   :  { %1228 = vrot.lane.b32.xlu1 %v4361_v21, %s3915_s9  ;;  %1578 = vrot.lane.b32.xlu0 %v1202_v23, %s3919_s3  ;;  %v1480_v21 = vld [vmem:[%s6127_s0] sm:$0xff] }
 0x1c4   :  { %1232 = vrot.lane.b32.xlu1 %v4369_v29, %s3915_s9  ;;  %1230 = vrot.lane.b32.xlu0 %v4365_v25, %s3915_s9 }
 0x1c8   :  { %1236 = vrot.lane.b32.xlu1 %v4383_v40, %s3915_s9  ;;  %1234 = vrot.lane.b32.xlu0 %v4373_v33, %s3915_s9  ;;  %v1481_v33 = vld [vmem:[%s6127_s0 + $0x8] sm:$0xff] }
 0x1cc   :  { %1240 = vrot.lane.b32.xlu1 %v4392_v48, %s3915_s9  ;;  %1238 = vrot.lane.b32.xlu0 %v4388_v44, %s3915_s9  ;;  %v6196_v44 = vmov 0.0  }
 0x1d0   :  { %1244 = vrot.lane.b32.xlu1 %v4400_v56, %s3915_s9  ;;  %1242 = vrot.lane.b32.xlu0 %v4396_v52, %s3915_s9  ;;  %v1482_v52 = vld [vmem:[%s6127_s0 + $0x10] sm:$0xff] }
 0x1d2   :  { %v1531_v25 = vpop.permute.xlu0 %1530 }
 0x1d3   :  { %v1605_v29 = vsel %vm57_vm1, %v1480_v21, %v1531_v25  ;;  %v1498_v25 = vld [vmem:[%s6127_s0 + $0x90] sm:$0xff] }
 0x1d4   :  { %1248 = vrot.lane.b32.xlu1 %v4414_v5, %s3915_s9  ;;  %1246 = vrot.lane.b32.xlu0 %v4404_v60, %s3915_s9  ;;  %v1483_v5 = vld [vmem:[%s6127_s0 + $0x18] sm:$0xff] }
 0x1d5   :  { %3461 = vmatmul.mubr.msk.f32.vlgmr.msra.gmra.mrb[74].mxu1 %vm1428_vm10, %v1605_v29 }
 0x1d6   :  { %v1533_v40 = vpop.permute.xlu1 %1532  ;;  %3463 = vmatprep.mubr.msk.f32.mxu1 %vm3916_vm0, %v6196_v44 }
 0x1d7   :  { %v1606_v48 = vsel %vm57_vm1, %v1481_v33, %v1533_v40  ;;  %v6199_v40 = vld [vmem:[#allocation27_spill] sm:$0xff] }
 0x1d8   :  { %1252 = vrot.lane.b32.xlu1 %v4423_v13, %s3915_s9  ;;  %1250 = vrot.lane.b32.xlu0 %v4419_v9, %s3915_s9 }
 0x1d9   :  { %3464 = vmatmul.mubr.msk.f32.gmra.mrb[76].mxu1 %vm1428_vm10, %v1606_v48  ;;  %v1499_v48 = vld [vmem:[%s6127_s0 + $0x98] sm:$0xff] }
 0x1da   :  { %v1535_v56 = vpop.permute.xlu0 %1534  ;;  %3466 = vmatprep.mubr.msk.f32.mxu1 %vm3916_vm0, %v6196_v44 }
 0x1db   :  { %v1607_v60 = vsel %vm57_vm1, %v1482_v52, %v1535_v56 }
 0x1dc   :  { %1256 = vrot.lane.b32.xlu1 %v4367_v26, %s3915_s9  ;;  %1254 = vrot.lane.b32.xlu0 %v4363_v22, %s3915_s9  ;;  %v2085_v22 = vld [vmem:[%s6128_s5] sm:$0xff]  ;;  %v2086_v26 = vld [vmem:[%s6128_s5 + $0x8] sm:$0xff] }
 0x1dd   :  { %3467 = vmatmul.mubr.msk.f32.gmra.mrb[78].mxu1 %vm1428_vm10, %v1607_v60  ;;  %v3649_v19 = vpack.c.bf16 %v2086_v26, %v2085_v22  ;;  %v6201_v60 = vld [vmem:[#allocation29_spill] sm:$0xff] }
 0x1de   :  { %v1537_v9 = vpop.permute.xlu1 %1536  ;;  %3469 = vmatprep.mubr.msk.f32.mxu1 %vm3916_vm0, %v6196_v44 }
 0x1df   :  { %v1608_v13 = vsel %vm57_vm1, %v1483_v5, %v1537_v9  ;;  %3650 = vmatpush3.bf16.msra.mxu0 %v3649_v19  ;;  %v1500_v5 = vld [vmem:[%s6127_s0 + $0xa0] sm:$0xff]  ;;  %v1502_v19 = vld [vmem:[%s6127_s0 + $0xb0] sm:$0xff] }
 0x1e0   :  { %1260 = vrot.lane.b32.xlu1 %v4375_v34, %s3915_s9  ;;  %1258 = vrot.lane.b32.xlu0 %v4371_v30, %s3915_s9  ;;  %v1485_v30 = vld [vmem:[%s6127_s0 + $0x28] sm:$0xff] }
 0x1e1   :  { %3470 = vmatmul.mubr.msk.f32.gmra.mrb[80].mxu1 %vm1428_vm10, %v1608_v13  ;;  %3651 = vmatprep.subr.bf16.mxu0 %v6197_v47 }
 0x1e2   :  { %v1539_v4 = vpop.permute.xlu0 %1538  ;;  %3472 = vmatprep.mubr.msk.f32.mxu1 %vm3916_vm0, %v6196_v44 }
 0x1e3   :  { %v1609_v34 = vsel %vm57_vm1, %v1484_v38, %v1539_v4  ;;  %v6202_v38 = vld [vmem:[#allocation31_spill] sm:$0xff] }
 0x1e4   :  { %1264 = vrot.lane.b32.xlu1 %v4390_v45, %s3915_s9  ;;  %1262 = vrot.lane.b32.xlu0 %v4385_v41, %s3915_s9  ;;  %v1486_v41 = vld [vmem:[%s6127_s0 + $0x30] sm:$0xff] }
 0x1e5   :  { %3473 = vmatmul.mubr.msk.f32.gmra.mrb[82].mxu1 %vm1428_vm10, %v1609_v34 }
 0x1e6   :  { %v1541_v63 = vpop.permute.xlu1 %1540  ;;  %3475 = vmatprep.mubr.msk.f32.mxu1 %vm3916_vm0, %v6196_v44 }
 0x1e7   :  { %v1610_v59 = vsel %vm57_vm1, %v1485_v30, %v1541_v63  ;;  %v1503_v30 = vld [vmem:[%s6127_s0 + $0xb8] sm:$0xff] }
 0x1e8   :  { %1268 = vrot.lane.b32.xlu1 %v4398_v53, %s3915_s9  ;;  %1266 = vrot.lane.b32.xlu0 %v4394_v49, %s3915_s9  ;;  %v1487_v49 = vld [vmem:[%s6127_s0 + $0x38] sm:$0xff] }
 0x1e9   :  { %3476 = vmatmul.mubr.msk.f32.gmra.mrb[84].mxu1 %vm1428_vm10, %v1610_v59  ;;  %v1504_v59 = vld [vmem:[%s6127_s0 + $0xc0] sm:$0xff] }
 0x1ea   :  { %v1543_v45 = vpop.permute.xlu0 %1542  ;;  %3478 = vmatprep.mubr.msk.f32.mxu1 %vm3916_vm0, %v6196_v44 }
 0x1eb   :  { %v1611_v43 = vsel %vm57_vm1, %v1486_v41, %v1543_v45 }
 0x1ec   :  { %1272 = vrot.lane.b32.xlu1 %v4406_v61, %s3915_s9  ;;  %1270 = vrot.lane.b32.xlu0 %v4402_v57, %s3915_s9  ;;  %v1488_v57 = vld [vmem:[%s6127_s0 + $0x40] sm:$0xff] }
 0x1ed   :  { %3479 = vmatmul.mubr.msk.f32.gmra.mrb[86].mxu1 %vm1428_vm10, %v1611_v43 }
 0x1ee   :  { %v1545_v53 = vpop.permute.xlu1 %1544  ;;  %3481 = vmatprep.mubr.msk.f32.mxu1 %vm3916_vm0, %v6196_v44 }
 0x1ef   :  { %v1612_v54 = vsel %vm57_vm1, %v1487_v49, %v1545_v53 }
 0x1f0   :  { %1276 = vrot.lane.b32.xlu1 %v4421_v10, %s3915_s9  ;;  %1274 = vrot.lane.b32.xlu0 %v4416_v6, %s3915_s9  ;;  %v1489_v6 = vld [vmem:[%s6127_s0 + $0x48] sm:$0xff] }
 0x1f1   :  { %3482 = vmatmul.mubr.msk.f32.gmra.mrb[88].mxu1 %vm1428_vm10, %v1612_v54 }
 0x1f2   :  { %v1547_v61 = vpop.permute.xlu0 %1546  ;;  %3484 = vmatprep.mubr.msk.f32.mxu1 %vm3916_vm0, %v6196_v44 }
 0x1f3   :  { %v1613_v7 = vsel %vm57_vm1, %v1488_v57, %v1547_v61 }
 0x1f4   :  { %1330 = vrot.lane.b32.xlu1 %v4456_v50, %s3919_s3  ;;  %1328 = vrot.lane.b32.xlu0 %v4446_v35, %s3919_s3  ;;  %v1490_v35 = vld [vmem:[%s6127_s0 + $0x50] sm:$0xff] }
 0x1f5   :  { %3485 = vmatmul.mubr.msk.f32.gmra.mrb[90].mxu1 %vm1428_vm10, %v1613_v7 }
 0x1f6   :  { %v1549_v10 = vpop.permute.xlu1 %1548  ;;  %3487 = vmatprep.mubr.msk.f32.mxu1 %vm3916_vm0, %v6196_v44 }
 0x1f7   :  { %v1614_v32 = vsel %vm57_vm1, %v1489_v6, %v1549_v10 }
 0x1f8   :  { %1334 = vrot.lane.b32.xlu1 %v4478_v17, %s3919_s3  ;;  %1332 = vrot.lane.b32.xlu0 %v4466_v1, %s3919_s3  ;;  %v1491_v1 = vld [vmem:[%s6127_s0 + $0x58] sm:$0xff] }
 0x1f9   :  { %3488 = vmatmul.mubr.msk.f32.gmra.mrb[92].mxu1 %vm1428_vm10, %v1614_v32 }
 0x1fa   :  { %v1551_v50 = vpop.permute.xlu0 %1550  ;;  %3490 = vmatprep.mubr.msk.f32.mxu1 %vm3916_vm0, %v6196_v44 }
 0x1fb   :  { %v1615_v0 = vsel %vm57_vm1, %v1490_v35, %v1551_v50 }
 0x1fc   :  { %1338 = vrot.lane.b32.xlu1 %v4507_v14, %s3919_s3  ;;  %1336 = vrot.lane.b32.xlu0 %v4493_v39, %s3919_s3  ;;  %v1492_v39 = vld [vmem:[%s6127_s0 + $0x60] sm:$0xff] }
 0x1fd   :  { %3491 = vmatmul.mubr.msk.f32.gmra.mrb[94].mxu1 %vm1428_vm10, %v1615_v0 }
 0x1fe   :  { %v1553_v17 = vpop.permute.xlu1 %1552  ;;  %3493 = vmatprep.mubr.msk.f32.mxu1 %vm3916_vm0, %v6196_v44 }
 0x1ff   :  { %v1616_v31 = vsel %vm57_vm1, %v1491_v1, %v1553_v17 }
 0x200   :  { %1342 = vrot.lane.b32.xlu1 %v4540_v28, %s3919_s3  ;;  %1340 = vrot.lane.b32.xlu0 %v4521_v55, %s3919_s3  ;;  %v1493_v55 = vld [vmem:[%s6127_s0 + $0x68] sm:$0xff] }
 0x201   :  { %3494 = vmatmul.mubr.msk.f32.gmra.mrb[96].mxu1 %vm1428_vm10, %v1616_v31 }
 0x202   :  { %v1555_v14 = vpop.permute.xlu0 %1554  ;;  %3496 = vmatprep.mubr.msk.f32.mxu1 %vm3916_vm0, %v6196_v44 }
 0x203   :  { %v1617_v36 = vsel %vm57_vm1, %v1492_v39, %v1555_v14 }
 0x204   :  { %1346 = vrot.lane.b32.xlu1 %v4578_v24, %s3919_s3  ;;  %1344 = vrot.lane.b32.xlu0 %v4559_v20, %s3919_s3  ;;  %v1494_v20 = vld [vmem:[%s6127_s0 + $0x70] sm:$0xff] }
 0x205   :  { %3497 = vmatmul.mubr.msk.f32.gmra.mrb[98].mxu1 %vm1428_vm10, %v1617_v36 }
 0x206   :  { %v1557_v28 = vpop.permute.xlu1 %1556  ;;  %3499 = vmatprep.mubr.msk.f32.mxu1 %vm3916_vm0, %v6196_v44 }
 0x207   :  { %v1618_v12 = vsel %vm57_vm1, %v1493_v55, %v1557_v28 }
 0x208   :  { %1350 = vrot.lane.b32.xlu1 %v4616_v8, %s3919_s3  ;;  %1348 = vrot.lane.b32.xlu0 %v4597_v11, %s3919_s3  ;;  %v1495_v11 = vld [vmem:[%s6127_s0 + $0x78] sm:$0xff] }
 0x209   :  { %3500 = vmatmul.mubr.msk.f32.gmra.mrb[100].mxu1 %vm1428_vm10, %v1618_v12 }
 0x20a   :  { %v1559_v24 = vpop.permute.xlu0 %1558  ;;  %3502 = vmatprep.mubr.msk.f32.mxu1 %vm3916_vm0, %v6196_v44 }
 0x20b   :  { %v1619_v42 = vsel %vm57_vm1, %v1494_v20, %v1559_v24 }
 0x20c   :  { %1354 = vrot.lane.b32.xlu1 %v4654_v46, %s3919_s3  ;;  %1352 = vrot.lane.b32.xlu0 %v4635_v37, %s3919_s3  ;;  %v1496_v37 = vld [vmem:[%s6127_s0 + $0x80] sm:$0xff] }
 0x20d   :  { %3503 = vmatmul.mubr.msk.f32.gmra.mrb[102].mxu1 %vm1428_vm10, %v1619_v42 }
 0x20e   :  { %v1561_v8 = vpop.permute.xlu1 %1560  ;;  %3505 = vmatprep.mubr.msk.f32.mxu1 %vm3916_vm0, %v6196_v44 }
 0x20f   :  { %v1620_v15 = vsel %vm57_vm1, %v1495_v11, %v1561_v8  ;;  %v6203_v11 = vld [vmem:[#allocation2_spill] sm:$0xff] }
 0x210   :  { %1358 = vrot.lane.b32.xlu1 %v4692_v58, %s3919_s3  ;;  %1356 = vrot.lane.b32.xlu0 %v4673_v62, %s3919_s3  ;;  %v2087_v62 = vld [vmem:[%s6128_s5 + $0x10] sm:$0xff]  ;;  %v2088_v58 = vld [vmem:[%s6128_s5 + $0x18] sm:$0xff] }
 0x211   :  { %3506 = vmatmul.mubr.msk.f32.gmra.mrb[104].mxu1 %vm1428_vm10, %v1620_v15  ;;  %v3652_v23 = vpack.c.bf16 %v2088_v58, %v2087_v62  ;;  %v6204_v15 = vld [vmem:[#allocation3_spill] sm:$0xff]  ;;  %v6205_v58 = vld [vmem:[#allocation4_spill] sm:$0xff] }
 0x212   :  { %v1563_v46 = vpop.permute.xlu0 %1562  ;;  %3508 = vmatprep.mubr.msk.f32.mxu1 %vm3916_vm0, %v6196_v44 }
 0x213   :  { %v1621_v18 = vsel %vm57_vm1, %v1496_v37, %v1563_v46  ;;  %3653 = vmatpush3.bf16.msra.mxu0 %v3652_v23 }
 0x214   :  { %1362 = vrot.lane.b32.xlu1 %v4730_v2, %s3919_s3  ;;  %1360 = vrot.lane.b32.xlu0 %v4711_v3, %s3919_s3  ;;  %v6198_v3 = vld [vmem:[#allocation22_spill] sm:$0xff] }
 0x215   :  { %3509 = vmatmul.mubr.msk.f32.gmra.mrb[106].mxu1 %vm1428_vm10, %v1621_v18 }
 0x216   :  { %v1565_v21 = vpop.permute.xlu1 %1564  ;;  %3511 = vmatprep.mubr.msk.f32.mxu1 %vm3916_vm0, %v6196_v44 }
 0x217   :  { %v1622_v2 = vsel %vm57_vm1, %v1497_v51, %v1565_v21  ;;  %v6206_v21 = vld [vmem:[#allocation5_spill] sm:$0xff] }
 0x218   :  { %1366 = vrot.lane.b32.xlu1 %v4768_v27, %s3919_s3  ;;  %1364 = vrot.lane.b32.xlu0 %v6198_v3, %s3919_s3  ;;  %v6200_v27 = vld [vmem:[#allocation25_spill] sm:$0xff] }
 0x219   :  { %3512 = vmatmul.mubr.msk.f32.gmra.mrb[108].mxu1 %vm1428_vm10, %v1622_v2 }
 0x21a   :  { %v1567_v29 = vpop.permute.xlu0 %1566  ;;  %3514 = vmatprep.mubr.msk.f32.mxu1 %vm3916_vm0, %v6196_v44 }
 0x21b   :  { %v1623_v33 = vsel %vm57_vm1, %v1498_v25, %v1567_v29 }
 0x21c   :  { %1370 = vrot.lane.b32.xlu1 %v6199_v40, %s3919_s3  ;;  %1368 = vrot.lane.b32.xlu0 %v6200_v27, %s3919_s3  ;;  %v6207_v40 = vld [vmem:[#allocation6_spill] sm:$0xff] }
 0x21d   :  { %3515 = vmatmul.mubr.msk.f32.gmra.mrb[110].mxu1 %vm1428_vm10, %v1623_v33 }
 0x21e   :  { %v1569_v52 = vpop.permute.xlu1 %1568  ;;  %3517 = vmatprep.mubr.msk.f32.mxu1 %vm3916_vm0, %v6196_v44 }
 0x21f   :  { %v1624_v56 = vsel %vm57_vm1, %v1499_v48, %v1569_v52  ;;  %v6208_v48 = vld [vmem:[#allocation7_spill] sm:$0xff] }
 0x220   :  { %1374 = vrot.lane.b32.xlu1 %v4839_v16, %s3919_s3  ;;  %1372 = vrot.lane.b32.xlu0 %v6201_v60, %s3919_s3  ;;  %v1501_v16 = vld [vmem:[%s6127_s0 + $0xa8] sm:$0xff] }
 0x221   :  { %3518 = vmatmul.mubr.msk.f32.gmra.mrb[112].mxu1 %vm1428_vm10, %v1624_v56 }
 0x222   :  { %v1571_v9 = vpop.permute.xlu0 %1570  ;;  %3520 = vmatprep.mubr.msk.f32.mxu1 %vm3916_vm0, %v6196_v44 }
 0x223   :  { %v1625_v13 = vsel %vm57_vm1, %v1500_v5, %v1571_v9 }
 0x224   :  { %1376 = vrot.lane.b32.xlu0 %v6202_v38, %s3919_s3 }
 0x225   :  { %3521 = vmatmul.mubr.msk.f32.gmra.mrb[114].mxu1 %vm1428_vm10, %v1625_v13  ;;  %v6209_v13 = vld [vmem:[#allocation8_spill] sm:$0xff] }
 0x226   :  { %v1573_v22 = vpop.permute.xlu1 %1572  ;;  %3523 = vmatprep.mubr.msk.f32.mxu1 %vm3916_vm0, %v6196_v44 }
 0x227   :  { %v1626_v26 = vsel %vm57_vm1, %v1501_v16, %v1573_v22  ;;  %v6210_v16 = vld [vmem:[#allocation9_spill] sm:$0xff] }
 0x229   :  { %3524 = vmatmul.mubr.msk.f32.gmra.mrb[116].mxu1 %vm1428_vm10, %v1626_v26 }
 0x22a   :  { %v1575_v4 = vpop.permute.xlu0 %1574  ;;  %3526 = vmatprep.mubr.msk.f32.mxu1 %vm3916_vm0, %v6196_v44 }
 0x22b   :  { %v1627_v34 = vsel %vm57_vm1, %v1502_v19, %v1575_v4 }
 0x22d   :  { %3527 = vmatmul.mubr.msk.f32.gmra.mrb[118].mxu1 %vm1428_vm10, %v1627_v34 }
 0x22e   :  { %v1577_v47 = vpop.permute.xlu1 %1576  ;;  %3529 = vmatprep.mubr.msk.f32.mxu1 %vm3916_vm0, %v6196_v44 }
 0x22f   :  { %v1628_v63 = vsel %vm57_vm1, %v1503_v30, %v1577_v47  ;;  %v6211_v30 = vld [vmem:[#allocation10_spill] sm:$0xff] }
 0x231   :  { %3530 = vmatmul.mubr.msk.f32.gmra.mrb[120].mxu1 %vm1428_vm10, %v1628_v63  ;;  %v6212_v63 = vld [vmem:[#allocation11_spill] sm:$0xff] }
 0x232   :  { %v1229_v41 = vpop.permute.xlu1 %1228  ;;  %v1579_v45 = vpop.permute.xlu0 %1578  ;;  %3532 = vmatprep.mubr.msk.f32.mxu1 %vm3916_vm0, %v6196_v44 }
 0x233   :  { %v1629_v43 = vsel %vm57_vm1, %v1504_v59, %v1579_v45  ;;  %v1403_v8 = vsel %vm57_vm1, %v1229_v41, %v6203_v11  ;;  %v6216_v11 = vld [vmem:[#allocation15_spill] sm:$0xff] }
 0x235   :  { %3533 = vmatmul.mubr.msk.f32.gmra.mrb[122].mxu1 %vm1428_vm10, %v1629_v43 }
 0x236   :  { %v1233_v49 = vpop.permute.xlu1 %1232  ;;  %v1231_v53 = vpop.permute.xlu0 %1230 }
 0x237   :  { %v1404_v37 = vsel %vm57_vm1, %v1231_v53, %v6204_v15  ;;  %v1405_v23 = vsel %vm57_vm1, %v1233_v49, %v6205_v58  ;;  %v6213_v53 = vld [vmem:[#allocation12_spill] sm:$0xff] }
 0x23a   :  { %v1237_v54 = vpop.permute.xlu1 %1236  ;;  %v1235_v57 = vpop.permute.xlu0 %1234 }
 0x23b   :  { %v1406_v2 = vsel %vm57_vm1, %v1235_v57, %v6206_v21  ;;  %v1407_v27 = vsel %vm57_vm1, %v1237_v54, %v6207_v40  ;;  %v6214_v57 = vld [vmem:[#allocation13_spill] sm:$0xff] }
 0x23e   :  { %v1241_v61 = vpop.permute.xlu1 %1240  ;;  %v1239_v7 = vpop.permute.xlu0 %1238 }
 0x23f   :  { %v1408_v52 = vsel %vm57_vm1, %v1239_v7, %v6208_v48  ;;  %v1409_v38 = vsel %vm57_vm1, %v1241_v61, %v6209_v13  ;;  %v6222_v48 = vld [vmem:[#allocation21_spill] sm:$0xff]  ;;  %v6224_v13 = vld [vmem:[#allocation24_spill] sm:$0xff] }
 0x242   :  { %v1245_v6 = vpop.permute.xlu1 %1244  ;;  %v1243_v10 = vpop.permute.xlu0 %1242 }
 0x243   :  { %v1410_v22 = vsel %vm57_vm1, %v1243_v10, %v6210_v16  ;;  %v1411_v47 = vsel %vm57_vm1, %v1245_v6, %v6211_v30 }
 0x246   :  { %v1249_v32 = vpop.permute.xlu1 %1248  ;;  %v1247_v35 = vpop.permute.xlu0 %1246 }
 0x247   :  { %v1412_v59 = vsel %vm57_vm1, %v1247_v35, %v6212_v63  ;;  %v1413_v54 = vsel %vm57_vm1, %v1249_v32, %v6213_v53  ;;  %v6215_v32 = vld [vmem:[#allocation14_spill] sm:$0xff] }
 0x24a   :  { %v5151_v50 = vpop.permute.xlu1 %1252  ;;  %v1251_v0 = vpop.permute.xlu0 %1250 }
 0x24b   :  { %v1414_v61 = vsel %vm57_vm1, %v1251_v0, %v6214_v57  ;;  %v1415_v0 = vsel %vm57_vm1, %v5151_v50, %v6215_v32  ;;  %v6217_v50 = vld [vmem:[#allocation16_spill] sm:$0xff] }
 0x24e   :  { %v5153_v1 = vpop.permute.xlu1 %1256  ;;  %v5155_v17 = vpop.permute.xlu0 %1254 }
 0x252   :  { %v5157_v31 = vpop.permute.xlu1 %1260  ;;  %v5159_v39 = vpop.permute.xlu0 %1258 }
 0x256   :  { %v5161_v14 = vpop.permute.xlu1 %1264  ;;  %v5163_v36 = vpop.permute.xlu0 %1262 }
 0x25a   :  { %v5165_v55 = vpop.permute.xlu1 %1268  ;;  %v5167_v28 = vpop.permute.xlu0 %1266 }
 0x25e   :  { %v5169_v12 = vpop.permute.xlu1 %1272  ;;  %v5171_v20 = vpop.permute.xlu0 %1270 }
 0x262   :  { %v5173_v24 = vpop.permute.xlu1 %1276  ;;  %v5175_v42 = vpop.permute.xlu0 %1274 }
 0x266   :  { %v1331_v46 = vpop.permute.xlu1 %1330  ;;  %v1329_v18 = vpop.permute.xlu0 %1328 }
 0x267   :  { %v1430_v51 = vsel %vm1428_vm10, %v1404_v37, %v1331_v46  ;;  %v1429_v62 = vsel %vm1428_vm10, %v1403_v8, %v1329_v18  ;;  %v1416_v8 = vsel %vm57_vm1, %v5155_v17, %v6216_v11  ;;  %v1417_v17 = vsel %vm57_vm1, %v5153_v1, %v6217_v50  ;;  %v6219_v1 = vld [vmem:[#allocation18_spill] sm:$0xff] }
 0x268   :  { %1456 = vst.msk [vmem:[%s6129_s8 + $0x8] sm:$0xff] %vm1454_vm11, %v1430_v51  ;;  %1455 = vst.msk [vmem:[%s6129_s8] sm:$0xff] %vm1454_vm11, %v1429_v62  ;;  %v6218_v51 = vld [vmem:[#allocation17_spill] sm:$0xff] }
 0x269   :  { %v1418_v62 = vsel %vm57_vm1, %v5159_v39, %v6218_v51  ;;  %v1419_v39 = vsel %vm57_vm1, %v5157_v31, %v6219_v1  ;;  %v6221_v31 = vld [vmem:[#allocation20_spill] sm:$0xff] }
 0x26a   :  { %v1335_v3 = vpop.permute.xlu1 %1334  ;;  %v1333_v25 = vpop.permute.xlu0 %1332 }
 0x26b   :  { %v1432_v29 = vsel %vm1428_vm10, %v1406_v2, %v1335_v3  ;;  %v1431_v33 = vsel %vm1428_vm10, %v1405_v23, %v1333_v25  ;;  %v6220_v3 = vld [vmem:[#allocation19_spill] sm:$0xff] }
 0x26c   :  { %1458 = vst.msk [vmem:[%s6129_s8 + $0x18] sm:$0xff] %vm1454_vm11, %v1432_v29  ;;  %1457 = vst.msk [vmem:[%s6129_s8 + $0x10] sm:$0xff] %vm1454_vm11, %v1431_v33  ;;  %v1420_v25 = vsel %vm57_vm1, %v5163_v36, %v6220_v3  ;;  %v1421_v36 = vsel %vm57_vm1, %v5161_v14, %v6221_v31  ;;  %v6223_v14 = vld [vmem:[#allocation23_spill] sm:$0xff] }
 0x26e   :  { %v1339_v56 = vpop.permute.xlu1 %1338  ;;  %v1337_v60 = vpop.permute.xlu0 %1336 }
 0x26f   :  { %v1434_v5 = vsel %vm1428_vm10, %v1408_v52, %v1339_v56  ;;  %v1433_v9 = vsel %vm1428_vm10, %v1407_v27, %v1337_v60  ;;  %v1422_v52 = vsel %vm57_vm1, %v5167_v28, %v6222_v48  ;;  %v1423_v28 = vsel %vm57_vm1, %v5165_v55, %v6223_v14  ;;  %v6225_v55 = vld [vmem:[#allocation26_spill] sm:$0xff] }
 0x270   :  { %1460 = vst.msk [vmem:[%s6129_s8 + $0x28] sm:$0xff] %vm1454_vm11, %v1434_v5  ;;  %1459 = vst.msk [vmem:[%s6129_s8 + $0x20] sm:$0xff] %vm1454_vm11, %v1433_v9 }
 0x272   :  { %v1343_v26 = vpop.permute.xlu1 %1342  ;;  %v1341_v19 = vpop.permute.xlu0 %1340 }
 0x273   :  { %v1436_v4 = vsel %vm1428_vm10, %v1410_v22, %v1343_v26  ;;  %v1435_v34 = vsel %vm1428_vm10, %v1409_v38, %v1341_v19  ;;  %v1424_v38 = vsel %vm57_vm1, %v5171_v20, %v6224_v13  ;;  %v1425_v20 = vsel %vm57_vm1, %v5169_v12, %v6225_v55  ;;  %v6227_v12 = vld [vmem:[#allocation30_spill] sm:$0xff] }
 0x274   :  { %1462 = vst.msk [vmem:[%s6129_s8 + $0x38] sm:$0xff] %vm1454_vm11, %v1436_v4  ;;  %1461 = vst.msk [vmem:[%s6129_s8 + $0x30] sm:$0xff] %vm1454_vm11, %v1435_v34  ;;  %v6226_v4 = vld [vmem:[#allocation28_spill] sm:$0xff] }
 0x275   :  { %v1426_v34 = vsel %vm57_vm1, %v5175_v42, %v6226_v4  ;;  %v1427_v42 = vsel %vm57_vm1, %v5173_v24, %v6227_v12 }
 0x276   :  { %v1347_v41 = vpop.permute.xlu1 %1346  ;;  %v1345_v45 = vpop.permute.xlu0 %1344 }
 0x277   :  { %v1438_v43 = vsel %vm1428_vm10, %v1412_v59, %v1347_v41  ;;  %v1437_v49 = vsel %vm1428_vm10, %v1411_v47, %v1345_v45 }
 0x278   :  { %1464 = vst.msk [vmem:[%s6129_s8 + $0x48] sm:$0xff] %vm1454_vm11, %v1438_v43  ;;  %1463 = vst.msk [vmem:[%s6129_s8 + $0x40] sm:$0xff] %vm1454_vm11, %v1437_v49  ;;  %v5368_v43 = vld [vmem:[%s6130_s4] ss:$0 sm:$0xff] }
 0x27a   :  { %v1351_v7 = vpop.permute.xlu1 %1350  ;;  %v1349_v6 = vpop.permute.xlu0 %1348 }
 0x27b   :  { %v1440_v10 = vsel %vm1428_vm10, %v1414_v61, %v1351_v7  ;;  %v1439_v35 = vsel %vm1428_vm10, %v1413_v54, %v1349_v6 }
 0x27c   :  { %1466 = vst.msk [vmem:[%s6129_s8 + $0x58] sm:$0xff] %vm1454_vm11, %v1440_v10  ;;  %1465 = vst.msk [vmem:[%s6129_s8 + $0x50] sm:$0xff] %vm1454_vm11, %v1439_v35 }
 0x27e   :  { %v1355_v15 = vpop.permute.xlu1 %1354  ;;  %v1353_v37 = vpop.permute.xlu0 %1352 }
 0x27f   :  { %v1442_v46 = vsel %vm1428_vm10, %v1416_v8, %v1355_v15  ;;  %v1441_v18 = vsel %vm1428_vm10, %v1415_v0, %v1353_v37 }
 0x280   :  { %1468 = vst.msk [vmem:[%s6129_s8 + $0x68] sm:$0xff] %vm1454_vm11, %v1442_v46  ;;  %1467 = vst.msk [vmem:[%s6129_s8 + $0x60] sm:$0xff] %vm1454_vm11, %v1441_v18 }
 0x282   :  { %v1359_v58 = vpop.permute.xlu1 %1358  ;;  %v1357_v23 = vpop.permute.xlu0 %1356 }
 0x283   :  { %v1444_v21 = vsel %vm1428_vm10, %v1418_v62, %v1359_v58  ;;  %v1443_v2 = vsel %vm1428_vm10, %v1417_v17, %v1357_v23 }
 0x284   :  { %1470 = vst.msk [vmem:[%s6129_s8 + $0x78] sm:$0xff] %vm1454_vm11, %v1444_v21  ;;  %1469 = vst.msk [vmem:[%s6129_s8 + $0x70] sm:$0xff] %vm1454_vm11, %v1443_v2 }
 0x286   :  { %v1363_v29 = vpop.permute.xlu1 %1362  ;;  %v1361_v33 = vpop.permute.xlu0 %1360 }
 0x287   :  { %v1446_v40 = vsel %vm1428_vm10, %v1420_v25, %v1363_v29  ;;  %v1445_v27 = vsel %vm1428_vm10, %v1419_v39, %v1361_v33 }
 0x288   :  { %1472 = vst.msk [vmem:[%s6129_s8 + $0x88] sm:$0xff] %vm1454_vm11, %v1446_v40  ;;  %1471 = vst.msk [vmem:[%s6129_s8 + $0x80] sm:$0xff] %vm1454_vm11, %v1445_v27 }
 0x28a   :  { %v1367_v56 = vpop.permute.xlu1 %1366  ;;  %v1365_v60 = vpop.permute.xlu0 %1364 }
 0x28b   :  { %v1448_v5 = vsel %vm1428_vm10, %v1422_v52, %v1367_v56  ;;  %v1447_v9 = vsel %vm1428_vm10, %v1421_v36, %v1365_v60 }
 0x28c   :  { %1474 = vst.msk [vmem:[%s6129_s8 + $0x98] sm:$0xff] %vm1454_vm11, %v1448_v5  ;;  %1473 = vst.msk [vmem:[%s6129_s8 + $0x90] sm:$0xff] %vm1454_vm11, %v1447_v9 }
 0x28e   :  { %v1371_v16 = vpop.permute.xlu1 %1370  ;;  %v1369_v22 = vpop.permute.xlu0 %1368 }
 0x28f   :  { %v1450_v26 = vsel %vm1428_vm10, %v1424_v38, %v1371_v16  ;;  %v1449_v19 = vsel %vm1428_vm10, %v1423_v28, %v1369_v22 }
 0x290   :  { %1476 = vst.msk [vmem:[%s6129_s8 + $0xa8] sm:$0xff] %vm1454_vm11, %v1450_v26  ;;  %1475 = vst.msk [vmem:[%s6129_s8 + $0xa0] sm:$0xff] %vm1454_vm11, %v1449_v19 }
 0x292   :  { %v1375_v30 = vpop.permute.xlu1 %1374  ;;  %v1373_v47 = vpop.permute.xlu0 %1372 }
 0x293   :  { %v1452_v63 = vsel %vm1428_vm10, %v1426_v34, %v1375_v30  ;;  %v1451_v59 = vsel %vm1428_vm10, %v1425_v20, %v1373_v47 }
 0x294   :  { %1478 = vst.msk [vmem:[%s6129_s8 + $0xb8] sm:$0xff] %vm1454_vm11, %v1452_v63  ;;  %1477 = vst.msk [vmem:[%s6129_s8 + $0xb0] sm:$0xff] %vm1454_vm11, %v1451_v59 }
 0x296   :  { %v1377_v41 = vpop.permute.xlu0 %1376 }
 0x297   :  { %v1453_v45 = vsel %vm1428_vm10, %v1427_v42, %v1377_v41 }
 0x298   :  { %1479 = vst.msk [vmem:[%s6129_s8 + $0xc0] sm:$0xff] %vm1454_vm11, %v1453_v45 }
 0x2a8   :  { %v1786_v49 = vpop.f32.mrb[74].mxu1 }
 0x2a9   :  { %v1787_v53 = vadd.f32 %v5368_v43, %v1786_v49  ;;  %v3462_v54 = vpop.f32.mrb[75].mxu1 }
 0x2ab   :  { %v2970_v57 = vmul.f32 -1.442695, %v1787_v53 }
 0x2ac   :  { %v1791_v61 = vpop.f32.mrb[76].mxu1 }
 0x2ad   :  { %3714 = vpow2.f32 %v2970_v57  ;;  %v1792_v24 = vadd.f32 %v5368_v43, %v1791_v61  ;;  %v3465_v7 = vpop.f32.mrb[77].mxu1 }
 0x2af   :  { %v2971_v6 = vmul.f32 -1.442695, %v1792_v24 }
 0x2b0   :  { %v1796_v10 = vpop.f32.mrb[78].mxu1 }
 0x2b1   :  { %3716 = vpow2.f32 %v2971_v6  ;;  %v1797_v35 = vadd.f32 %v5368_v43, %v1796_v10  ;;  %v3468_v32 = vpop.f32.mrb[79].mxu1 }
 0x2b3   :  { %v2972_v0 = vmul.f32 -1.442695, %v1797_v35 }
 0x2b4   :  { %v1801_v11 = vpop.f32.mrb[80].mxu1 }
 0x2b5   :  { %3718 = vpow2.f32 %v2972_v0  ;;  %v5374_v8 = vadd.f32 %v5368_v43, %v1801_v11  ;;  %v3471_v15 = vpop.f32.mrb[81].mxu1 }
 0x2b7   :  { %v3715_v37 = vpop.eup %3714  ;;  %v2973_v46 = vmul.f32 -1.442695, %v5374_v8 }
 0x2b8   :  { %v1985_v18 = vadd.f32 1.0, %v3715_v37  ;;  %v1806_v50 = vpop.f32.mrb[82].mxu1 }
 0x2b9   :  { %3720 = vpow2.f32 %v2973_v46  ;;  %v5378_v17 = vadd.f32 %v5368_v43, %v1806_v50  ;;  %v3474_v51 = vpop.f32.mrb[83].mxu1 }
 0x2ba   :  { %3722 = vrcp.f32 %v1985_v18 }
 0x2bb   :  { %v3717_v62 = vpop.eup %3716  ;;  %v2974_v58 = vmul.f32 -1.442695, %v5378_v17 }
 0x2bc   :  { %v1986_v23 = vadd.f32 1.0, %v3717_v62  ;;  %v1811_v21 = vpop.f32.mrb[84].mxu1 }
 0x2bd   :  { %3724 = vpow2.f32 %v2974_v58  ;;  %v5382_v2 = vadd.f32 %v5368_v43, %v1811_v21  ;;  %v3477_v1 = vpop.f32.mrb[85].mxu1 }
 0x2be   :  { %3726 = vrcp.f32 %v1986_v23 }
 0x2bf   :  { %v3719_v39 = vpop.eup %3718  ;;  %v2975_v3 = vmul.f32 -1.442695, %v5382_v2 }
 0x2c0   :  { %v1987_v25 = vadd.f32 1.0, %v3719_v39  ;;  %v1816_v29 = vpop.f32.mrb[86].mxu1 }
 0x2c1   :  { %3728 = vpow2.f32 %v2975_v3  ;;  %v5386_v33 = vadd.f32 %v5368_v43, %v1816_v29  ;;  %v3480_v40 = vpop.f32.mrb[87].mxu1 }
 0x2c2   :  { %3730 = vrcp.f32 %v1987_v25 }
 0x2c3   :  { %v3721_v27 = vpop.eup %3720  ;;  %v2976_v31 = vmul.f32 -1.442695, %v5386_v33 }
 0x2c4   :  { %v3723_v36 = vpop.eup %3722  ;;  %v1988_v48 = vadd.f32 1.0, %v3721_v27  ;;  %v1821_v52 = vpop.f32.mrb[88].mxu1 }
 0x2c5   :  { %v2060_v56 = vmul.f32 %v3723_v36, %v1787_v53  ;;  %3732 = vpow2.f32 %v2976_v31  ;;  %v5390_v60 = vadd.f32 %v5368_v43, %v1821_v52  ;;  %v3483_v5 = vpop.f32.mrb[89].mxu1 }
 0x2c6   :  { %3734 = vrcp.f32 %v1988_v48 }
 0x2c7   :  { %v3725_v9 = vpop.eup %3724  ;;  %v2977_v14 = vmul.f32 -1.442695, %v5390_v60  ;;  %3544 = vmatmul.mubr.msk.f32.vlgmr.msra.gmra.mrb[76].mxu0 %vm57_vm1, %v2060_v56 }
 0x2c8   :  { %v3727_v28 = vpop.eup %3726  ;;  %v1989_v13 = vadd.f32 1.0, %v3725_v9  ;;  %v1826_v38 = vpop.f32.mrb[90].mxu1  ;;  %3546 = vmatprep.mubr.msk.f32.mxu0 %vm3916_vm0, %v6196_v44 }
 0x2c9   :  { %v2061_v16 = vmul.f32 %v3727_v28, %v1792_v24  ;;  %3736 = vpow2.f32 %v2977_v14  ;;  %v5397_v22 = vadd.f32 %v5368_v43, %v1826_v38  ;;  %v3486_v26 = vpop.f32.mrb[91].mxu1 }
 0x2ca   :  { %3738 = vrcp.f32 %v1989_v13 }
 0x2cb   :  { %v3729_v19 = vpop.eup %3728  ;;  %v2978_v55 = vmul.f32 -1.442695, %v5397_v22  ;;  %3547 = vmatmul.mubr.msk.f32.gmra.mrb[78].mxu0 %vm57_vm1, %v2061_v16 }
 0x2cc   :  { %v3731_v20 = vpop.eup %3730  ;;  %v1990_v4 = vadd.f32 1.0, %v3729_v19  ;;  %v1831_v34 = vpop.f32.mrb[92].mxu1  ;;  %3549 = vmatprep.mubr.msk.f32.mxu0 %vm3916_vm0, %v6196_v44 }
 0x2cd   :  { %v2062_v30 = vmul.f32 %v3731_v20, %v1797_v35  ;;  %3740 = vpow2.f32 %v2978_v55  ;;  %v5404_v47 = vadd.f32 %v5368_v43, %v1831_v34  ;;  %v3489_v63 = vpop.f32.mrb[93].mxu1 }
 0x2ce   :  { %3742 = vrcp.f32 %v1990_v4 }
 0x2cf   :  { %v3733_v59 = vpop.eup %3732  ;;  %v2979_v12 = vmul.f32 -1.442695, %v5404_v47  ;;  %3550 = vmatmul.mubr.msk.f32.gmra.mrb[80].mxu0 %vm57_vm1, %v2062_v30 }
 0x2d0   :  { %v3735_v42 = vpop.eup %3734  ;;  %v1991_v41 = vadd.f32 1.0, %v3733_v59  ;;  %v1836_v45 = vpop.f32.mrb[94].mxu1  ;;  %3552 = vmatprep.mubr.msk.f32.mxu0 %vm3916_vm0, %v6196_v44 }
 0x2d1   :  { %v2063_v49 = vmul.f32 %v3735_v42, %v5374_v8  ;;  %3744 = vpow2.f32 %v2979_v12  ;;  %v5412_v53 = vadd.f32 %v5368_v43, %v1836_v45  ;;  %v3492_v54 = vpop.f32.mrb[95].mxu1 }
 0x2d2   :  { %3746 = vrcp.f32 %v1991_v41 }
 0x2d3   :  { %v3737_v57 = vpop.eup %3736  ;;  %v2980_v61 = vmul.f32 -1.442695, %v5412_v53  ;;  %3553 = vmatmul.mubr.msk.f32.gmra.mrb[82].mxu0 %vm57_vm1, %v2063_v49 }
 0x2d4   :  { %v3739_v24 = vpop.eup %3738  ;;  %v1992_v7 = vadd.f32 1.0, %v3737_v57  ;;  %v1841_v6 = vpop.f32.mrb[96].mxu1  ;;  %3555 = vmatprep.mubr.msk.f32.mxu0 %vm3916_vm0, %v6196_v44 }
 0x2d5   :  { %v2064_v10 = vmul.f32 %v3739_v24, %v5378_v17  ;;  %3748 = vpow2.f32 %v2980_v61  ;;  %v5420_v35 = vadd.f32 %v5368_v43, %v1841_v6  ;;  %v3495_v32 = vpop.f32.mrb[97].mxu1 }
 0x2d6   :  { %3750 = vrcp.f32 %v1992_v7 }
 0x2d7   :  { %v3741_v0 = vpop.eup %3740  ;;  %v2981_v11 = vmul.f32 -1.442695, %v5420_v35  ;;  %3556 = vmatmul.mubr.msk.f32.gmra.mrb[84].mxu0 %vm57_vm1, %v2064_v10 }
 0x2d8   :  { %v3743_v8 = vpop.eup %3742  ;;  %v1993_v15 = vadd.f32 1.0, %v3741_v0  ;;  %v1846_v37 = vpop.f32.mrb[98].mxu1  ;;  %3558 = vmatprep.mubr.msk.f32.mxu0 %vm3916_vm0, %v6196_v44 }
 0x2d9   :  { %v2065_v46 = vmul.f32 %v3743_v8, %v5382_v2  ;;  %3752 = vpow2.f32 %v2981_v11  ;;  %v5428_v18 = vadd.f32 %v5368_v43, %v1846_v37  ;;  %v3498_v50 = vpop.f32.mrb[99].mxu1 }
 0x2da   :  { %3754 = vrcp.f32 %v1993_v15 }
 0x2db   :  { %v3745_v17 = vpop.eup %3744  ;;  %v2982_v51 = vmul.f32 -1.442695, %v5428_v18  ;;  %3559 = vmatmul.mubr.msk.f32.gmra.mrb[86].mxu0 %vm57_vm1, %v2065_v46 }
 0x2dc   :  { %v3747_v62 = vpop.eup %3746  ;;  %v1994_v58 = vadd.f32 1.0, %v3745_v17  ;;  %v1851_v23 = vpop.f32.mrb[100].mxu1  ;;  %3561 = vmatprep.mubr.msk.f32.mxu0 %vm3916_vm0, %v6196_v44 }
 0x2dd   :  { %v2066_v21 = vmul.f32 %v3747_v62, %v5386_v33  ;;  %3756 = vpow2.f32 %v2982_v51  ;;  %v5436_v2 = vadd.f32 %v5368_v43, %v1851_v23  ;;  %v3501_v1 = vpop.f32.mrb[101].mxu1 }
 0x2de   :  { %3758 = vrcp.f32 %v1994_v58 }
 0x2df   :  { %v3749_v39 = vpop.eup %3748  ;;  %v2983_v3 = vmul.f32 -1.442695, %v5436_v2  ;;  %3562 = vmatmul.mubr.msk.f32.gmra.mrb[88].mxu0 %vm57_vm1, %v2066_v21 }
 0x2e0   :  { %v3751_v25 = vpop.eup %3750  ;;  %v1995_v29 = vadd.f32 1.0, %v3749_v39  ;;  %v1856_v40 = vpop.f32.mrb[102].mxu1  ;;  %3564 = vmatprep.mubr.msk.f32.mxu0 %vm3916_vm0, %v6196_v44 }
 0x2e1   :  { %v2067_v27 = vmul.f32 %v3751_v25, %v5390_v60  ;;  %3760 = vpow2.f32 %v2983_v3  ;;  %v5444_v33 = vadd.f32 %v5368_v43, %v1856_v40  ;;  %v3504_v31 = vpop.f32.mrb[103].mxu1 }
 0x2e2   :  { %3762 = vrcp.f32 %v1995_v29 }
 0x2e3   :  { %v3753_v36 = vpop.eup %3752  ;;  %v2984_v48 = vmul.f32 -1.442695, %v5444_v33  ;;  %3565 = vmatmul.mubr.msk.f32.gmra.mrb[90].mxu0 %vm57_vm1, %v2067_v27 }
 0x2e4   :  { %v3755_v52 = vpop.eup %3754  ;;  %v1996_v56 = vadd.f32 1.0, %v3753_v36  ;;  %v1861_v5 = vpop.f32.mrb[104].mxu1  ;;  %3567 = vmatprep.mubr.msk.f32.mxu0 %vm3916_vm0, %v6196_v44 }
 0x2e5   :  { %v2068_v9 = vmul.f32 %v3755_v52, %v5397_v22  ;;  %3764 = vpow2.f32 %v2984_v48  ;;  %v5452_v60 = vadd.f32 %v5368_v43, %v1861_v5  ;;  %v3507_v14 = vpop.f32.mrb[105].mxu1 }
 0x2e6   :  { %3766 = vrcp.f32 %v1996_v56 }
 0x2e7   :  { %v3757_v28 = vpop.eup %3756  ;;  %v2985_v13 = vmul.f32 -1.442695, %v5452_v60  ;;  %3568 = vmatmul.mubr.msk.f32.gmra.mrb[92].mxu0 %vm57_vm1, %v2068_v9 }
 0x2e8   :  { %v3759_v38 = vpop.eup %3758  ;;  %v1997_v16 = vadd.f32 1.0, %v3757_v28  ;;  %v1866_v26 = vpop.f32.mrb[106].mxu1  ;;  %3570 = vmatprep.mubr.msk.f32.mxu0 %vm3916_vm0, %v6196_v44 }
 0x2e9   :  { %v2069_v19 = vmul.f32 %v3759_v38, %v5404_v47  ;;  %3768 = vpow2.f32 %v2985_v13  ;;  %v5460_v22 = vadd.f32 %v5368_v43, %v1866_v26  ;;  %v3510_v55 = vpop.f32.mrb[107].mxu1 }
 0x2ea   :  { %3770 = vrcp.f32 %v1997_v16 }
 0x2eb   :  { %v3761_v20 = vpop.eup %3760  ;;  %v2986_v4 = vmul.f32 -1.442695, %v5460_v22  ;;  %3571 = vmatmul.mubr.msk.f32.gmra.mrb[94].mxu0 %vm57_vm1, %v2069_v19 }
 0x2ec   :  { %v3763_v34 = vpop.eup %3762  ;;  %v1998_v30 = vadd.f32 1.0, %v3761_v20  ;;  %v1871_v63 = vpop.f32.mrb[108].mxu1  ;;  %3573 = vmatprep.mubr.msk.f32.mxu0 %vm3916_vm0, %v6196_v44 }
 0x2ed   :  { %v2070_v59 = vmul.f32 %v3763_v34, %v5412_v53  ;;  %3772 = vpow2.f32 %v2986_v4  ;;  %v5468_v47 = vadd.f32 %v5368_v43, %v1871_v63  ;;  %v3513_v12 = vpop.f32.mrb[109].mxu1 }
 0x2ee   :  { %3774 = vrcp.f32 %v1998_v30 }
 0x2ef   :  { %v3765_v42 = vpop.eup %3764  ;;  %v2987_v41 = vmul.f32 -1.442695, %v5468_v47  ;;  %3574 = vmatmul.mubr.msk.f32.gmra.mrb[96].mxu0 %vm57_vm1, %v2070_v59 }
 0x2f0   :  { %v3767_v45 = vpop.eup %3766  ;;  %v1999_v49 = vadd.f32 1.0, %v3765_v42  ;;  %v1876_v54 = vpop.f32.mrb[110].mxu1  ;;  %3576 = vmatprep.mubr.msk.f32.mxu0 %vm3916_vm0, %v6196_v44 }
 0x2f1   :  { %v2071_v57 = vmul.f32 %v3767_v45, %v5420_v35  ;;  %3776 = vpow2.f32 %v2987_v41  ;;  %v5476_v53 = vadd.f32 %v5368_v43, %v1876_v54  ;;  %v3516_v61 = vpop.f32.mrb[111].mxu1 }
 0x2f2   :  { %3778 = vrcp.f32 %v1999_v49 }
 0x2f3   :  { %v3769_v24 = vpop.eup %3768  ;;  %v2988_v7 = vmul.f32 -1.442695, %v5476_v53  ;;  %3577 = vmatmul.mubr.msk.f32.gmra.mrb[98].mxu0 %vm57_vm1, %v2071_v57 }
 0x2f4   :  { %v3771_v6 = vpop.eup %3770  ;;  %v2000_v10 = vadd.f32 1.0, %v3769_v24  ;;  %v1881_v32 = vpop.f32.mrb[112].mxu1  ;;  %3579 = vmatprep.mubr.msk.f32.mxu0 %vm3916_vm0, %v6196_v44 }
 0x2f5   :  { %v2072_v0 = vmul.f32 %v3771_v6, %v5428_v18  ;;  %3780 = vpow2.f32 %v2988_v7  ;;  %v5484_v35 = vadd.f32 %v5368_v43, %v1881_v32  ;;  %v3519_v11 = vpop.f32.mrb[113].mxu1 }
 0x2f6   :  { %3782 = vrcp.f32 %v2000_v10 }
 0x2f7   :  { %v3773_v8 = vpop.eup %3772  ;;  %v2989_v15 = vmul.f32 -1.442695, %v5484_v35  ;;  %3580 = vmatmul.mubr.msk.f32.gmra.mrb[100].mxu0 %vm57_vm1, %v2072_v0 }
 0x2f8   :  { %v3775_v37 = vpop.eup %3774  ;;  %v2001_v46 = vadd.f32 1.0, %v3773_v8  ;;  %v1886_v50 = vpop.f32.mrb[114].mxu1  ;;  %3582 = vmatprep.mubr.msk.f32.mxu0 %vm3916_vm0, %v6196_v44  ;;  %v5547_v8 = vld [vmem:[%s6131_s6] ss:$0 sm:$0xff] }
 0x2f9   :  { %v2073_v17 = vmul.f32 %v3775_v37, %v5436_v2  ;;  %3784 = vpow2.f32 %v2989_v15  ;;  %v5492_v18 = vadd.f32 %v5368_v43, %v1886_v50  ;;  %v3522_v51 = vpop.f32.mrb[115].mxu1 }
 0x2fa   :  { %3786 = vrcp.f32 %v2001_v46 }
 0x2fb   :  { %v3777_v62 = vpop.eup %3776  ;;  %v2990_v58 = vmul.f32 -1.442695, %v5492_v18  ;;  %3583 = vmatmul.mubr.msk.f32.gmra.mrb[102].mxu0 %vm57_vm1, %v2073_v17 }
 0x2fc   :  { %v3779_v23 = vpop.eup %3778  ;;  %v2002_v21 = vadd.f32 1.0, %v3777_v62  ;;  %v1891_v1 = vpop.f32.mrb[116].mxu1  ;;  %3585 = vmatprep.mubr.msk.f32.mxu0 %vm3916_vm0, %v6196_v44 }
 0x2fd   :  { %v2074_v39 = vmul.f32 %v3779_v23, %v5444_v33  ;;  %3788 = vpow2.f32 %v2990_v58  ;;  %v5500_v2 = vadd.f32 %v5368_v43, %v1891_v1  ;;  %v3525_v3 = vpop.f32.mrb[117].mxu1 }
 0x2fe   :  { %3790 = vrcp.f32 %v2002_v21 }
 0x2ff   :  { %v3781_v25 = vpop.eup %3780  ;;  %v2991_v29 = vmul.f32 -1.442695, %v5500_v2  ;;  %3586 = vmatmul.mubr.msk.f32.gmra.mrb[104].mxu0 %vm57_vm1, %v2074_v39 }
 0x300   :  { %v3783_v40 = vpop.eup %3782  ;;  %v2003_v27 = vadd.f32 1.0, %v3781_v25  ;;  %v1896_v31 = vpop.f32.mrb[118].mxu1  ;;  %3588 = vmatprep.mubr.msk.f32.mxu0 %vm3916_vm0, %v6196_v44 }
 0x301   :  { %v2075_v36 = vmul.f32 %v3783_v40, %v5452_v60  ;;  %3792 = vpow2.f32 %v2991_v29  ;;  %v1897_v33 = vadd.f32 %v5368_v43, %v1896_v31  ;;  %v3528_v48 = vpop.f32.mrb[119].mxu1 }
 0x302   :  { %3794 = vrcp.f32 %v2003_v27 }
 0x303   :  { %v3785_v52 = vpop.eup %3784  ;;  %v2992_v56 = vmul.f32 -1.442695, %v1897_v33  ;;  %3589 = vmatmul.mubr.msk.f32.gmra.mrb[106].mxu0 %vm57_vm1, %v2075_v36 }
 0x304   :  { %v3787_v5 = vpop.eup %3786  ;;  %v2004_v9 = vadd.f32 1.0, %v3785_v52  ;;  %v1901_v14 = vpop.f32.mrb[120].mxu1  ;;  %3591 = vmatprep.mubr.msk.f32.mxu0 %vm3916_vm0, %v6196_v44 }
 0x305   :  { %v2076_v28 = vmul.f32 %v3787_v5, %v5460_v22  ;;  %3796 = vpow2.f32 %v2992_v56  ;;  %v1902_v60 = vadd.f32 %v5368_v43, %v1901_v14  ;;  %v3531_v13 = vpop.f32.mrb[121].mxu1 }
 0x306   :  { %3798 = vrcp.f32 %v2004_v9 }
 0x307   :  { %v3789_v38 = vpop.eup %3788  ;;  %v2993_v16 = vmul.f32 -1.442695, %v1902_v60  ;;  %3592 = vmatmul.mubr.msk.f32.gmra.mrb[108].mxu0 %vm57_vm1, %v2076_v28 }
 0x308   :  { %v3791_v26 = vpop.eup %3790  ;;  %v2005_v19 = vadd.f32 1.0, %v3789_v38  ;;  %v1906_v55 = vpop.f32.mrb[122].mxu1  ;;  %3594 = vmatprep.mubr.msk.f32.mxu0 %vm3916_vm0, %v6196_v44 }
 0x309   :  { %v2077_v20 = vmul.f32 %v3791_v26, %v5468_v47  ;;  %3800 = vpow2.f32 %v2993_v16  ;;  %v1907_v22 = vadd.f32 %v5368_v43, %v1906_v55  ;;  %v3534_v4 = vpop.f32.mrb[123].mxu1 }
 0x30a   :  { %3802 = vrcp.f32 %v2005_v19 }
 0x30b   :  { %v3793_v34 = vpop.eup %3792  ;;  %v2994_v30 = vmul.f32 -1.442695, %v1907_v22  ;;  %3595 = vmatmul.mubr.msk.f32.gmra.mrb[110].mxu0 %vm57_vm1, %v2077_v20 }
 0x30c   :  { %v3795_v63 = vpop.eup %3794  ;;  %v2006_v59 = vadd.f32 1.0, %v3793_v34  ;;  %3597 = vmatprep.mubr.msk.f32.mxu0 %vm3916_vm0, %v6196_v44 }
 0x30d   :  { %v2078_v12 = vmul.f32 %v3795_v63, %v5476_v53  ;;  %3804 = vpow2.f32 %v2994_v30 }
 0x30e   :  { %3806 = vrcp.f32 %v2006_v59 }
 0x30f   :  { %v3797_v42 = vpop.eup %3796  ;;  %3598 = vmatmul.mubr.msk.f32.gmra.mrb[112].mxu0 %vm57_vm1, %v2078_v12 }
 0x310   :  { %v3799_v47 = vpop.eup %3798  ;;  %v2007_v43 = vadd.f32 1.0, %v3797_v42  ;;  %3600 = vmatprep.mubr.msk.f32.mxu0 %vm3916_vm0, %v6196_v44 }
 0x311   :  { %v2079_v41 = vmul.f32 %v3799_v47, %v5484_v35 }
 0x312   :  { %3808 = vrcp.f32 %v2007_v43 }
 0x313   :  { %v3801_v45 = vpop.eup %3800  ;;  %3601 = vmatmul.mubr.msk.f32.gmra.mrb[114].mxu0 %vm57_vm1, %v2079_v41 }
 0x314   :  { %v3803_v49 = vpop.eup %3802  ;;  %v2008_v54 = vadd.f32 1.0, %v3801_v45  ;;  %3603 = vmatprep.mubr.msk.f32.mxu0 %vm3916_vm0, %v6196_v44 }
 0x315   :  { %v2080_v57 = vmul.f32 %v3803_v49, %v5492_v18 }
 0x316   :  { %3810 = vrcp.f32 %v2008_v54 }
 0x317   :  { %v3805_v53 = vpop.eup %3804  ;;  %3604 = vmatmul.mubr.msk.f32.gmra.mrb[116].mxu0 %vm57_vm1, %v2080_v57 }
 0x318   :  { %v3807_v61 = vpop.eup %3806  ;;  %v2009_v24 = vadd.f32 1.0, %v3805_v53  ;;  %3606 = vmatprep.mubr.msk.f32.mxu0 %vm3916_vm0, %v6196_v44 }
 0x319   :  { %v2081_v7 = vmul.f32 %v3807_v61, %v5500_v2 }
 0x31a   :  { %3812 = vrcp.f32 %v2009_v24 }
 0x31b   :  { %3607 = vmatmul.mubr.msk.f32.gmra.mrb[118].mxu0 %vm57_vm1, %v2081_v7 }
 0x31c   :  { %v3809_v6 = vpop.eup %3808  ;;  %3609 = vmatprep.mubr.msk.f32.mxu0 %vm3916_vm0, %v6196_v44 }
 0x31d   :  { %v2082_v10 = vmul.f32 %v3809_v6, %v1897_v33 }
 0x31f   :  { %3610 = vmatmul.mubr.msk.f32.gmra.mrb[120].mxu0 %vm57_vm1, %v2082_v10 }
 0x320   :  { %v3811_v32 = vpop.eup %3810  ;;  %3612 = vmatprep.mubr.msk.f32.mxu0 %vm3916_vm0, %v6196_v44 }
 0x321   :  { %v2083_v0 = vmul.f32 %v3811_v32, %v1902_v60 }
 0x323   :  { %3613 = vmatmul.mubr.msk.f32.gmra.mrb[122].mxu0 %vm57_vm1, %v2083_v0 }
 0x324   :  { %v3813_v35 = vpop.eup %3812  ;;  %3615 = vmatprep.mubr.msk.f32.mxu0 %vm3916_vm0, %v6196_v44 }
 0x325   :  { %v2084_v11 = vmul.f32 %v3813_v35, %v1907_v22 }
 0x327   :  { %3616 = vmatmul.mubr.msk.f32.gmra.mrb[124].mxu0 %vm57_vm1, %v2084_v11 }
 0x39a   :  { %v2237_v15 = vpop.f32.mrb[76].mxu0 }
 0x39b   :  { %v5550_v37 = vadd.f32 %v5547_v8, %v2237_v15  ;;  %v3545_v46 = vpop.f32.mrb[77].mxu0 }
 0x39d   :  { %v3021_v50 = vmul.f32 -1.442695, %v5550_v37  ;;  %2661 = vrot.lane.b32.xlu0 %v5550_v37, %s3919_s3  ;;  %2586 = vrot.lane.b32.xlu1 %v5550_v37, %s3915_s9 }
 0x39e   :  { %v2242_v44 = vpop.f32.mrb[78].mxu0 }
 0x39f   :  { %3814 = vpow2.f32 %v3021_v50  ;;  %v5558_v17 = vadd.f32 %v5547_v8, %v2242_v44  ;;  %v3548_v18 = vpop.f32.mrb[79].mxu0 }
 0x3a1   :  { %v3022_v51 = vmul.f32 -1.442695, %v5558_v17  ;;  %2663 = vrot.lane.b32.xlu1 %v5558_v17, %s3919_s3  ;;  %2588 = vrot.lane.b32.xlu0 %v5558_v17, %s3915_s9 }
 0x3a2   :  { %v2247_v62 = vpop.f32.mrb[80].mxu0 }
 0x3a3   :  { %3816 = vpow2.f32 %v3022_v51  ;;  %v5566_v58 = vadd.f32 %v5547_v8, %v2247_v62  ;;  %v3551_v23 = vpop.f32.mrb[81].mxu0 }
 0x3a5   :  { %v3023_v21 = vmul.f32 -1.442695, %v5566_v58  ;;  %2665 = vrot.lane.b32.xlu0 %v5566_v58, %s3919_s3  ;;  %2590 = vrot.lane.b32.xlu1 %v5566_v58, %s3915_s9 }
 0x3a6   :  { %v2252_v1 = vpop.f32.mrb[82].mxu0 }
 0x3a7   :  { %3818 = vpow2.f32 %v3023_v21  ;;  %v5574_v39 = vadd.f32 %v5547_v8, %v2252_v1  ;;  %v3554_v2 = vpop.f32.mrb[83].mxu0 }
 0x3a9   :  { %v3815_v3 = vpop.eup %3814  ;;  %v3024_v25 = vmul.f32 -1.442695, %v5574_v39  ;;  %2667 = vrot.lane.b32.xlu1 %v5574_v39, %s3919_s3  ;;  %2592 = vrot.lane.b32.xlu0 %v5574_v39, %s3915_s9 }
 0x3aa   :  { %v2436_v29 = vadd.f32 1.0, %v3815_v3  ;;  %v2257_v40 = vpop.f32.mrb[84].mxu0 }
 0x3ab   :  { %3820 = vpow2.f32 %v3024_v25  ;;  %v5582_v27 = vadd.f32 %v5547_v8, %v2257_v40  ;;  %v3557_v31 = vpop.f32.mrb[85].mxu0 }
 0x3ac   :  { %3822 = vrcp.f32 %v2436_v29 }
 0x3ad   :  { %v3817_v36 = vpop.eup %3816  ;;  %v3025_v33 = vmul.f32 -1.442695, %v5582_v27  ;;  %2669 = vrot.lane.b32.xlu0 %v5582_v27, %s3919_s3  ;;  %2594 = vrot.lane.b32.xlu1 %v5582_v27, %s3915_s9 }
 0x3ae   :  { %v2437_v48 = vadd.f32 1.0, %v3817_v36  ;;  %v2262_v52 = vpop.f32.mrb[86].mxu0 }
 0x3af   :  { %3824 = vpow2.f32 %v3025_v33  ;;  %v5590_v56 = vadd.f32 %v5547_v8, %v2262_v52  ;;  %v3560_v5 = vpop.f32.mrb[87].mxu0 }
 0x3b0   :  { %3826 = vrcp.f32 %v2437_v48 }
 0x3b1   :  { %v3819_v9 = vpop.eup %3818  ;;  %v3026_v14 = vmul.f32 -1.442695, %v5590_v56  ;;  %2671 = vrot.lane.b32.xlu1 %v5590_v56, %s3919_s3  ;;  %2596 = vrot.lane.b32.xlu0 %v5590_v56, %s3915_s9 }
 0x3b2   :  { %v2438_v28 = vadd.f32 1.0, %v3819_v9  ;;  %v2267_v60 = vpop.f32.mrb[88].mxu0 }
 0x3b3   :  { %3828 = vpow2.f32 %v3026_v14  ;;  %v5598_v13 = vadd.f32 %v5547_v8, %v2267_v60  ;;  %v3563_v38 = vpop.f32.mrb[89].mxu0 }
 0x3b4   :  { %3830 = vrcp.f32 %v2438_v28 }
 0x3b5   :  { %v3821_v16 = vpop.eup %3820  ;;  %v3027_v26 = vmul.f32 -1.442695, %v5598_v13  ;;  %2673 = vrot.lane.b32.xlu0 %v5598_v13, %s3919_s3  ;;  %2598 = vrot.lane.b32.xlu1 %v5598_v13, %s3915_s9 }
 0x3b6   :  { %v3823_v19 = vpop.eup %3822  ;;  %v2439_v55 = vadd.f32 1.0, %v3821_v16  ;;  %v2272_v20 = vpop.f32.mrb[90].mxu0 }
 0x3b7   :  { %v2511_v22 = vmul.f32 %v3823_v19, %v5550_v37  ;;  %3832 = vpow2.f32 %v3027_v26  ;;  %v5607_v4 = vadd.f32 %v5547_v8, %v2272_v20  ;;  %v3566_v34 = vpop.f32.mrb[91].mxu0 }
 0x3b8   :  { %3834 = vrcp.f32 %v2439_v55 }
 0x3b9   :  { %v3825_v30 = vpop.eup %3824  ;;  %2536 = vst.msk [vmem:[%s6132_s7] sm:$0xff] %vm57_vm1, %v2511_v22  ;;  %v3028_v63 = vmul.f32 -1.442695, %v5607_v4  ;;  %2675 = vrot.lane.b32.xlu1 %v5607_v4, %s3919_s3  ;;  %2600 = vrot.lane.b32.xlu0 %v5607_v4, %s3915_s9 }
 0x3ba   :  { %v3827_v59 = vpop.eup %3826  ;;  %v2440_v12 = vadd.f32 1.0, %v3825_v30  ;;  %v2277_v42 = vpop.f32.mrb[92].mxu0 }
 0x3bb   :  { %v2512_v47 = vmul.f32 %v3827_v59, %v5558_v17  ;;  %3836 = vpow2.f32 %v3028_v63  ;;  %v5620_v43 = vadd.f32 %v5547_v8, %v2277_v42  ;;  %v3569_v41 = vpop.f32.mrb[93].mxu0 }
 0x3bc   :  { %3838 = vrcp.f32 %v2440_v12 }
 0x3bd   :  { %v3829_v45 = vpop.eup %3828  ;;  %2537 = vst.msk [vmem:[%s6132_s7 + $0x8] sm:$0xff] %vm57_vm1, %v2512_v47  ;;  %v3029_v49 = vmul.f32 -1.442695, %v5620_v43  ;;  %2677 = vrot.lane.b32.xlu0 %v5620_v43, %s3919_s3  ;;  %2602 = vrot.lane.b32.xlu1 %v5620_v43, %s3915_s9 }
 0x3be   :  { %v3831_v54 = vpop.eup %3830  ;;  %v2441_v57 = vadd.f32 1.0, %v3829_v45  ;;  %v2282_v53 = vpop.f32.mrb[94].mxu0 }
 0x3bf   :  { %v2513_v61 = vmul.f32 %v3831_v54, %v5566_v58  ;;  %3840 = vpow2.f32 %v3029_v49  ;;  %v5633_v24 = vadd.f32 %v5547_v8, %v2282_v53  ;;  %v3572_v7 = vpop.f32.mrb[95].mxu0 }
 0x3c0   :  { %3842 = vrcp.f32 %v2441_v57 }
 0x3c1   :  { %v3833_v6 = vpop.eup %3832  ;;  %2538 = vst.msk [vmem:[%s6132_s7 + $0x10] sm:$0xff] %vm57_vm1, %v2513_v61  ;;  %v3030_v10 = vmul.f32 -1.442695, %v5633_v24  ;;  %2679 = vrot.lane.b32.xlu1 %v5633_v24, %s3919_s3  ;;  %2604 = vrot.lane.b32.xlu0 %v5633_v24, %s3915_s9 }
 0x3c2   :  { %v3835_v32 = vpop.eup %3834  ;;  %v2442_v0 = vadd.f32 1.0, %v3833_v6  ;;  %v2287_v35 = vpop.f32.mrb[96].mxu0 }
 0x3c3   :  { %v2514_v11 = vmul.f32 %v3835_v32, %v5574_v39  ;;  %3844 = vpow2.f32 %v3030_v10  ;;  %v5646_v15 = vadd.f32 %v5547_v8, %v2287_v35  ;;  %v3575_v46 = vpop.f32.mrb[97].mxu0 }
 0x3c4   :  { %3846 = vrcp.f32 %v2442_v0 }
 0x3c5   :  { %v3837_v50 = vpop.eup %3836  ;;  %2539 = vst.msk [vmem:[%s6132_s7 + $0x18] sm:$0xff] %vm57_vm1, %v2514_v11  ;;  %v3031_v44 = vmul.f32 -1.442695, %v5646_v15  ;;  %2681 = vrot.lane.b32.xlu0 %v5646_v15, %s3919_s3  ;;  %2606 = vrot.lane.b32.xlu1 %v5646_v15, %s3915_s9 }
 0x3c6   :  { %v3839_v18 = vpop.eup %3838  ;;  %v2443_v51 = vadd.f32 1.0, %v3837_v50  ;;  %v2292_v62 = vpop.f32.mrb[98].mxu0 }
 0x3c7   :  { %v2515_v23 = vmul.f32 %v3839_v18, %v5582_v27  ;;  %3848 = vpow2.f32 %v3031_v44  ;;  %v5659_v21 = vadd.f32 %v5547_v8, %v2292_v62  ;;  %v3578_v1 = vpop.f32.mrb[99].mxu0 }
 0x3c8   :  { %3850 = vrcp.f32 %v2443_v51 }
 0x3c9   :  { %v3841_v2 = vpop.eup %3840  ;;  %2540 = vst.msk [vmem:[%s6132_s7 + $0x20] sm:$0xff] %vm57_vm1, %v2515_v23  ;;  %v3032_v3 = vmul.f32 -1.442695, %v5659_v21  ;;  %2683 = vrot.lane.b32.xlu1 %v5659_v21, %s3919_s3  ;;  %2608 = vrot.lane.b32.xlu0 %v5659_v21, %s3915_s9 }
 0x3ca   :  { %v3843_v25 = vpop.eup %3842  ;;  %v2444_v29 = vadd.f32 1.0, %v3841_v2  ;;  %v2297_v40 = vpop.f32.mrb[100].mxu0 }
 0x3cb   :  { %v2516_v31 = vmul.f32 %v3843_v25, %v5590_v56  ;;  %3852 = vpow2.f32 %v3032_v3  ;;  %v5672_v36 = vadd.f32 %v5547_v8, %v2297_v40  ;;  %v3581_v33 = vpop.f32.mrb[101].mxu0 }
 0x3cc   :  { %3854 = vrcp.f32 %v2444_v29 }
 0x3cd   :  { %v3845_v48 = vpop.eup %3844  ;;  %2541 = vst.msk [vmem:[%s6132_s7 + $0x28] sm:$0xff] %vm57_vm1, %v2516_v31  ;;  %v3033_v52 = vmul.f32 -1.442695, %v5672_v36  ;;  %2685 = vrot.lane.b32.xlu0 %v5672_v36, %s3919_s3  ;;  %2610 = vrot.lane.b32.xlu1 %v5672_v36, %s3915_s9 }
 0x3ce   :  { %v3847_v5 = vpop.eup %3846  ;;  %v2445_v9 = vadd.f32 1.0, %v3845_v48  ;;  %v2302_v14 = vpop.f32.mrb[102].mxu0 }
 0x3cf   :  { %v2517_v28 = vmul.f32 %v3847_v5, %v5598_v13  ;;  %3856 = vpow2.f32 %v3033_v52  ;;  %v5685_v60 = vadd.f32 %v5547_v8, %v2302_v14  ;;  %v3584_v38 = vpop.f32.mrb[103].mxu0 }
 0x3d0   :  { %3858 = vrcp.f32 %v2445_v9 }
 0x3d1   :  { %v3849_v16 = vpop.eup %3848  ;;  %2542 = vst.msk [vmem:[%s6132_s7 + $0x30] sm:$0xff] %vm57_vm1, %v2517_v28  ;;  %v3034_v26 = vmul.f32 -1.442695, %v5685_v60  ;;  %2687 = vrot.lane.b32.xlu1 %v5685_v60, %s3919_s3  ;;  %2612 = vrot.lane.b32.xlu0 %v5685_v60, %s3915_s9 }
 0x3d2   :  { %v3851_v19 = vpop.eup %3850  ;;  %v2446_v55 = vadd.f32 1.0, %v3849_v16  ;;  %v2307_v20 = vpop.f32.mrb[104].mxu0 }
 0x3d3   :  { %v2518_v22 = vmul.f32 %v3851_v19, %v5607_v4  ;;  %3860 = vpow2.f32 %v3034_v26  ;;  %v5698_v34 = vadd.f32 %v5547_v8, %v2307_v20  ;;  %v3587_v30 = vpop.f32.mrb[105].mxu0 }
 0x3d4   :  { %3862 = vrcp.f32 %v2446_v55 }
 0x3d5   :  { %v3853_v63 = vpop.eup %3852  ;;  %2543 = vst.msk [vmem:[%s6132_s7 + $0x38] sm:$0xff] %vm57_vm1, %v2518_v22  ;;  %v3035_v59 = vmul.f32 -1.442695, %v5698_v34  ;;  %2689 = vrot.lane.b32.xlu0 %v5698_v34, %s3919_s3  ;;  %2614 = vrot.lane.b32.xlu1 %v5698_v34, %s3915_s9 }
 0x3d6   :  { %v3855_v12 = vpop.eup %3854  ;;  %v2447_v42 = vadd.f32 1.0, %v3853_v63  ;;  %v2312_v47 = vpop.f32.mrb[106].mxu0 }
 0x3d7   :  { %v2519_v41 = vmul.f32 %v3855_v12, %v5620_v43  ;;  %3864 = vpow2.f32 %v3035_v59  ;;  %v5711_v45 = vadd.f32 %v5547_v8, %v2312_v47  ;;  %v3590_v49 = vpop.f32.mrb[107].mxu0 }
 0x3d8   :  { %3866 = vrcp.f32 %v2447_v42 }
 0x3d9   :  { %v3857_v54 = vpop.eup %3856  ;;  %2544 = vst.msk [vmem:[%s6132_s7 + $0x40] sm:$0xff] %vm57_vm1, %v2519_v41  ;;  %v3036_v57 = vmul.f32 -1.442695, %v5711_v45  ;;  %2691 = vrot.lane.b32.xlu1 %v5711_v45, %s3919_s3  ;;  %2616 = vrot.lane.b32.xlu0 %v5711_v45, %s3915_s9 }
 0x3da   :  { %v3859_v53 = vpop.eup %3858  ;;  %v2448_v61 = vadd.f32 1.0, %v3857_v54  ;;  %v2317_v7 = vpop.f32.mrb[108].mxu0 }
 0x3db   :  { %v2520_v6 = vmul.f32 %v3859_v53, %v5633_v24  ;;  %3868 = vpow2.f32 %v3036_v57  ;;  %v5724_v10 = vadd.f32 %v5547_v8, %v2317_v7  ;;  %v3593_v32 = vpop.f32.mrb[109].mxu0 }
 0x3dc   :  { %3870 = vrcp.f32 %v2448_v61 }
 0x3dd   :  { %v3861_v0 = vpop.eup %3860  ;;  %2545 = vst.msk [vmem:[%s6132_s7 + $0x48] sm:$0xff] %vm57_vm1, %v2520_v6  ;;  %v3037_v35 = vmul.f32 -1.442695, %v5724_v10  ;;  %2693 = vrot.lane.b32.xlu0 %v5724_v10, %s3919_s3  ;;  %2618 = vrot.lane.b32.xlu1 %v5724_v10, %s3915_s9 }
 0x3de   :  { %v3863_v11 = vpop.eup %3862  ;;  %v2449_v46 = vadd.f32 1.0, %v3861_v0  ;;  %v2322_v50 = vpop.f32.mrb[110].mxu0 }
 0x3df   :  { %v2521_v44 = vmul.f32 %v3863_v11, %v5646_v15  ;;  %3872 = vpow2.f32 %v3037_v35  ;;  %v5737_v18 = vadd.f32 %v5547_v8, %v2322_v50  ;;  %v3596_v51 = vpop.f32.mrb[111].mxu0 }
 0x3e0   :  { %3874 = vrcp.f32 %v2449_v46 }
 0x3e1   :  { %v3865_v62 = vpop.eup %3864  ;;  %2546 = vst.msk [vmem:[%s6132_s7 + $0x50] sm:$0xff] %vm57_vm1, %v2521_v44  ;;  %v3038_v23 = vmul.f32 -1.442695, %v5737_v18  ;;  %2695 = vrot.lane.b32.xlu1 %v5737_v18, %s3919_s3  ;;  %2620 = vrot.lane.b32.xlu0 %v5737_v18, %s3915_s9 }
 0x3e2   :  { %v3867_v1 = vpop.eup %3866  ;;  %v2450_v2 = vadd.f32 1.0, %v3865_v62  ;;  %v2327_v3 = vpop.f32.mrb[112].mxu0 }
 0x3e3   :  { %v2522_v25 = vmul.f32 %v3867_v1, %v5659_v21  ;;  %3876 = vpow2.f32 %v3038_v23  ;;  %v5750_v29 = vadd.f32 %v5547_v8, %v2327_v3  ;;  %v3599_v40 = vpop.f32.mrb[113].mxu0 }
 0x3e4   :  { %3878 = vrcp.f32 %v2450_v2 }
 0x3e5   :  { %v3869_v31 = vpop.eup %3868  ;;  %2547 = vst.msk [vmem:[%s6132_s7 + $0x58] sm:$0xff] %vm57_vm1, %v2522_v25  ;;  %v3039_v33 = vmul.f32 -1.442695, %v5750_v29  ;;  %2697 = vrot.lane.b32.xlu0 %v5750_v29, %s3919_s3  ;;  %2622 = vrot.lane.b32.xlu1 %v5750_v29, %s3915_s9 }
 0x3e6   :  { %v3871_v48 = vpop.eup %3870  ;;  %v2451_v52 = vadd.f32 1.0, %v3869_v31  ;;  %v2332_v5 = vpop.f32.mrb[114].mxu0 }
 0x3e7   :  { %v2523_v9 = vmul.f32 %v3871_v48, %v5672_v36  ;;  %3880 = vpow2.f32 %v3039_v33  ;;  %v5763_v14 = vadd.f32 %v5547_v8, %v2332_v5  ;;  %v3602_v28 = vpop.f32.mrb[115].mxu0 }
 0x3e8   :  { %3882 = vrcp.f32 %v2451_v52 }
 0x3e9   :  { %v3873_v38 = vpop.eup %3872  ;;  %2548 = vst.msk [vmem:[%s6132_s7 + $0x60] sm:$0xff] %vm57_vm1, %v2523_v9  ;;  %v3040_v16 = vmul.f32 -1.442695, %v5763_v14  ;;  %2699 = vrot.lane.b32.xlu1 %v5763_v14, %s3919_s3  ;;  %2624 = vrot.lane.b32.xlu0 %v5763_v14, %s3915_s9 }
 0x3ea   :  { %v3875_v26 = vpop.eup %3874  ;;  %v2452_v19 = vadd.f32 1.0, %v3873_v38  ;;  %v2337_v55 = vpop.f32.mrb[116].mxu0 }
 0x3eb   :  { %v2524_v20 = vmul.f32 %v3875_v26, %v5685_v60  ;;  %3884 = vpow2.f32 %v3040_v16  ;;  %v5776_v22 = vadd.f32 %v5547_v8, %v2337_v55  ;;  %v3605_v30 = vpop.f32.mrb[117].mxu0 }
 0x3ec   :  { %3886 = vrcp.f32 %v2452_v19 }
 0x3ed   :  { %v3877_v63 = vpop.eup %3876  ;;  %2549 = vst.msk [vmem:[%s6132_s7 + $0x68] sm:$0xff] %vm57_vm1, %v2524_v20  ;;  %v3041_v59 = vmul.f32 -1.442695, %v5776_v22  ;;  %2701 = vrot.lane.b32.xlu0 %v5776_v22, %s3919_s3  ;;  %2626 = vrot.lane.b32.xlu1 %v5776_v22, %s3915_s9 }
 0x3ee   :  { %v3879_v12 = vpop.eup %3878  ;;  %v2453_v42 = vadd.f32 1.0, %v3877_v63  ;;  %v2342_v47 = vpop.f32.mrb[118].mxu0 }
 0x3ef   :  { %v2525_v41 = vmul.f32 %v3879_v12, %v5698_v34  ;;  %3888 = vpow2.f32 %v3041_v59  ;;  %v5789_v49 = vadd.f32 %v5547_v8, %v2342_v47  ;;  %v3608_v54 = vpop.f32.mrb[119].mxu0 }
 0x3f0   :  { %3890 = vrcp.f32 %v2453_v42 }
 0x3f1   :  { %v3881_v57 = vpop.eup %3880  ;;  %2550 = vst.msk [vmem:[%s6132_s7 + $0x70] sm:$0xff] %vm57_vm1, %v2525_v41  ;;  %v3042_v53 = vmul.f32 -1.442695, %v5789_v49  ;;  %2703 = vrot.lane.b32.xlu1 %v5789_v49, %s3919_s3  ;;  %2628 = vrot.lane.b32.xlu0 %v5789_v49, %s3915_s9 }
 0x3f2   :  { %v3883_v61 = vpop.eup %3882  ;;  %v2454_v7 = vadd.f32 1.0, %v3881_v57  ;;  %v2347_v6 = vpop.f32.mrb[120].mxu0 }
 0x3f3   :  { %v2526_v32 = vmul.f32 %v3883_v61, %v5711_v45  ;;  %3892 = vpow2.f32 %v3042_v53  ;;  %v5802_v0 = vadd.f32 %v5547_v8, %v2347_v6  ;;  %v3611_v35 = vpop.f32.mrb[121].mxu0  ;;  %v2786_v6 = vld [vmem:[%s6129_s8] sm:$0xff] }
 0x3f4   :  { %3894 = vrcp.f32 %v2454_v7 }
 0x3f5   :  { %v3885_v11 = vpop.eup %3884  ;;  %2551 = vst.msk [vmem:[%s6132_s7 + $0x78] sm:$0xff] %vm57_vm1, %v2526_v32  ;;  %v3043_v46 = vmul.f32 -1.442695, %v5802_v0  ;;  %2705 = vrot.lane.b32.xlu0 %v5802_v0, %s3919_s3  ;;  %2630 = vrot.lane.b32.xlu1 %v5802_v0, %s3915_s9 }
 0x3f6   :  { %v3887_v50 = vpop.eup %3886  ;;  %v2455_v44 = vadd.f32 1.0, %v3885_v11  ;;  %v2352_v51 = vpop.f32.mrb[122].mxu0 }
 0x3f7   :  { %v2527_v62 = vmul.f32 %v3887_v50, %v5724_v10  ;;  %3896 = vpow2.f32 %v3043_v46  ;;  %v5815_v23 = vadd.f32 %v5547_v8, %v2352_v51  ;;  %v3614_v1 = vpop.f32.mrb[123].mxu0  ;;  %v2787_v51 = vld [vmem:[%s6129_s8 + $0x8] sm:$0xff] }
 0x3f8   :  { %3898 = vrcp.f32 %v2455_v44 }
 0x3f9   :  { %v3889_v2 = vpop.eup %3888  ;;  %2552 = vst.msk [vmem:[%s6132_s7 + $0x80] sm:$0xff] %vm57_vm1, %v2527_v62  ;;  %v3044_v3 = vmul.f32 -1.442695, %v5815_v23  ;;  %2632 = vrot.lane.b32.xlu0 %v5815_v23, %s3915_s9 }
 0x3fa   :  { %v3891_v25 = vpop.eup %3890  ;;  %v2456_v40 = vadd.f32 1.0, %v3889_v2  ;;  %v2357_v31 = vpop.f32.mrb[124].mxu0 }
 0x3fb   :  { %v2528_v33 = vmul.f32 %v3891_v25, %v5737_v18  ;;  %3900 = vpow2.f32 %v3044_v3  ;;  %v5826_v48 = vadd.f32 %v5547_v8, %v2357_v31  ;;  %v3617_v52 = vpop.f32.mrb[125].mxu0  ;;  %v2788_v31 = vld [vmem:[%s6129_s8 + $0x10] sm:$0xff] }
 0x3fc   :  { %3902 = vrcp.f32 %v2456_v40 }
 0x3fd   :  { %v3893_v5 = vpop.eup %3892  ;;  %2553 = vst.msk [vmem:[%s6132_s7 + $0x88] sm:$0xff] %vm57_vm1, %v2528_v33  ;;  %v3045_v9 = vmul.f32 -1.442695, %v5826_v48  ;;  %2709 = vrot.lane.b32.xlu0 %v5826_v48, %s3919_s3  ;;  %2634 = vrot.lane.b32.xlu1 %v5826_v48, %s3915_s9 }
 0x3fe   :  { %v3895_v28 = vpop.eup %3894  ;;  %v2457_v38 = vadd.f32 1.0, %v3893_v5 }
 0x3ff   :  { %v2529_v8 = vmul.f32 %v3895_v28, %v5750_v29  ;;  %3904 = vpow2.f32 %v3045_v9  ;;  %v2789_v28 = vld [vmem:[%s6129_s8 + $0x18] sm:$0xff] }
 0x400   :  { %3906 = vrcp.f32 %v2457_v38 }
 0x401   :  { %v3897_v16 = vpop.eup %3896  ;;  %2554 = vst.msk [vmem:[%s6132_s7 + $0x90] sm:$0xff] %vm57_vm1, %v2529_v8  ;;  %2707 = vrot.lane.b32.xlu1 %v5815_v23, %s3919_s3 }
 0x402   :  { %v3899_v26 = vpop.eup %3898  ;;  %v2458_v19 = vadd.f32 1.0, %v3897_v16 }
 0x403   :  { %v2530_v55 = vmul.f32 %v3899_v26, %v5763_v14 }
 0x404   :  { %3908 = vrcp.f32 %v2458_v19 }
 0x405   :  { %v3901_v20 = vpop.eup %3900  ;;  %2555 = vst.msk [vmem:[%s6132_s7 + $0x98] sm:$0xff] %vm57_vm1, %v2530_v55 }
 0x406   :  { %v3903_v30 = vpop.eup %3902  ;;  %v2459_v63 = vadd.f32 1.0, %v3901_v20 }
 0x407   :  { %v2531_v59 = vmul.f32 %v3903_v30, %v5776_v22 }
 0x408   :  { %3910 = vrcp.f32 %v2459_v63 }
 0x409   :  { %v3905_v12 = vpop.eup %3904  ;;  %2556 = vst.msk [vmem:[%s6132_s7 + $0xa0] sm:$0xff] %vm57_vm1, %v2531_v59 }
 0x40a   :  { %v3907_v42 = vpop.eup %3906  ;;  %v2460_v47 = vadd.f32 1.0, %v3905_v12 }
 0x40b   :  { %v2532_v41 = vmul.f32 %v3907_v42, %v5789_v49 }
 0x40c   :  { %3912 = vrcp.f32 %v2460_v47 }
 0x40d   :  { %2557 = vst.msk [vmem:[%s6132_s7 + $0xa8] sm:$0xff] %vm57_vm1, %v2532_v41 }
 0x40e   :  { %v3909_v54 = vpop.eup %3908 }
 0x40f   :  { %v2533_v57 = vmul.f32 %v3909_v54, %v5802_v0  ;;  %v2662_v53 = vpop.permute.xlu0 %2661  ;;  %v2587_v61 = vpop.permute.xlu1 %2586 }
 0x410   :  { %v2736_v7 = vsel %vm57_vm1, %v2587_v61, %v5550_v37 }
 0x411   :  { %2558 = vst.msk [vmem:[%s6132_s7 + $0xb0] sm:$0xff] %vm57_vm1, %v2533_v57  ;;  %v2761_v32 = vsel %vm1428_vm10, %v2736_v7, %v2662_v53 }
 0x412   :  { %v3911_v35 = vpop.eup %3910  ;;  %v2811_v11 = vmul.f32 %v2786_v6, %v2761_v32 }
 0x413   :  { %v2534_v46 = vmul.f32 %v3911_v35, %v5815_v23  ;;  %v2664_v50 = vpop.permute.xlu1 %2663  ;;  %v2589_v44 = vpop.permute.xlu0 %2588 }
 0x414   :  { %2836 = vst.msk [vmem:[%s6129_s8] sm:$0xff] %vm1454_vm11, %v2811_v11  ;;  %v2737_v37 = vsel %vm57_vm1, %v2589_v44, %v5558_v17 }
 0x415   :  { %2559 = vst.msk [vmem:[%s6132_s7 + $0xb8] sm:$0xff] %vm57_vm1, %v2534_v46  ;;  %v2762_v62 = vsel %vm1428_vm10, %v2737_v37, %v2664_v50 }
 0x416   :  { %v3913_v1 = vpop.eup %3912  ;;  %v2812_v2 = vmul.f32 %v2787_v51, %v2762_v62 }
 0x417   :  { %v2535_v3 = vmul.f32 %v3913_v1, %v5826_v48  ;;  %v2666_v25 = vpop.permute.xlu0 %2665  ;;  %v2591_v40 = vpop.permute.xlu1 %2590 }
 0x418   :  { %2837 = vst.msk [vmem:[%s6129_s8 + $0x8] sm:$0xff] %vm1454_vm11, %v2812_v2  ;;  %v2738_v17 = vsel %vm57_vm1, %v2591_v40, %v5566_v58 }
 0x419   :  { %2560 = vst.msk [vmem:[%s6132_s7 + $0xc0] sm:$0xff] %vm57_vm1, %v2535_v3  ;;  %v2763_v33 = vsel %vm1428_vm10, %v2738_v17, %v2666_v25 }
 0x41a   :  { %v2813_v52 = vmul.f32 %v2788_v31, %v2763_v33 }
 0x41b   :  { %v2668_v5 = vpop.permute.xlu1 %2667  ;;  %v2593_v9 = vpop.permute.xlu0 %2592 }
 0x41c   :  { %2838 = vst.msk [vmem:[%s6129_s8 + $0x10] sm:$0xff] %vm1454_vm11, %v2813_v52  ;;  %v2739_v58 = vsel %vm57_vm1, %v2593_v9, %v5574_v39  ;;  %v2790_v39 = vld [vmem:[%s6129_s8 + $0x20] sm:$0xff] }
 0x41d   :  { %v2764_v38 = vsel %vm1428_vm10, %v2739_v58, %v2668_v5 }
 0x41e   :  { %v2814_v8 = vmul.f32 %v2789_v28, %v2764_v38 }
 0x41f   :  { %v2670_v16 = vpop.permute.xlu0 %2669  ;;  %v2595_v26 = vpop.permute.xlu1 %2594 }
 0x420   :  { %2839 = vst.msk [vmem:[%s6129_s8 + $0x18] sm:$0xff] %vm1454_vm11, %v2814_v8  ;;  %v2740_v19 = vsel %vm57_vm1, %v2595_v26, %v5582_v27  ;;  %v2791_v27 = vld [vmem:[%s6129_s8 + $0x28] sm:$0xff] }
 0x421   :  { %v2765_v55 = vsel %vm1428_vm10, %v2740_v19, %v2670_v16 }
 0x422   :  { %v2815_v20 = vmul.f32 %v2790_v39, %v2765_v55 }
 0x423   :  { %v2672_v30 = vpop.permute.xlu1 %2671  ;;  %v2597_v63 = vpop.permute.xlu0 %2596 }
 0x424   :  { %2840 = vst.msk [vmem:[%s6129_s8 + $0x20] sm:$0xff] %vm1454_vm11, %v2815_v20  ;;  %v2741_v59 = vsel %vm57_vm1, %v2597_v63, %v5590_v56  ;;  %v2792_v56 = vld [vmem:[%s6129_s8 + $0x30] sm:$0xff] }
 0x425   :  { %v2766_v12 = vsel %vm1428_vm10, %v2741_v59, %v2672_v30 }
 0x426   :  { %v2816_v42 = vmul.f32 %v2791_v27, %v2766_v12 }
 0x427   :  { %v2674_v47 = vpop.permute.xlu0 %2673  ;;  %v2599_v41 = vpop.permute.xlu1 %2598 }
 0x428   :  { %2841 = vst.msk [vmem:[%s6129_s8 + $0x28] sm:$0xff] %vm1454_vm11, %v2816_v42  ;;  %v2742_v54 = vsel %vm57_vm1, %v2599_v41, %v5598_v13  ;;  %v2793_v13 = vld [vmem:[%s6129_s8 + $0x38] sm:$0xff] }
 0x429   :  { %v2767_v57 = vsel %vm1428_vm10, %v2742_v54, %v2674_v47 }
 0x42a   :  { %v2817_v53 = vmul.f32 %v2792_v56, %v2767_v57 }
 0x42b   :  { %v2676_v61 = vpop.permute.xlu1 %2675  ;;  %v2601_v7 = vpop.permute.xlu0 %2600 }
 0x42c   :  { %2842 = vst.msk [vmem:[%s6129_s8 + $0x30] sm:$0xff] %vm1454_vm11, %v2817_v53  ;;  %v2743_v6 = vsel %vm57_vm1, %v2601_v7, %v5607_v4  ;;  %v2794_v4 = vld [vmem:[%s6129_s8 + $0x40] sm:$0xff] }
 0x42d   :  { %v2768_v32 = vsel %vm1428_vm10, %v2743_v6, %v2676_v61 }
 0x42e   :  { %v2818_v35 = vmul.f32 %v2793_v13, %v2768_v32 }
 0x42f   :  { %v2678_v11 = vpop.permute.xlu0 %2677  ;;  %v2603_v46 = vpop.permute.xlu1 %2602 }
 0x430   :  { %2843 = vst.msk [vmem:[%s6129_s8 + $0x38] sm:$0xff] %vm1454_vm11, %v2818_v35  ;;  %v2744_v50 = vsel %vm57_vm1, %v2603_v46, %v5620_v43  ;;  %v2795_v43 = vld [vmem:[%s6129_s8 + $0x48] sm:$0xff] }
 0x431   :  { %v2769_v44 = vsel %vm1428_vm10, %v2744_v50, %v2678_v11 }
 0x432   :  { %v2819_v37 = vmul.f32 %v2794_v4, %v2769_v44 }
 0x433   :  { %v2680_v51 = vpop.permute.xlu1 %2679  ;;  %v2605_v62 = vpop.permute.xlu0 %2604 }
 0x434   :  { %2844 = vst.msk [vmem:[%s6129_s8 + $0x40] sm:$0xff] %vm1454_vm11, %v2819_v37  ;;  %v2745_v1 = vsel %vm57_vm1, %v2605_v62, %v5633_v24  ;;  %v2796_v24 = vld [vmem:[%s6129_s8 + $0x50] sm:$0xff] }
 0x435   :  { %v2770_v2 = vsel %vm1428_vm10, %v2745_v1, %v2680_v51 }
 0x436   :  { %v2820_v3 = vmul.f32 %v2795_v43, %v2770_v2 }
 0x437   :  { %v2682_v25 = vpop.permute.xlu0 %2681  ;;  %v2607_v40 = vpop.permute.xlu1 %2606 }
 0x438   :  { %2845 = vst.msk [vmem:[%s6129_s8 + $0x48] sm:$0xff] %vm1454_vm11, %v2820_v3  ;;  %v2746_v17 = vsel %vm57_vm1, %v2607_v40, %v5646_v15  ;;  %v2797_v15 = vld [vmem:[%s6129_s8 + $0x58] sm:$0xff] }
 0x439   :  { %v2771_v31 = vsel %vm1428_vm10, %v2746_v17, %v2682_v25 }
 0x43a   :  { %v2821_v33 = vmul.f32 %v2796_v24, %v2771_v31 }
 0x43b   :  { %v2684_v52 = vpop.permute.xlu1 %2683  ;;  %v2609_v5 = vpop.permute.xlu0 %2608 }
 0x43c   :  { %2846 = vst.msk [vmem:[%s6129_s8 + $0x50] sm:$0xff] %vm1454_vm11, %v2821_v33  ;;  %v2747_v9 = vsel %vm57_vm1, %v2609_v5, %v5659_v21  ;;  %v2798_v21 = vld [vmem:[%s6129_s8 + $0x60] sm:$0xff] }
 0x43d   :  { %v2772_v58 = vsel %vm1428_vm10, %v2747_v9, %v2684_v52 }
 0x43e   :  { %v2822_v28 = vmul.f32 %v2797_v15, %v2772_v58 }
 0x43f   :  { %v2686_v38 = vpop.permute.xlu0 %2685  ;;  %v2611_v8 = vpop.permute.xlu1 %2610 }
 0x440   :  { %2847 = vst.msk [vmem:[%s6129_s8 + $0x58] sm:$0xff] %vm1454_vm11, %v2822_v28  ;;  %v2748_v16 = vsel %vm57_vm1, %v2611_v8, %v5672_v36  ;;  %v2799_v36 = vld [vmem:[%s6129_s8 + $0x68] sm:$0xff] }
 0x441   :  { %v2773_v26 = vsel %vm1428_vm10, %v2748_v16, %v2686_v38 }
 0x442   :  { %v2823_v19 = vmul.f32 %v2798_v21, %v2773_v26 }
 0x443   :  { %v2688_v39 = vpop.permute.xlu1 %2687  ;;  %v2613_v55 = vpop.permute.xlu0 %2612 }
 0x444   :  { %2848 = vst.msk [vmem:[%s6129_s8 + $0x60] sm:$0xff] %vm1454_vm11, %v2823_v19  ;;  %v2749_v20 = vsel %vm57_vm1, %v2613_v55, %v5685_v60  ;;  %v2800_v60 = vld [vmem:[%s6129_s8 + $0x70] sm:$0xff] }
 0x445   :  { %v2774_v30 = vsel %vm1428_vm10, %v2749_v20, %v2688_v39 }
 0x446   :  { %v2824_v63 = vmul.f32 %v2799_v36, %v2774_v30 }
 0x447   :  { %v2690_v59 = vpop.permute.xlu0 %2689  ;;  %v2615_v27 = vpop.permute.xlu1 %2614 }
 0x448   :  { %2849 = vst.msk [vmem:[%s6129_s8 + $0x68] sm:$0xff] %vm1454_vm11, %v2824_v63  ;;  %v2750_v12 = vsel %vm57_vm1, %v2615_v27, %v5698_v34  ;;  %v2801_v34 = vld [vmem:[%s6129_s8 + $0x78] sm:$0xff] }
 0x449   :  { %v2775_v42 = vsel %vm1428_vm10, %v2750_v12, %v2690_v59 }
 0x44a   :  { %v2825_v47 = vmul.f32 %v2800_v60, %v2775_v42 }
 0x44b   :  { %v2692_v41 = vpop.permute.xlu1 %2691  ;;  %v2617_v54 = vpop.permute.xlu0 %2616 }
 0x44c   :  { %2850 = vst.msk [vmem:[%s6129_s8 + $0x70] sm:$0xff] %vm1454_vm11, %v2825_v47  ;;  %v2751_v56 = vsel %vm57_vm1, %v2617_v54, %v5711_v45  ;;  %v2802_v45 = vld [vmem:[%s6129_s8 + $0x80] sm:$0xff] }
 0x44d   :  { %v2776_v57 = vsel %vm1428_vm10, %v2751_v56, %v2692_v41 }
 0x44e   :  { %v2826_v53 = vmul.f32 %v2801_v34, %v2776_v57 }
 0x44f   :  { %v2694_v61 = vpop.permute.xlu0 %2693  ;;  %v2619_v7 = vpop.permute.xlu1 %2618 }
 0x450   :  { %2851 = vst.msk [vmem:[%s6129_s8 + $0x78] sm:$0xff] %vm1454_vm11, %v2826_v53  ;;  %v2752_v6 = vsel %vm57_vm1, %v2619_v7, %v5724_v10  ;;  %v2803_v10 = vld [vmem:[%s6129_s8 + $0x88] sm:$0xff] }
 0x451   :  { %v2777_v13 = vsel %vm1428_vm10, %v2752_v6, %v2694_v61 }
 0x452   :  { %v2827_v32 = vmul.f32 %v2802_v45, %v2777_v13 }
 0x453   :  { %v2696_v35 = vpop.permute.xlu1 %2695  ;;  %v2621_v11 = vpop.permute.xlu0 %2620 }
 0x454   :  { %2852 = vst.msk [vmem:[%s6129_s8 + $0x80] sm:$0xff] %vm1454_vm11, %v2827_v32  ;;  %v2753_v46 = vsel %vm57_vm1, %v2621_v11, %v5737_v18  ;;  %v2804_v18 = vld [vmem:[%s6129_s8 + $0x90] sm:$0xff] }
 0x455   :  { %v2778_v50 = vsel %vm1428_vm10, %v2753_v46, %v2696_v35 }
 0x456   :  { %v2828_v4 = vmul.f32 %v2803_v10, %v2778_v50 }
 0x457   :  { %v2698_v44 = vpop.permute.xlu0 %2697  ;;  %v2623_v37 = vpop.permute.xlu1 %2622 }
 0x458   :  { %2853 = vst.msk [vmem:[%s6129_s8 + $0x88] sm:$0xff] %vm1454_vm11, %v2828_v4  ;;  %v2754_v51 = vsel %vm57_vm1, %v2623_v37, %v5750_v29  ;;  %v2805_v29 = vld [vmem:[%s6129_s8 + $0x98] sm:$0xff] }
 0x459   :  { %v2779_v62 = vsel %vm1428_vm10, %v2754_v51, %v2698_v44 }
 0x45a   :  { %v2829_v1 = vmul.f32 %v2804_v18, %v2779_v62 }
 0x45b   :  { %v2700_v43 = vpop.permute.xlu1 %2699  ;;  %v2625_v2 = vpop.permute.xlu0 %2624 }
 0x45c   :  { %2854 = vst.msk [vmem:[%s6129_s8 + $0x90] sm:$0xff] %vm1454_vm11, %v2829_v1  ;;  %v2755_v3 = vsel %vm57_vm1, %v2625_v2, %v5763_v14  ;;  %v2806_v14 = vld [vmem:[%s6129_s8 + $0xa0] sm:$0xff] }
 0x45d   :  { %v2780_v25 = vsel %vm1428_vm10, %v2755_v3, %v2700_v43 }
 0x45e   :  { %v2830_v40 = vmul.f32 %v2805_v29, %v2780_v25 }
 0x45f   :  { %v2702_v17 = vpop.permute.xlu0 %2701  ;;  %v2627_v24 = vpop.permute.xlu1 %2626 }
 0x460   :  { %2855 = vst.msk [vmem:[%s6129_s8 + $0x98] sm:$0xff] %vm1454_vm11, %v2830_v40  ;;  %v2756_v31 = vsel %vm57_vm1, %v2627_v24, %v5776_v22  ;;  %v2807_v22 = vld [vmem:[%s6129_s8 + $0xa8] sm:$0xff] }
 0x461   :  { %v2781_v33 = vsel %vm1428_vm10, %v2756_v31, %v2702_v17 }
 0x462   :  { %v2831_v52 = vmul.f32 %v2806_v14, %v2781_v33 }
 0x463   :  { %v2704_v5 = vpop.permute.xlu1 %2703  ;;  %v2629_v9 = vpop.permute.xlu0 %2628 }
 0x464   :  { %2856 = vst.msk [vmem:[%s6129_s8 + $0xa0] sm:$0xff] %vm1454_vm11, %v2831_v52  ;;  %v2757_v15 = vsel %vm57_vm1, %v2629_v9, %v5789_v49  ;;  %v2808_v49 = vld [vmem:[%s6129_s8 + $0xb0] sm:$0xff] }
 0x465   :  { %v2782_v58 = vsel %vm1428_vm10, %v2757_v15, %v2704_v5 }
 0x466   :  { %v2832_v28 = vmul.f32 %v2807_v22, %v2782_v58 }
 0x467   :  { %v2706_v38 = vpop.permute.xlu0 %2705  ;;  %v2631_v8 = vpop.permute.xlu1 %2630 }
 0x468   :  { %2857 = vst.msk [vmem:[%s6129_s8 + $0xa8] sm:$0xff] %vm1454_vm11, %v2832_v28  ;;  %v2758_v16 = vsel %vm57_vm1, %v2631_v8, %v5802_v0  ;;  %v2810_v0 = vld [vmem:[%s6129_s8 + $0xc0] sm:$0xff] }
 0x469   :  { %v2783_v21 = vsel %vm1428_vm10, %v2758_v16, %v2706_v38 }
 0x46a   :  { %v2833_v26 = vmul.f32 %v2808_v49, %v2783_v21 }
 0x46b   :  { %v2633_v19 = vpop.permute.xlu0 %2632 }
 0x46c   :  { %2858 = vst.msk [vmem:[%s6129_s8 + $0xb0] sm:$0xff] %vm1454_vm11, %v2833_v26  ;;  %v2759_v63 = vsel %vm57_vm1, %v2633_v19, %v5815_v23 }
 0x46f   :  { %v2710_v39 = vpop.permute.xlu0 %2709  ;;  %v2635_v55 = vpop.permute.xlu1 %2634 }
 0x470   :  { %v2760_v20 = vsel %vm57_vm1, %v2635_v55, %v5826_v48  ;;  %v2809_v48 = vld [vmem:[%s6129_s8 + $0xb8] sm:$0xff] }
 0x471   :  { %v2785_v36 = vsel %vm1428_vm10, %v2760_v20, %v2710_v39 }
 0x472   :  { %v2835_v30 = vmul.f32 %v2810_v0, %v2785_v36 }
 0x473   :  { %v2708_v59 = vpop.permute.xlu1 %2707 }
 0x474   :  { %2860 = vst.msk [vmem:[%s6129_s8 + $0xc0] sm:$0xff] %vm1454_vm11, %v2835_v30  ;;  %v2784_v27 = vsel %vm1428_vm10, %v2759_v63, %v2708_v59 }
 0x475   :  { %v2834_v12 = vmul.f32 %v2809_v48, %v2784_v27 }
 0x477   :  { %2859 = vst.msk [vmem:[%s6129_s8 + $0xb8] sm:$0xff] %vm1454_vm11, %v2834_v12 }

</bundles_post_ra>
